<compile_context>
chip_gen: v7x
topology: tpu7x:2x2x1
jax: 0.10.0
libtpu: 0.0.40
codegen_flags: <defaults>
</compile_context>

<pallas_src>
import functools

import jax
import jax.numpy as jnp
from jax.experimental import pallas as pl
from jax.experimental.pallas import tpu as pltpu

_EPS = 1e-5


@functools.lru_cache(maxsize=None)
def _vmem_limit_bytes():
    """Per-generation VMEM budget: ~75% of physical capacity."""
    try:
        cap = int(pltpu.get_tpu_info().vmem_capacity_bytes)
    except Exception:  # pragma: no cover - conservative v7x-safe fallback
        cap = 64 * 1024 * 1024
    return max(32 * 1024 * 1024, (cap * 3) // 4)


def _pick_tile_h(H, W, Cout):
    """Largest H tile that divides H, is a multiple of 8, and keeps the f32
    accumulator under ~2 MiB; falls back to the whole image."""
    budget = 2 * 1024 * 1024
    if H % 8 != 0:
        return H
    cands = [th for th in range(8, H + 1, 8)
             if H % th == 0 and th * W * Cout * 4 <= budget]
    return max(cands) if cands else 8


def _pack_w(w_hwio):
    """(3, 3, Cin, Cout) HWIO -> (9, Cin, Cout) bf16, tap order (dy, dx)."""
    kh, kw, cin, cout = w_hwio.shape
    return w_hwio.reshape(kh * kw, cin, cout).astype(jnp.bfloat16)


# ------------------------------ kernels -------------------------------------


def conv_stats_kernel(x_ref, scale_ref, shift_ref, w_ref, y_ref, stats_ref,
                      xp_ref, *, apply_act):
    """3x3 conv (padding=1, no bias) on one TH-row tile + BN partial stats.

    x_ref:     (1, H, W, Cin)   bf16 unpadded NHWC image (resident across h)
    scale_ref: (1, 1, Cin) f32  previous stage BN scale (ignored if !apply_act)
    shift_ref: (1, 1, Cin) f32  previous stage BN shift (ignored if !apply_act)
    w_ref:     (9, Cin, Cout)   bf16 conv taps, row order (dy, dx)
    y_ref:     (1, TH, W, Cout) bf16 raw (pre-BN) conv output tile
    stats_ref: (1, 1, 2, Cout)  f32 per-tile [sum, sum-of-squares]
    xp_ref:    (H+2, W+2, Cin)  bf16 VMEM scratch: zero-padded (+act) image
    """
    h = pl.program_id(1)
    _, TH, W, Cout = y_ref.shape
    _, H, _, Cin = x_ref.shape

    # Once per image (h == 0): build the zero-padded image in VMEM, fusing the
    # previous stage's BatchNorm affine + ReLU into the fill so the post-ReLU
    # activation never round-trips through HBM.
    @pl.when(h == 0)
    def _():
        xp_ref[...] = jnp.zeros_like(xp_ref)
        xin = x_ref[0]
        if apply_act:
            xin = xin.astype(jnp.float32) * scale_ref[...] + shift_ref[...]
            xin = jnp.maximum(xin, 0.0)
        xp_ref[1:H + 1, 1:W + 1, :] = xin.astype(xp_ref.dtype)

    # 3x3 conv as 9 per-tap MXU matmuls accumulated in f32 (no im2col scratch).
    row0 = h * TH
    if TH % 8 == 0:
        row0 = pl.multiple_of(row0, TH)
    acc = jnp.zeros((TH * W, Cout), jnp.float32)
    for dy in range(3):
        band = xp_ref[pl.ds(row0 + dy, TH), :, :]            # (TH, W+2, Cin)
        for dx in range(3):
            lhs = band[:, dx:dx + W, :].reshape(TH * W, Cin)
            acc = acc + jnp.dot(lhs, w_ref[dy * 3 + dx],
                                preferred_element_type=jnp.float32)

    y_ref[0] = acc.reshape(TH, W, Cout).astype(y_ref.dtype)
    # Single-pass BN partials (per-tile sum / sum of squares), kept in f32.
    stats_ref[0, 0, 0:1, :] = jnp.sum(acc, axis=0, keepdims=True)
    stats_ref[0, 0, 1:2, :] = jnp.sum(acc * acc, axis=0, keepdims=True)


def bn_relu_kernel(y_ref, scale_ref, shift_ref, o_ref):
    """Final stage: y * scale + shift, ReLU, unpadded direct store."""
    y = y_ref[...].astype(jnp.float32) * scale_ref[...] + shift_ref[...]
    o_ref[...] = jnp.maximum(y, 0.0).astype(o_ref.dtype)


# ------------------------------ wrappers -------------------------------------


def _conv_stats(x, w9, scale_prev, shift_prev, *, apply_act, tile_h):
    N, H, W, Cin = x.shape
    Cout = w9.shape[-1]
    TH = tile_h
    nH = H // TH
    kern = functools.partial(conv_stats_kernel, apply_act=apply_act)
    cparams = pltpu.CompilerParams(
        dimension_semantics=("parallel", "arbitrary"),
        vmem_limit_bytes=_vmem_limit_bytes())
    y, stats = pl.pallas_call(
        kern,
        grid=(N, nH),
        in_specs=[
            pl.BlockSpec((1, H, W, Cin), lambda n, h: (n, 0, 0, 0)),
            pl.BlockSpec((1, 1, Cin), lambda n, h: (0, 0, 0)),
            pl.BlockSpec((1, 1, Cin), lambda n, h: (0, 0, 0)),
            pl.BlockSpec((9, Cin, Cout), lambda n, h: (0, 0, 0)),
        ],
        out_specs=[
            pl.BlockSpec((1, TH, W, Cout), lambda n, h: (n, h, 0, 0)),
            pl.BlockSpec((1, 1, 2, Cout), lambda n, h: (n, h, 0, 0)),
        ],
        out_shape=[
            jax.ShapeDtypeStruct((N, H, W, Cout), jnp.bfloat16),
            jax.ShapeDtypeStruct((N, nH, 2, Cout), jnp.float32),
        ],
        scratch_shapes=[pltpu.VMEM((H + 2, W + 2, Cin), jnp.bfloat16)],
        compiler_params=cparams,
    )(x, scale_prev, shift_prev, w9)
    return y, stats


def _fold_stats(stats, gamma, beta, n_el):
    """Fold per-tile [sum, sumsq] partials into BN scale/shift (batch stats)."""
    s = jnp.sum(stats[:, :, 0, :], axis=(0, 1))
    sq = jnp.sum(stats[:, :, 1, :], axis=(0, 1))
    mean = s / n_el
    # TODO(synk): Welford-style merge if E[x^2]-E[x]^2 cancellation becomes an
    #             issue for very large N*H*W; the clamp only guards negatives.
    var = jnp.maximum(sq / n_el - mean * mean, 0.0)
    scale = gamma * jax.lax.rsqrt(var + _EPS)
    shift = beta - mean * scale
    return scale.astype(jnp.float32), shift.astype(jnp.float32)


def _bn_relu(y, scale, shift, out_dtype, *, tile_h):
    N, H, W, C = y.shape
    TH = tile_h
    nH = H // TH
    cparams = pltpu.CompilerParams(
        dimension_semantics=("parallel", "parallel"),
        vmem_limit_bytes=_vmem_limit_bytes())
    return pl.pallas_call(
        bn_relu_kernel,
        grid=(N, nH),
        in_specs=[
            pl.BlockSpec((1, TH, W, C), lambda n, h: (n, h, 0, 0)),
            pl.BlockSpec((1, 1, 1, C), lambda n, h: (0, 0, 0, 0)),
            pl.BlockSpec((1, 1, 1, C), lambda n, h: (0, 0, 0, 0)),
        ],
        out_specs=pl.BlockSpec((1, TH, W, C), lambda n, h: (n, h, 0, 0)),
        out_shape=jax.ShapeDtypeStruct((N, H, W, C), out_dtype),
        compiler_params=cparams,
    )(y, scale.reshape(1, 1, 1, C).astype(jnp.float32),
      shift.reshape(1, 1, 1, C).astype(jnp.float32))


def double_conv(x_nchw, params, tile_h=None):
    """Full DoubleConv forward. Input/output are NCHW like the PyTorch module."""
    w1, g1, b1, w2, g2, b2 = params               # conv weights in HWIO
    N, Cin, H, W = x_nchw.shape
    Cout = w1.shape[-1]
    th = tile_h if tile_h is not None else _pick_tile_h(H, W, Cout)
    assert H % th == 0, (H, th)

    x = jnp.transpose(x_nchw, (0, 2, 3, 1)).astype(jnp.bfloat16)   # NCHW->NHWC
    one = jnp.ones((1, 1, Cin), jnp.float32)
    zero = jnp.zeros((1, 1, Cin), jnp.float32)

    # Stage 1: conv1 + BN1 partial statistics.
    y1, st1 = _conv_stats(x, _pack_w(w1), one, zero,
                          apply_act=False, tile_h=th)
    s1, sh1 = _fold_stats(st1, g1, b1, N * H * W)

    # Stage 2: BN1 + ReLU1 fused into the conv2 input path, conv2 + BN2 stats.
    y2, st2 = _conv_stats(y1, _pack_w(w2), s1.reshape(1, 1, Cout),
                          sh1.reshape(1, 1, Cout), apply_act=True, tile_h=th)
    s2, sh2 = _fold_stats(st2, g2, b2, N * H * W)

    # Final BN2 affine + ReLU2, written unpadded straight to f32.
    out = _bn_relu(y2, s2, sh2, jnp.float32, tile_h=th)
    return jnp.transpose(out, (0, 3, 1, 2))       # NHWC -> NCHW


# ----------------------- reference (plain JAX / XLA) -------------------------
# Mirrors the kernel's precision policy (bf16 conv operands, bf16 storage of
# the pre-BN activation, f32 statistics) so the tolerance stays meaningful.


def _ref_conv(x_nhwc, w_hwio):
    return jax.lax.conv_general_dilated(
        x_nhwc.astype(jnp.bfloat16), w_hwio.astype(jnp.bfloat16),
        window_strides=(1, 1), padding=[(1, 1), (1, 1)],
        dimension_numbers=("NHWC", "HWIO", "NHWC"),
        preferred_element_type=jnp.float32)


def double_conv_ref(x_nchw, params):
    w1, g1, b1, w2, g2, b2 = params
    x = jnp.transpose(x_nchw, (0, 2, 3, 1)).astype(jnp.bfloat16)

    y1 = _ref_conv(x, w1)
    m1 = jnp.mean(y1, axis=(0, 1, 2))
    v1 = jnp.mean(jnp.square(y1 - m1), axis=(0, 1, 2))
    s1 = g1 * jax.lax.rsqrt(v1 + _EPS)
    sh1 = b1 - m1 * s1
    a1 = y1.astype(jnp.bfloat16).astype(jnp.float32) * s1 + sh1
    a1 = jnp.maximum(a1, 0.0).astype(jnp.bfloat16)

    y2 = _ref_conv(a1, w2)
    m2 = jnp.mean(y2, axis=(0, 1, 2))
    v2 = jnp.mean(jnp.square(y2 - m2), axis=(0, 1, 2))
    s2 = g2 * jax.lax.rsqrt(v2 + _EPS)
    sh2 = b2 - m2 * s2
    out = y2.astype(jnp.bfloat16).astype(jnp.float32) * s2 + sh2
    out = jnp.maximum(out, 0.0).astype(jnp.float32)
    return jnp.transpose(out, (0, 3, 1, 2))


if __name__ == "__main__":
    key = jax.random.PRNGKey(0)
    N, Cin, Cout, H, W = 2, 4, 8, 16, 16

    k_x, k_w1, k_w2, k_g1, k_b1, k_g2, k_b2 = jax.random.split(key, 7)
    x = jax.random.normal(k_x, (N, Cin, H, W), dtype=jnp.float32)

    # Parameter shapes follow DoubleConv.__init__ (conv weights OIHW -> HWIO).
    w1_oihw = 0.1 * jax.random.normal(k_w1, (Cout, Cin, 3, 3), jnp.float32)
    w2_oihw = 0.1 * jax.random.normal(k_w2, (Cout, Cout, 3, 3), jnp.float32)
    w1 = jnp.transpose(w1_oihw, (2, 3, 1, 0))
    w2 = jnp.transpose(w2_oihw, (2, 3, 1, 0))
    g1 = 1.0 + 0.1 * jax.random.normal(k_g1, (Cout,), jnp.float32)
    b1 = 0.1 * jax.random.normal(k_b1, (Cout,), jnp.float32)
    g2 = 1.0 + 0.1 * jax.random.normal(k_g2, (Cout,), jnp.float32)
    b2 = 0.1 * jax.random.normal(k_b2, (Cout,), jnp.float32)
    params = (w1, g1, b1, w2, g2, b2)

    # tile_h=8 -> two H tiles per image, exercising the tiled (h > 0) path.
    run = jax.jit(functools.partial(double_conv, tile_h=8))
    out = jax.block_until_ready(run(x, params))
    ref = jax.block_until_ready(double_conv_ref(x, params))

    assert out.shape == (N, Cout, H, W), out.shape
    max_err = float(jnp.max(jnp.abs(out - ref)))
    assert jnp.allclose(out, ref, atol=1e-2, rtol=1e-2), max_err

    print("KERNEL_OK")
</pallas_src>

<mosaic_0001>
module attributes {stable_mosaic.version = 11 : i64} {
  func.func @conv_stats_kernel(%arg0: i32, %arg1: i32, %arg2: memref<1x16x16x4xbf16, #tpu.memory_space<vmem>>, %arg3: memref<1x1x4xf32, #tpu.memory_space<vmem>>, %arg4: memref<1x1x4xf32, #tpu.memory_space<vmem>>, %arg5: memref<9x4x8xbf16, #tpu.memory_space<vmem>>, %arg6: memref<1x8x16x8xbf16, #tpu.memory_space<vmem>>, %arg7: memref<1x1x2x8xf32, #tpu.memory_space<vmem>>, %arg8: memref<18x18x4xbf16, #tpu.memory_space<vmem>>) attributes {dimension_semantics = [#tpu.dimension_semantics<parallel>, #tpu.dimension_semantics<arbitrary>], iteration_bounds = array<i64: 2, 2>, scalar_prefetch = 0 : i64, scratch_operands = 1 : i64, tpu.core_type = #tpu.core_type<tc>, window_params = [{transform_indices = @transform_0, window_bounds = array<i64: 1, 16, 16, 4>}, {pipeline_mode = #tpu.pipeline_mode<synchronous>, transform_indices = @transform_1, window_bounds = array<i64: 1, 1, 4>}, {pipeline_mode = #tpu.pipeline_mode<synchronous>, transform_indices = @transform_2, window_bounds = array<i64: 1, 1, 4>}, {pipeline_mode = #tpu.pipeline_mode<synchronous>, transform_indices = @transform_3, window_bounds = array<i64: 9, 4, 8>}, {transform_indices = @transform_4, window_bounds = array<i64: 1, 8, 16, 8>}, {transform_indices = @transform_5, window_bounds = array<i64: 1, 1, 2, 8>}]} {
    %c0_i32 = arith.constant 0 : i32
    %0 = arith.cmpi eq, %arg1, %c0_i32 : i32
    %1 = arith.extui %0 : i1 to i32
    %c0_i32_0 = arith.constant 0 : i32
    %2 = arith.cmpi ne, %1, %c0_i32_0 : i32
    scf.if %2 {
      %cst_49 = arith.constant 0.000000e+00 : bf16
      %85 = vector.broadcast %cst_49 : bf16 to vector<18x18x4xbf16>
      %c0_50 = arith.constant 0 : index
      %c0_51 = arith.constant 0 : index
      %c0_52 = arith.constant 0 : index
      %86 = vector.load %arg8[%c0_50, %c0_51, %c0_52] : memref<18x18x4xbf16, #tpu.memory_space<vmem>>, vector<18x18x4xbf16>
      tpu.vector_store %arg8[%c0_50, %c0_51, %c0_52], %85 {strides = array<i32>} : memref<18x18x4xbf16, #tpu.memory_space<vmem>>, vector<18x18x4xbf16>,
      %c0_53 = arith.constant 0 : index
      %c0_54 = arith.constant 0 : index
      %c0_55 = arith.constant 0 : index
      %c0_56 = arith.constant 0 : index
      %87 = vector.load %arg2[%c0_53, %c0_54, %c0_55, %c0_56] : memref<1x16x16x4xbf16, #tpu.memory_space<vmem>>, vector<1x16x16x4xbf16>
      %88 = vector.shape_cast %87 : vector<1x16x16x4xbf16> to vector<16x16x4xbf16>
      %c1_57 = arith.constant 1 : index
      %c1_58 = arith.constant 1 : index
      %c0_59 = arith.constant 0 : index
      %89 = vector.load %arg8[%c1_57, %c1_58, %c0_59] : memref<18x18x4xbf16, #tpu.memory_space<vmem>>, vector<16x16x4xbf16>
      tpu.vector_store %arg8[%c1_57, %c1_58, %c0_59], %88 {strides = array<i32>} : memref<18x18x4xbf16, #tpu.memory_space<vmem>>, vector<16x16x4xbf16>,
    } else {
    }
    %c8_i32 = arith.constant 8 : i32
    %3 = arith.muli %arg1, %c8_i32 : i32
    %4 = tpu.assume_multiple %3, 8 : i32
    %cst = arith.constant 0.000000e+00 : f32
    %5 = vector.broadcast %cst : f32 to vector<128x8xf32>
    %c0_i32_1 = arith.constant 0 : i32
    %6 = arith.addi %4, %c0_i32_1 : i32
    %7 = arith.index_cast %6 : i32 to index
    %c0 = arith.constant 0 : index
    %c0_2 = arith.constant 0 : index
    %8 = vector.load %arg8[%7, %c0, %c0_2] : memref<18x18x4xbf16, #tpu.memory_space<vmem>>, vector<8x18x4xbf16>
    %9 = vector.extract_strided_slice %8 {offsets = [0, 0, 0], sizes = [8, 16, 4], strides = [1, 1, 1]} : vector<8x18x4xbf16> to vector<8x16x4xbf16>
    %10 = vector.shape_cast %9 : vector<8x16x4xbf16> to vector<128x4xbf16>
    %c0_3 = arith.constant 0 : index
    %c0_4 = arith.constant 0 : index
    %c0_5 = arith.constant 0 : index
    %11 = vector.load %arg5[%c0_3, %c0_4, %c0_5] : memref<9x4x8xbf16, #tpu.memory_space<vmem>>, vector<1x4x8xbf16>
    %12 = vector.shape_cast %11 : vector<1x4x8xbf16> to vector<4x8xbf16>
    %cst_6 = arith.constant dense<0.000000e+00> : vector<128x8xf32>
    %13 = tpu.matmul %10, %12, %cst_6 {dimension_numbers = #tpu.dot_dimension_numbers<[1], [0], [0], [1], [0, 0, 1, 1], [], []>} : vector<128x4xbf16>, vector<4x8xbf16>, vector<128x8xf32> -> vector<128x8xf32>
    %14 = arith.addf %5, %13 : vector<128x8xf32>
    %15 = vector.extract_strided_slice %8 {offsets = [0, 1, 0], sizes = [8, 16, 4], strides = [1, 1, 1]} : vector<8x18x4xbf16> to vector<8x16x4xbf16>
    %16 = vector.shape_cast %15 : vector<8x16x4xbf16> to vector<128x4xbf16>
    %c1 = arith.constant 1 : index
    %c0_7 = arith.constant 0 : index
    %c0_8 = arith.constant 0 : index
    %17 = vector.load %arg5[%c1, %c0_7, %c0_8] : memref<9x4x8xbf16, #tpu.memory_space<vmem>>, vector<1x4x8xbf16>
    %18 = vector.shape_cast %17 : vector<1x4x8xbf16> to vector<4x8xbf16>
    %cst_9 = arith.constant dense<0.000000e+00> : vector<128x8xf32>
    %19 = tpu.matmul %16, %18, %cst_9 {dimension_numbers = #tpu.dot_dimension_numbers<[1], [0], [0], [1], [0, 0, 1, 1], [], []>} : vector<128x4xbf16>, vector<4x8xbf16>, vector<128x8xf32> -> vector<128x8xf32>
    %20 = arith.addf %14, %19 : vector<128x8xf32>
    %21 = vector.extract_strided_slice %8 {offsets = [0, 2, 0], sizes = [8, 16, 4], strides = [1, 1, 1]} : vector<8x18x4xbf16> to vector<8x16x4xbf16>
    %22 = vector.shape_cast %21 : vector<8x16x4xbf16> to vector<128x4xbf16>
    %c2 = arith.constant 2 : index
    %c0_10 = arith.constant 0 : index
    %c0_11 = arith.constant 0 : index
    %23 = vector.load %arg5[%c2, %c0_10, %c0_11] : memref<9x4x8xbf16, #tpu.memory_space<vmem>>, vector<1x4x8xbf16>
    %24 = vector.shape_cast %23 : vector<1x4x8xbf16> to vector<4x8xbf16>
    %cst_12 = arith.constant dense<0.000000e+00> : vector<128x8xf32>
    %25 = tpu.matmul %22, %24, %cst_12 {dimension_numbers = #tpu.dot_dimension_numbers<[1], [0], [0], [1], [0, 0, 1, 1], [], []>} : vector<128x4xbf16>, vector<4x8xbf16>, vector<128x8xf32> -> vector<128x8xf32>
    %26 = arith.addf %20, %25 : vector<128x8xf32>
    %c1_i32 = arith.constant 1 : i32
    %27 = arith.addi %4, %c1_i32 : i32
    %28 = arith.index_cast %27 : i32 to index
    %c0_13 = arith.constant 0 : index
    %c0_14 = arith.constant 0 : index
    %29 = vector.load %arg8[%28, %c0_13, %c0_14] : memref<18x18x4xbf16, #tpu.memory_space<vmem>>, vector<8x18x4xbf16>
    %30 = vector.extract_strided_slice %29 {offsets = [0, 0, 0], sizes = [8, 16, 4], strides = [1, 1, 1]} : vector<8x18x4xbf16> to vector<8x16x4xbf16>
    %31 = vector.shape_cast %30 : vector<8x16x4xbf16> to vector<128x4xbf16>
    %c3 = arith.constant 3 : index
    %c0_15 = arith.constant 0 : index
    %c0_16 = arith.constant 0 : index
    %32 = vector.load %arg5[%c3, %c0_15, %c0_16] : memref<9x4x8xbf16, #tpu.memory_space<vmem>>, vector<1x4x8xbf16>
    %33 = vector.shape_cast %32 : vector<1x4x8xbf16> to vector<4x8xbf16>
    %cst_17 = arith.constant dense<0.000000e+00> : vector<128x8xf32>
    %34 = tpu.matmul %31, %33, %cst_17 {dimension_numbers = #tpu.dot_dimension_numbers<[1], [0], [0], [1], [0, 0, 1, 1], [], []>} : vector<128x4xbf16>, vector<4x8xbf16>, vector<128x8xf32> -> vector<128x8xf32>
    %35 = arith.addf %26, %34 : vector<128x8xf32>
    %36 = vector.extract_strided_slice %29 {offsets = [0, 1, 0], sizes = [8, 16, 4], strides = [1, 1, 1]} : vector<8x18x4xbf16> to vector<8x16x4xbf16>
    %37 = vector.shape_cast %36 : vector<8x16x4xbf16> to vector<128x4xbf16>
    %c4 = arith.constant 4 : index
    %c0_18 = arith.constant 0 : index
    %c0_19 = arith.constant 0 : index
    %38 = vector.load %arg5[%c4, %c0_18, %c0_19] : memref<9x4x8xbf16, #tpu.memory_space<vmem>>, vector<1x4x8xbf16>
    %39 = vector.shape_cast %38 : vector<1x4x8xbf16> to vector<4x8xbf16>
    %cst_20 = arith.constant dense<0.000000e+00> : vector<128x8xf32>
    %40 = tpu.matmul %37, %39, %cst_20 {dimension_numbers = #tpu.dot_dimension_numbers<[1], [0], [0], [1], [0, 0, 1, 1], [], []>} : vector<128x4xbf16>, vector<4x8xbf16>, vector<128x8xf32> -> vector<128x8xf32>
    %41 = arith.addf %35, %40 : vector<128x8xf32>
    %42 = vector.extract_strided_slice %29 {offsets = [0, 2, 0], sizes = [8, 16, 4], strides = [1, 1, 1]} : vector<8x18x4xbf16> to vector<8x16x4xbf16>
    %43 = vector.shape_cast %42 : vector<8x16x4xbf16> to vector<128x4xbf16>
    %c5 = arith.constant 5 : index
    %c0_21 = arith.constant 0 : index
    %c0_22 = arith.constant 0 : index
    %44 = vector.load %arg5[%c5, %c0_21, %c0_22] : memref<9x4x8xbf16, #tpu.memory_space<vmem>>, vector<1x4x8xbf16>
    %45 = vector.shape_cast %44 : vector<1x4x8xbf16> to vector<4x8xbf16>
    %cst_23 = arith.constant dense<0.000000e+00> : vector<128x8xf32>
    %46 = tpu.matmul %43, %45, %cst_23 {dimension_numbers = #tpu.dot_dimension_numbers<[1], [0], [0], [1], [0, 0, 1, 1], [], []>} : vector<128x4xbf16>, vector<4x8xbf16>, vector<128x8xf32> -> vector<128x8xf32>
    %47 = arith.addf %41, %46 : vector<128x8xf32>
    %c2_i32 = arith.constant 2 : i32
    %48 = arith.addi %4, %c2_i32 : i32
    %49 = arith.index_cast %48 : i32 to index
    %c0_24 = arith.constant 0 : index
    %c0_25 = arith.constant 0 : index
    %50 = vector.load %arg8[%49, %c0_24, %c0_25] : memref<18x18x4xbf16, #tpu.memory_space<vmem>>, vector<8x18x4xbf16>
    %51 = vector.extract_strided_slice %50 {offsets = [0, 0, 0], sizes = [8, 16, 4], strides = [1, 1, 1]} : vector<8x18x4xbf16> to vector<8x16x4xbf16>
    %52 = vector.shape_cast %51 : vector<8x16x4xbf16> to vector<128x4xbf16>
    %c6 = arith.constant 6 : index
    %c0_26 = arith.constant 0 : index
    %c0_27 = arith.constant 0 : index
    %53 = vector.load %arg5[%c6, %c0_26, %c0_27] : memref<9x4x8xbf16, #tpu.memory_space<vmem>>, vector<1x4x8xbf16>
    %54 = vector.shape_cast %53 : vector<1x4x8xbf16> to vector<4x8xbf16>
    %cst_28 = arith.constant dense<0.000000e+00> : vector<128x8xf32>
    %55 = tpu.matmul %52, %54, %cst_28 {dimension_numbers = #tpu.dot_dimension_numbers<[1], [0], [0], [1], [0, 0, 1, 1], [], []>} : vector<128x4xbf16>, vector<4x8xbf16>, vector<128x8xf32> -> vector<128x8xf32>
    %56 = arith.addf %47, %55 : vector<128x8xf32>
    %57 = vector.extract_strided_slice %50 {offsets = [0, 1, 0], sizes = [8, 16, 4], strides = [1, 1, 1]} : vector<8x18x4xbf16> to vector<8x16x4xbf16>
    %58 = vector.shape_cast %57 : vector<8x16x4xbf16> to vector<128x4xbf16>
    %c7 = arith.constant 7 : index
    %c0_29 = arith.constant 0 : index
    %c0_30 = arith.constant 0 : index
    %59 = vector.load %arg5[%c7, %c0_29, %c0_30] : memref<9x4x8xbf16, #tpu.memory_space<vmem>>, vector<1x4x8xbf16>
    %60 = vector.shape_cast %59 : vector<1x4x8xbf16> to vector<4x8xbf16>
    %cst_31 = arith.constant dense<0.000000e+00> : vector<128x8xf32>
    %61 = tpu.matmul %58, %60, %cst_31 {dimension_numbers = #tpu.dot_dimension_numbers<[1], [0], [0], [1], [0, 0, 1, 1], [], []>} : vector<128x4xbf16>, vector<4x8xbf16>, vector<128x8xf32> -> vector<128x8xf32>
    %62 = arith.addf %56, %61 : vector<128x8xf32>
    %63 = vector.extract_strided_slice %50 {offsets = [0, 2, 0], sizes = [8, 16, 4], strides = [1, 1, 1]} : vector<8x18x4xbf16> to vector<8x16x4xbf16>
    %64 = vector.shape_cast %63 : vector<8x16x4xbf16> to vector<128x4xbf16>
    %c8 = arith.constant 8 : index
    %c0_32 = arith.constant 0 : index
    %c0_33 = arith.constant 0 : index
    %65 = vector.load %arg5[%c8, %c0_32, %c0_33] : memref<9x4x8xbf16, #tpu.memory_space<vmem>>, vector<1x4x8xbf16>
    %66 = vector.shape_cast %65 : vector<1x4x8xbf16> to vector<4x8xbf16>
    %cst_34 = arith.constant dense<0.000000e+00> : vector<128x8xf32>
    %67 = tpu.matmul %64, %66, %cst_34 {dimension_numbers = #tpu.dot_dimension_numbers<[1], [0], [0], [1], [0, 0, 1, 1], [], []>} : vector<128x4xbf16>, vector<4x8xbf16>, vector<128x8xf32> -> vector<128x8xf32>
    %68 = arith.addf %62, %67 : vector<128x8xf32>
    %69 = vector.shape_cast %68 : vector<128x8xf32> to vector<8x16x8xf32>
    %70 = arith.truncf %69 : vector<8x16x8xf32> to vector<8x16x8xbf16>
    %c0_35 = arith.constant 0 : index
    %c0_36 = arith.constant 0 : index
    %c0_37 = arith.constant 0 : index
    %c0_38 = arith.constant 0 : index
    %71 = vector.load %arg6[%c0_35, %c0_36, %c0_37, %c0_38] : memref<1x8x16x8xbf16, #tpu.memory_space<vmem>>, vector<1x8x16x8xbf16>
    %72 = vector.shape_cast %71 : vector<1x8x16x8xbf16> to vector<8x16x8xbf16>
    %73 = vector.shape_cast %70 : vector<8x16x8xbf16> to vector<1x8x16x8xbf16>
    tpu.vector_store %arg6[%c0_35, %c0_36, %c0_37, %c0_38], %73 {strides = array<i32>} : memref<1x8x16x8xbf16, #tpu.memory_space<vmem>>, vector<1x8x16x8xbf16>,
    %cst_39 = arith.constant dense<0.000000e+00> : vector<8xf32>
    %74 = vector.multi_reduction <add>, %68, %cst_39 [0] : vector<128x8xf32> to vector<8xf32>
    %75 = vector.shape_cast %74 : vector<8xf32> to vector<1x8xf32>
    %c0_40 = arith.constant 0 : index
    %c0_41 = arith.constant 0 : index
    %c0_42 = arith.constant 0 : index
    %c0_43 = arith.constant 0 : index
    %76 = vector.load %arg7[%c0_40, %c0_41, %c0_42, %c0_43] : memref<1x1x2x8xf32, #tpu.memory_space<vmem>>, vector<1x1x1x8xf32>
    %77 = vector.shape_cast %76 : vector<1x1x1x8xf32> to vector<1x8xf32>
    %78 = vector.shape_cast %75 : vector<1x8xf32> to vector<1x1x1x8xf32>
    tpu.vector_store %arg7[%c0_40, %c0_41, %c0_42, %c0_43], %78 {strides = array<i32>} : memref<1x1x2x8xf32, #tpu.memory_space<vmem>>, vector<1x1x1x8xf32>,
    %79 = arith.mulf %68, %68 : vector<128x8xf32>
    %cst_44 = arith.constant dense<0.000000e+00> : vector<8xf32>
    %80 = vector.multi_reduction <add>, %79, %cst_44 [0] : vector<128x8xf32> to vector<8xf32>
    %81 = vector.shape_cast %80 : vector<8xf32> to vector<1x8xf32>
    %c0_45 = arith.constant 0 : index
    %c0_46 = arith.constant 0 : index
    %c1_47 = arith.constant 1 : index
    %c0_48 = arith.constant 0 : index
    %82 = vector.load %arg7[%c0_45, %c0_46, %c1_47, %c0_48] : memref<1x1x2x8xf32, #tpu.memory_space<vmem>>, vector<1x1x1x8xf32>
    %83 = vector.shape_cast %82 : vector<1x1x1x8xf32> to vector<1x8xf32>
    %84 = vector.shape_cast %81 : vector<1x8xf32> to vector<1x1x1x8xf32>
    tpu.vector_store %arg7[%c0_45, %c0_46, %c1_47, %c0_48], %84 {strides = array<i32>} : memref<1x1x2x8xf32, #tpu.memory_space<vmem>>, vector<1x1x1x8xf32>,
    return
  }
  func.func @transform_0(%arg0: i32, %arg1: i32) -> (i32, i32, i32, i32) {
    %c0_i32 = arith.constant 0 : i32
    %c0_i32_0 = arith.constant 0 : i32
    %c0_i32_1 = arith.constant 0 : i32
    %c0_i32_2 = arith.constant 0 : i32
    return %arg0, %c0_i32, %c0_i32_0, %c0_i32_1 : i32, i32, i32, i32
  }
  func.func @transform_1(%arg0: i32, %arg1: i32) -> (i32, i32, i32) {
    %c0_i32 = arith.constant 0 : i32
    %c0_i32_0 = arith.constant 0 : i32
    %c0_i32_1 = arith.constant 0 : i32
    %c0_i32_2 = arith.constant 0 : i32
    return %c0_i32, %c0_i32_0, %c0_i32_1 : i32, i32, i32
  }
  func.func @transform_2(%arg0: i32, %arg1: i32) -> (i32, i32, i32) {
    %c0_i32 = arith.constant 0 : i32
    %c0_i32_0 = arith.constant 0 : i32
    %c0_i32_1 = arith.constant 0 : i32
    %c0_i32_2 = arith.constant 0 : i32
    return %c0_i32, %c0_i32_0, %c0_i32_1 : i32, i32, i32
  }
  func.func @transform_3(%arg0: i32, %arg1: i32) -> (i32, i32, i32) {
    %c0_i32 = arith.constant 0 : i32
    %c0_i32_0 = arith.constant 0 : i32
    %c0_i32_1 = arith.constant 0 : i32
    %c0_i32_2 = arith.constant 0 : i32
    return %c0_i32, %c0_i32_0, %c0_i32_1 : i32, i32, i32
  }
  func.func @transform_4(%arg0: i32, %arg1: i32) -> (i32, i32, i32, i32) {
    %c0_i32 = arith.constant 0 : i32
    %c0_i32_0 = arith.constant 0 : i32
    %c0_i32_1 = arith.constant 0 : i32
    return %arg0, %arg1, %c0_i32, %c0_i32_0 : i32, i32, i32, i32
  }
  func.func @transform_5(%arg0: i32, %arg1: i32) -> (i32, i32, i32, i32) {
    %c0_i32 = arith.constant 0 : i32
    %c0_i32_0 = arith.constant 0 : i32
    %c0_i32_1 = arith.constant 0 : i32
    return %arg0, %arg1, %c0_i32, %c0_i32_0 : i32, i32, i32, i32
  }
}

module attributes {stable_mosaic.version = 11 : i64} {
  func.func @conv_stats_kernel(%arg0: i32, %arg1: i32, %arg2: memref<1x16x16x8xbf16, #tpu.memory_space<vmem>>, %arg3: memref<1x1x8xf32, #tpu.memory_space<vmem>>, %arg4: memref<1x1x8xf32, #tpu.memory_space<vmem>>, %arg5: memref<9x8x8xbf16, #tpu.memory_space<vmem>>, %arg6: memref<1x8x16x8xbf16, #tpu.memory_space<vmem>>, %arg7: memref<1x1x2x8xf32, #tpu.memory_space<vmem>>, %arg8: memref<18x18x8xbf16, #tpu.memory_space<vmem>>) attributes {dimension_semantics = [#tpu.dimension_semantics<parallel>, #tpu.dimension_semantics<arbitrary>], iteration_bounds = array<i64: 2, 2>, scalar_prefetch = 0 : i64, scratch_operands = 1 : i64, tpu.core_type = #tpu.core_type<tc>, window_params = [{transform_indices = @transform_0, window_bounds = array<i64: 1, 16, 16, 8>}, {pipeline_mode = #tpu.pipeline_mode<synchronous>, transform_indices = @transform_1, window_bounds = array<i64: 1, 1, 8>}, {pipeline_mode = #tpu.pipeline_mode<synchronous>, transform_indices = @transform_2, window_bounds = array<i64: 1, 1, 8>}, {pipeline_mode = #tpu.pipeline_mode<synchronous>, transform_indices = @transform_3, window_bounds = array<i64: 9, 8, 8>}, {transform_indices = @transform_4, window_bounds = array<i64: 1, 8, 16, 8>}, {transform_indices = @transform_5, window_bounds = array<i64: 1, 1, 2, 8>}]} {
    %c0_i32 = arith.constant 0 : i32
    %0 = arith.cmpi eq, %arg1, %c0_i32 : i32
    %1 = arith.extui %0 : i1 to i32
    %c0_i32_0 = arith.constant 0 : i32
    %2 = arith.cmpi ne, %1, %c0_i32_0 : i32
    scf.if %2 {
      %cst_49 = arith.constant 0.000000e+00 : bf16
      %85 = vector.broadcast %cst_49 : bf16 to vector<18x18x8xbf16>
      %c0_50 = arith.constant 0 : index
      %c0_51 = arith.constant 0 : index
      %c0_52 = arith.constant 0 : index
      %86 = vector.load %arg8[%c0_50, %c0_51, %c0_52] : memref<18x18x8xbf16, #tpu.memory_space<vmem>>, vector<18x18x8xbf16>
      tpu.vector_store %arg8[%c0_50, %c0_51, %c0_52], %85 {strides = array<i32>} : memref<18x18x8xbf16, #tpu.memory_space<vmem>>, vector<18x18x8xbf16>,
      %c0_53 = arith.constant 0 : index
      %c0_54 = arith.constant 0 : index
      %c0_55 = arith.constant 0 : index
      %c0_56 = arith.constant 0 : index
      %87 = vector.load %arg2[%c0_53, %c0_54, %c0_55, %c0_56] : memref<1x16x16x8xbf16, #tpu.memory_space<vmem>>, vector<1x16x16x8xbf16>
      %88 = vector.shape_cast %87 : vector<1x16x16x8xbf16> to vector<16x16x8xbf16>
      %89 = arith.extf %88 : vector<16x16x8xbf16> to vector<16x16x8xf32>
      %c0_57 = arith.constant 0 : index
      %c0_58 = arith.constant 0 : index
      %c0_59 = arith.constant 0 : index
      %90 = vector.load %arg3[%c0_57, %c0_58, %c0_59] : memref<1x1x8xf32, #tpu.memory_space<vmem>>, vector<1x1x8xf32>
      %91 = vector.broadcast %90 : vector<1x1x8xf32> to vector<16x16x8xf32>
      %92 = arith.mulf %89, %91 : vector<16x16x8xf32>
      %c0_60 = arith.constant 0 : index
      %c0_61 = arith.constant 0 : index
      %c0_62 = arith.constant 0 : index
      %93 = vector.load %arg4[%c0_60, %c0_61, %c0_62] : memref<1x1x8xf32, #tpu.memory_space<vmem>>, vector<1x1x8xf32>
      %94 = vector.broadcast %93 : vector<1x1x8xf32> to vector<16x16x8xf32>
      %95 = arith.addf %92, %94 : vector<16x16x8xf32>
      %cst_63 = arith.constant 0.000000e+00 : f32
      %96 = vector.broadcast %cst_63 : f32 to vector<16x16x8xf32>
      %97 = arith.maximumf %95, %96 : vector<16x16x8xf32>
      %98 = arith.truncf %97 : vector<16x16x8xf32> to vector<16x16x8xbf16>
      %c1_64 = arith.constant 1 : index
      %c1_65 = arith.constant 1 : index
      %c0_66 = arith.constant 0 : index
      %99 = vector.load %arg8[%c1_64, %c1_65, %c0_66] : memref<18x18x8xbf16, #tpu.memory_space<vmem>>, vector<16x16x8xbf16>
      tpu.vector_store %arg8[%c1_64, %c1_65, %c0_66], %98 {strides = array<i32>} : memref<18x18x8xbf16, #tpu.memory_space<vmem>>, vector<16x16x8xbf16>,
    } else {
    }
    %c8_i32 = arith.constant 8 : i32
    %3 = arith.muli %arg1, %c8_i32 : i32
    %4 = tpu.assume_multiple %3, 8 : i32
    %cst = arith.constant 0.000000e+00 : f32
    %5 = vector.broadcast %cst : f32 to vector<128x8xf32>
    %c0_i32_1 = arith.constant 0 : i32
    %6 = arith.addi %4, %c0_i32_1 : i32
    %7 = arith.index_cast %6 : i32 to index
    %c0 = arith.constant 0 : index
    %c0_2 = arith.constant 0 : index
    %8 = vector.load %arg8[%7, %c0, %c0_2] : memref<18x18x8xbf16, #tpu.memory_space<vmem>>, vector<8x18x8xbf16>
    %9 = vector.extract_strided_slice %8 {offsets = [0, 0, 0], sizes = [8, 16, 8], strides = [1, 1, 1]} : vector<8x18x8xbf16> to vector<8x16x8xbf16>
    %10 = vector.shape_cast %9 : vector<8x16x8xbf16> to vector<128x8xbf16>
    %c0_3 = arith.constant 0 : index
    %c0_4 = arith.constant 0 : index
    %c0_5 = arith.constant 0 : index
    %11 = vector.load %arg5[%c0_3, %c0_4, %c0_5] : memref<9x8x8xbf16, #tpu.memory_space<vmem>>, vector<1x8x8xbf16>
    %12 = vector.shape_cast %11 : vector<1x8x8xbf16> to vector<8x8xbf16>
    %cst_6 = arith.constant dense<0.000000e+00> : vector<128x8xf32>
    %13 = tpu.matmul %10, %12, %cst_6 {dimension_numbers = #tpu.dot_dimension_numbers<[1], [0], [0], [1], [0, 0, 1, 1], [], []>} : vector<128x8xbf16>, vector<8x8xbf16>, vector<128x8xf32> -> vector<128x8xf32>
    %14 = arith.addf %5, %13 : vector<128x8xf32>
    %15 = vector.extract_strided_slice %8 {offsets = [0, 1, 0], sizes = [8, 16, 8], strides = [1, 1, 1]} : vector<8x18x8xbf16> to vector<8x16x8xbf16>
    %16 = vector.shape_cast %15 : vector<8x16x8xbf16> to vector<128x8xbf16>
    %c1 = arith.constant 1 : index
    %c0_7 = arith.constant 0 : index
    %c0_8 = arith.constant 0 : index
    %17 = vector.load %arg5[%c1, %c0_7, %c0_8] : memref<9x8x8xbf16, #tpu.memory_space<vmem>>, vector<1x8x8xbf16>
    %18 = vector.shape_cast %17 : vector<1x8x8xbf16> to vector<8x8xbf16>
    %cst_9 = arith.constant dense<0.000000e+00> : vector<128x8xf32>
    %19 = tpu.matmul %16, %18, %cst_9 {dimension_numbers = #tpu.dot_dimension_numbers<[1], [0], [0], [1], [0, 0, 1, 1], [], []>} : vector<128x8xbf16>, vector<8x8xbf16>, vector<128x8xf32> -> vector<128x8xf32>
    %20 = arith.addf %14, %19 : vector<128x8xf32>
    %21 = vector.extract_strided_slice %8 {offsets = [0, 2, 0], sizes = [8, 16, 8], strides = [1, 1, 1]} : vector<8x18x8xbf16> to vector<8x16x8xbf16>
    %22 = vector.shape_cast %21 : vector<8x16x8xbf16> to vector<128x8xbf16>
    %c2 = arith.constant 2 : index
    %c0_10 = arith.constant 0 : index
    %c0_11 = arith.constant 0 : index
    %23 = vector.load %arg5[%c2, %c0_10, %c0_11] : memref<9x8x8xbf16, #tpu.memory_space<vmem>>, vector<1x8x8xbf16>
    %24 = vector.shape_cast %23 : vector<1x8x8xbf16> to vector<8x8xbf16>
    %cst_12 = arith.constant dense<0.000000e+00> : vector<128x8xf32>
    %25 = tpu.matmul %22, %24, %cst_12 {dimension_numbers = #tpu.dot_dimension_numbers<[1], [0], [0], [1], [0, 0, 1, 1], [], []>} : vector<128x8xbf16>, vector<8x8xbf16>, vector<128x8xf32> -> vector<128x8xf32>
    %26 = arith.addf %20, %25 : vector<128x8xf32>
    %c1_i32 = arith.constant 1 : i32
    %27 = arith.addi %4, %c1_i32 : i32
    %28 = arith.index_cast %27 : i32 to index
    %c0_13 = arith.constant 0 : index
    %c0_14 = arith.constant 0 : index
    %29 = vector.load %arg8[%28, %c0_13, %c0_14] : memref<18x18x8xbf16, #tpu.memory_space<vmem>>, vector<8x18x8xbf16>
    %30 = vector.extract_strided_slice %29 {offsets = [0, 0, 0], sizes = [8, 16, 8], strides = [1, 1, 1]} : vector<8x18x8xbf16> to vector<8x16x8xbf16>
    %31 = vector.shape_cast %30 : vector<8x16x8xbf16> to vector<128x8xbf16>
    %c3 = arith.constant 3 : index
    %c0_15 = arith.constant 0 : index
    %c0_16 = arith.constant 0 : index
    %32 = vector.load %arg5[%c3, %c0_15, %c0_16] : memref<9x8x8xbf16, #tpu.memory_space<vmem>>, vector<1x8x8xbf16>
    %33 = vector.shape_cast %32 : vector<1x8x8xbf16> to vector<8x8xbf16>
    %cst_17 = arith.constant dense<0.000000e+00> : vector<128x8xf32>
    %34 = tpu.matmul %31, %33, %cst_17 {dimension_numbers = #tpu.dot_dimension_numbers<[1], [0], [0], [1], [0, 0, 1, 1], [], []>} : vector<128x8xbf16>, vector<8x8xbf16>, vector<128x8xf32> -> vector<128x8xf32>
    %35 = arith.addf %26, %34 : vector<128x8xf32>
    %36 = vector.extract_strided_slice %29 {offsets = [0, 1, 0], sizes = [8, 16, 8], strides = [1, 1, 1]} : vector<8x18x8xbf16> to vector<8x16x8xbf16>
    %37 = vector.shape_cast %36 : vector<8x16x8xbf16> to vector<128x8xbf16>
    %c4 = arith.constant 4 : index
    %c0_18 = arith.constant 0 : index
    %c0_19 = arith.constant 0 : index
    %38 = vector.load %arg5[%c4, %c0_18, %c0_19] : memref<9x8x8xbf16, #tpu.memory_space<vmem>>, vector<1x8x8xbf16>
    %39 = vector.shape_cast %38 : vector<1x8x8xbf16> to vector<8x8xbf16>
    %cst_20 = arith.constant dense<0.000000e+00> : vector<128x8xf32>
    %40 = tpu.matmul %37, %39, %cst_20 {dimension_numbers = #tpu.dot_dimension_numbers<[1], [0], [0], [1], [0, 0, 1, 1], [], []>} : vector<128x8xbf16>, vector<8x8xbf16>, vector<128x8xf32> -> vector<128x8xf32>
    %41 = arith.addf %35, %40 : vector<128x8xf32>
    %42 = vector.extract_strided_slice %29 {offsets = [0, 2, 0], sizes = [8, 16, 8], strides = [1, 1, 1]} : vector<8x18x8xbf16> to vector<8x16x8xbf16>
    %43 = vector.shape_cast %42 : vector<8x16x8xbf16> to vector<128x8xbf16>
    %c5 = arith.constant 5 : index
    %c0_21 = arith.constant 0 : index
    %c0_22 = arith.constant 0 : index
    %44 = vector.load %arg5[%c5, %c0_21, %c0_22] : memref<9x8x8xbf16, #tpu.memory_space<vmem>>, vector<1x8x8xbf16>
    %45 = vector.shape_cast %44 : vector<1x8x8xbf16> to vector<8x8xbf16>
    %cst_23 = arith.constant dense<0.000000e+00> : vector<128x8xf32>
    %46 = tpu.matmul %43, %45, %cst_23 {dimension_numbers = #tpu.dot_dimension_numbers<[1], [0], [0], [1], [0, 0, 1, 1], [], []>} : vector<128x8xbf16>, vector<8x8xbf16>, vector<128x8xf32> -> vector<128x8xf32>
    %47 = arith.addf %41, %46 : vector<128x8xf32>
    %c2_i32 = arith.constant 2 : i32
    %48 = arith.addi %4, %c2_i32 : i32
    %49 = arith.index_cast %48 : i32 to index
    %c0_24 = arith.constant 0 : index
    %c0_25 = arith.constant 0 : index
    %50 = vector.load %arg8[%49, %c0_24, %c0_25] : memref<18x18x8xbf16, #tpu.memory_space<vmem>>, vector<8x18x8xbf16>
    %51 = vector.extract_strided_slice %50 {offsets = [0, 0, 0], sizes = [8, 16, 8], strides = [1, 1, 1]} : vector<8x18x8xbf16> to vector<8x16x8xbf16>
    %52 = vector.shape_cast %51 : vector<8x16x8xbf16> to vector<128x8xbf16>
    %c6 = arith.constant 6 : index
    %c0_26 = arith.constant 0 : index
    %c0_27 = arith.constant 0 : index
    %53 = vector.load %arg5[%c6, %c0_26, %c0_27] : memref<9x8x8xbf16, #tpu.memory_space<vmem>>, vector<1x8x8xbf16>
    %54 = vector.shape_cast %53 : vector<1x8x8xbf16> to vector<8x8xbf16>
    %cst_28 = arith.constant dense<0.000000e+00> : vector<128x8xf32>
    %55 = tpu.matmul %52, %54, %cst_28 {dimension_numbers = #tpu.dot_dimension_numbers<[1], [0], [0], [1], [0, 0, 1, 1], [], []>} : vector<128x8xbf16>, vector<8x8xbf16>, vector<128x8xf32> -> vector<128x8xf32>
    %56 = arith.addf %47, %55 : vector<128x8xf32>
    %57 = vector.extract_strided_slice %50 {offsets = [0, 1, 0], sizes = [8, 16, 8], strides = [1, 1, 1]} : vector<8x18x8xbf16> to vector<8x16x8xbf16>
    %58 = vector.shape_cast %57 : vector<8x16x8xbf16> to vector<128x8xbf16>
    %c7 = arith.constant 7 : index
    %c0_29 = arith.constant 0 : index
    %c0_30 = arith.constant 0 : index
    %59 = vector.load %arg5[%c7, %c0_29, %c0_30] : memref<9x8x8xbf16, #tpu.memory_space<vmem>>, vector<1x8x8xbf16>
    %60 = vector.shape_cast %59 : vector<1x8x8xbf16> to vector<8x8xbf16>
    %cst_31 = arith.constant dense<0.000000e+00> : vector<128x8xf32>
    %61 = tpu.matmul %58, %60, %cst_31 {dimension_numbers = #tpu.dot_dimension_numbers<[1], [0], [0], [1], [0, 0, 1, 1], [], []>} : vector<128x8xbf16>, vector<8x8xbf16>, vector<128x8xf32> -> vector<128x8xf32>
    %62 = arith.addf %56, %61 : vector<128x8xf32>
    %63 = vector.extract_strided_slice %50 {offsets = [0, 2, 0], sizes = [8, 16, 8], strides = [1, 1, 1]} : vector<8x18x8xbf16> to vector<8x16x8xbf16>
    %64 = vector.shape_cast %63 : vector<8x16x8xbf16> to vector<128x8xbf16>
    %c8 = arith.constant 8 : index
    %c0_32 = arith.constant 0 : index
    %c0_33 = arith.constant 0 : index
    %65 = vector.load %arg5[%c8, %c0_32, %c0_33] : memref<9x8x8xbf16, #tpu.memory_space<vmem>>, vector<1x8x8xbf16>
    %66 = vector.shape_cast %65 : vector<1x8x8xbf16> to vector<8x8xbf16>
    %cst_34 = arith.constant dense<0.000000e+00> : vector<128x8xf32>
    %67 = tpu.matmul %64, %66, %cst_34 {dimension_numbers = #tpu.dot_dimension_numbers<[1], [0], [0], [1], [0, 0, 1, 1], [], []>} : vector<128x8xbf16>, vector<8x8xbf16>, vector<128x8xf32> -> vector<128x8xf32>
    %68 = arith.addf %62, %67 : vector<128x8xf32>
    %69 = vector.shape_cast %68 : vector<128x8xf32> to vector<8x16x8xf32>
    %70 = arith.truncf %69 : vector<8x16x8xf32> to vector<8x16x8xbf16>
    %c0_35 = arith.constant 0 : index
    %c0_36 = arith.constant 0 : index
    %c0_37 = arith.constant 0 : index
    %c0_38 = arith.constant 0 : index
    %71 = vector.load %arg6[%c0_35, %c0_36, %c0_37, %c0_38] : memref<1x8x16x8xbf16, #tpu.memory_space<vmem>>, vector<1x8x16x8xbf16>
    %72 = vector.shape_cast %71 : vector<1x8x16x8xbf16> to vector<8x16x8xbf16>
    %73 = vector.shape_cast %70 : vector<8x16x8xbf16> to vector<1x8x16x8xbf16>
    tpu.vector_store %arg6[%c0_35, %c0_36, %c0_37, %c0_38], %73 {strides = array<i32>} : memref<1x8x16x8xbf16, #tpu.memory_space<vmem>>, vector<1x8x16x8xbf16>,
    %cst_39 = arith.constant dense<0.000000e+00> : vector<8xf32>
    %74 = vector.multi_reduction <add>, %68, %cst_39 [0] : vector<128x8xf32> to vector<8xf32>
    %75 = vector.shape_cast %74 : vector<8xf32> to vector<1x8xf32>
    %c0_40 = arith.constant 0 : index
    %c0_41 = arith.constant 0 : index
    %c0_42 = arith.constant 0 : index
    %c0_43 = arith.constant 0 : index
    %76 = vector.load %arg7[%c0_40, %c0_41, %c0_42, %c0_43] : memref<1x1x2x8xf32, #tpu.memory_space<vmem>>, vector<1x1x1x8xf32>
    %77 = vector.shape_cast %76 : vector<1x1x1x8xf32> to vector<1x8xf32>
    %78 = vector.shape_cast %75 : vector<1x8xf32> to vector<1x1x1x8xf32>
    tpu.vector_store %arg7[%c0_40, %c0_41, %c0_42, %c0_43], %78 {strides = array<i32>} : memref<1x1x2x8xf32, #tpu.memory_space<vmem>>, vector<1x1x1x8xf32>,
    %79 = arith.mulf %68, %68 : vector<128x8xf32>
    %cst_44 = arith.constant dense<0.000000e+00> : vector<8xf32>
    %80 = vector.multi_reduction <add>, %79, %cst_44 [0] : vector<128x8xf32> to vector<8xf32>
    %81 = vector.shape_cast %80 : vector<8xf32> to vector<1x8xf32>
    %c0_45 = arith.constant 0 : index
    %c0_46 = arith.constant 0 : index
    %c1_47 = arith.constant 1 : index
    %c0_48 = arith.constant 0 : index
    %82 = vector.load %arg7[%c0_45, %c0_46, %c1_47, %c0_48] : memref<1x1x2x8xf32, #tpu.memory_space<vmem>>, vector<1x1x1x8xf32>
    %83 = vector.shape_cast %82 : vector<1x1x1x8xf32> to vector<1x8xf32>
    %84 = vector.shape_cast %81 : vector<1x8xf32> to vector<1x1x1x8xf32>
    tpu.vector_store %arg7[%c0_45, %c0_46, %c1_47, %c0_48], %84 {strides = array<i32>} : memref<1x1x2x8xf32, #tpu.memory_space<vmem>>, vector<1x1x1x8xf32>,
    return
  }
  func.func @transform_0(%arg0: i32, %arg1: i32) -> (i32, i32, i32, i32) {
    %c0_i32 = arith.constant 0 : i32
    %c0_i32_0 = arith.constant 0 : i32
    %c0_i32_1 = arith.constant 0 : i32
    %c0_i32_2 = arith.constant 0 : i32
    return %arg0, %c0_i32, %c0_i32_0, %c0_i32_1 : i32, i32, i32, i32
  }
  func.func @transform_1(%arg0: i32, %arg1: i32) -> (i32, i32, i32) {
    %c0_i32 = arith.constant 0 : i32
    %c0_i32_0 = arith.constant 0 : i32
    %c0_i32_1 = arith.constant 0 : i32
    %c0_i32_2 = arith.constant 0 : i32
    return %c0_i32, %c0_i32_0, %c0_i32_1 : i32, i32, i32
  }
  func.func @transform_2(%arg0: i32, %arg1: i32) -> (i32, i32, i32) {
    %c0_i32 = arith.constant 0 : i32
    %c0_i32_0 = arith.constant 0 : i32
    %c0_i32_1 = arith.constant 0 : i32
    %c0_i32_2 = arith.constant 0 : i32
    return %c0_i32, %c0_i32_0, %c0_i32_1 : i32, i32, i32
  }
  func.func @transform_3(%arg0: i32, %arg1: i32) -> (i32, i32, i32) {
    %c0_i32 = arith.constant 0 : i32
    %c0_i32_0 = arith.constant 0 : i32
    %c0_i32_1 = arith.constant 0 : i32
    %c0_i32_2 = arith.constant 0 : i32
    return %c0_i32, %c0_i32_0, %c0_i32_1 : i32, i32, i32
  }
  func.func @transform_4(%arg0: i32, %arg1: i32) -> (i32, i32, i32, i32) {
    %c0_i32 = arith.constant 0 : i32
    %c0_i32_0 = arith.constant 0 : i32
    %c0_i32_1 = arith.constant 0 : i32
    return %arg0, %arg1, %c0_i32, %c0_i32_0 : i32, i32, i32, i32
  }
  func.func @transform_5(%arg0: i32, %arg1: i32) -> (i32, i32, i32, i32) {
    %c0_i32 = arith.constant 0 : i32
    %c0_i32_0 = arith.constant 0 : i32
    %c0_i32_1 = arith.constant 0 : i32
    return %arg0, %arg1, %c0_i32, %c0_i32_0 : i32, i32, i32, i32
  }
}

module attributes {stable_mosaic.version = 11 : i64} {
  func.func @bn_relu_kernel(%arg0: i32, %arg1: i32, %arg2: memref<1x8x16x8xbf16, #tpu.memory_space<vmem>>, %arg3: memref<1x1x1x8xf32, #tpu.memory_space<vmem>>, %arg4: memref<1x1x1x8xf32, #tpu.memory_space<vmem>>, %arg5: memref<1x8x16x8xf32, #tpu.memory_space<vmem>>) attributes {dimension_semantics = [#tpu.dimension_semantics<parallel>, #tpu.dimension_semantics<parallel>], iteration_bounds = array<i64: 2, 2>, scalar_prefetch = 0 : i64, scratch_operands = 0 : i64, tpu.core_type = #tpu.core_type<tc>, window_params = [{transform_indices = @transform_0, window_bounds = array<i64: 1, 8, 16, 8>}, {pipeline_mode = #tpu.pipeline_mode<synchronous>, transform_indices = @transform_1, window_bounds = array<i64: 1, 1, 1, 8>}, {pipeline_mode = #tpu.pipeline_mode<synchronous>, transform_indices = @transform_2, window_bounds = array<i64: 1, 1, 1, 8>}, {transform_indices = @transform_3, window_bounds = array<i64: 1, 8, 16, 8>}]} {
    %c0 = arith.constant 0 : index
    %c0_0 = arith.constant 0 : index
    %c0_1 = arith.constant 0 : index
    %c0_2 = arith.constant 0 : index
    %0 = vector.load %arg2[%c0, %c0_0, %c0_1, %c0_2] : memref<1x8x16x8xbf16, #tpu.memory_space<vmem>>, vector<1x8x16x8xbf16>
    %1 = arith.extf %0 : vector<1x8x16x8xbf16> to vector<1x8x16x8xf32>
    %c0_3 = arith.constant 0 : index
    %c0_4 = arith.constant 0 : index
    %c0_5 = arith.constant 0 : index
    %c0_6 = arith.constant 0 : index
    %2 = vector.load %arg3[%c0_3, %c0_4, %c0_5, %c0_6] : memref<1x1x1x8xf32, #tpu.memory_space<vmem>>, vector<1x1x1x8xf32>
    %3 = vector.broadcast %2 : vector<1x1x1x8xf32> to vector<1x8x16x8xf32>
    %4 = arith.mulf %1, %3 : vector<1x8x16x8xf32>
    %c0_7 = arith.constant 0 : index
    %c0_8 = arith.constant 0 : index
    %c0_9 = arith.constant 0 : index
    %c0_10 = arith.constant 0 : index
    %5 = vector.load %arg4[%c0_7, %c0_8, %c0_9, %c0_10] : memref<1x1x1x8xf32, #tpu.memory_space<vmem>>, vector<1x1x1x8xf32>
    %6 = vector.broadcast %5 : vector<1x1x1x8xf32> to vector<1x8x16x8xf32>
    %7 = arith.addf %4, %6 : vector<1x8x16x8xf32>
    %cst = arith.constant 0.000000e+00 : f32
    %8 = vector.broadcast %cst : f32 to vector<1x8x16x8xf32>
    %9 = arith.maximumf %7, %8 : vector<1x8x16x8xf32>
    %c0_11 = arith.constant 0 : index
    %c0_12 = arith.constant 0 : index
    %c0_13 = arith.constant 0 : index
    %c0_14 = arith.constant 0 : index
    %10 = vector.load %arg5[%c0_11, %c0_12, %c0_13, %c0_14] : memref<1x8x16x8xf32, #tpu.memory_space<vmem>>, vector<1x8x16x8xf32>
    tpu.vector_store %arg5[%c0_11, %c0_12, %c0_13, %c0_14], %9 {strides = array<i32>} : memref<1x8x16x8xf32, #tpu.memory_space<vmem>>, vector<1x8x16x8xf32>,
    return
  }
  func.func @transform_0(%arg0: i32, %arg1: i32) -> (i32, i32, i32, i32) {
    %c0_i32 = arith.constant 0 : i32
    %c0_i32_0 = arith.constant 0 : i32
    %c0_i32_1 = arith.constant 0 : i32
    return %arg0, %arg1, %c0_i32, %c0_i32_0 : i32, i32, i32, i32
  }
  func.func @transform_1(%arg0: i32, %arg1: i32) -> (i32, i32, i32, i32) {
    %c0_i32 = arith.constant 0 : i32
    %c0_i32_0 = arith.constant 0 : i32
    %c0_i32_1 = arith.constant 0 : i32
    %c0_i32_2 = arith.constant 0 : i32
    %c0_i32_3 = arith.constant 0 : i32
    return %c0_i32, %c0_i32_0, %c0_i32_1, %c0_i32_2 : i32, i32, i32, i32
  }
  func.func @transform_2(%arg0: i32, %arg1: i32) -> (i32, i32, i32, i32) {
    %c0_i32 = arith.constant 0 : i32
    %c0_i32_0 = arith.constant 0 : i32
    %c0_i32_1 = arith.constant 0 : i32
    %c0_i32_2 = arith.constant 0 : i32
    %c0_i32_3 = arith.constant 0 : i32
    return %c0_i32, %c0_i32_0, %c0_i32_1, %c0_i32_2 : i32, i32, i32, i32
  }
  func.func @transform_3(%arg0: i32, %arg1: i32) -> (i32, i32, i32, i32) {
    %c0_i32 = arith.constant 0 : i32
    %c0_i32_0 = arith.constant 0 : i32
    %c0_i32_1 = arith.constant 0 : i32
    return %arg0, %arg1, %c0_i32, %c0_i32_0 : i32, i32, i32, i32
  }
}

</mosaic_0001>

<bundles_post_ra>
// kernel: double_conv.5
= control target key start
LH: loop header
LB: loop body
LE: loop exit
PB: predicated region body
PF: predicated region fallthrough
CT: control target
= control target key end

     0   :  { %s581_s12 = smov 0   ;;  %s583_s13 = smov 0   ;;  %s722_s0 = inlined_call_operand.vmem [shape: bf16[2,16,16,8], index: 0, kind: input, shape index: {}]   ;;  %s723_s1 = inlined_call_operand.vmem [shape: f32[1,1,1,8], index: 1, kind: input, shape index: {}]   ;;  %s724_s2 = inlined_call_operand.vmem [shape: f32[1,1,1,8], index: 2, kind: input, shape index: {}]   ;;  %s725_s3 = inlined_call_operand.vmem [shape: f32[2,16,16,8], index: 3, kind: output, shape index: {}]  }
   0x1   :  { %s585_s14 = smov 0   ;;  %s587_s15 = smov 0  }
   0x2   :  { %s589_s16 = smov 0  }
   0x3 LB: > { %s22_s17 = sadd.s32 1, %s551_s14  ;;  %s25_s18 = sadd.s32 1, %s555_s15  ;;  %s559_s16 = sphi %s589_s16, %s13_s16   ;;  %s555_s15 = sphi %s587_s15, %s729_s15   ;;  %s551_s14 = sphi %s585_s14, %s728_s14   ;;  %s547_s13 = sphi %s583_s13, %s727_s13   ;;  %s543_s12 = sphi %s581_s12, %s726_s12  }
   0x4   : > { %p23_p0 = scmp.ge.s32.totalorder %s22_s17, 2  ;;  %p429_p1 = scmp.ge.s32.totalorder %s559_s16, 1 }
   0x5   : > { %p159_p2 = scmp.lt.s32.totalorder %s559_s16, 5 }
   0x6   : > { %s731_s17 = smov (%p23_p0, %s22_s17), 0  ;;  %s733_s18 = smov (!%p23_p0, %s25_s18), %s555_s15 }
   0x7   : > { %p160_p3 = pnand %p429_p1, %p159_p2  ;;  %p27_p4 = scmp.ge.s32.totalorder %s733_s18, 2 }
   0x8   : > { %s430_s19 = sshll.u32 (!%p160_p3), %s543_s12, 3  ;;  %p194_p5 = scmp.lt.s32.totalorder (!%p160_p3), %s547_s13, 1  ;;  %v622_v0 = vld [vmem:[%s723_s1] ss:$0 sm:$0xff] (!%p160_p3)  ;;  %vm309_vm0 = vcmask (!%p160_p3), 64512  }
   0x9   : > { %s735_s18 = smov (%p27_p4, %s733_s18), 0  ;;  %163 = sbr.rel (%p160_p3) target bundleno = 42 (0x2a), region = 32 }
   0xa   : > { %p196_p6 = scmp.lt.s32.totalorder (!%p160_p3), %s430_s19, 15  ;;  %v631_v9 = vld [vmem:[%s724_s2] ss:$0 sm:$0xff] (!%p160_p3) }
  0x10   : > { %s737_s13 = smov (!%p194_p5, %s547_s13), 1  ;;  %s739_s19 = smov (!%p196_p6, %s430_s19), 15 }
  0x11   : > { %s432_s20 = sshll.u32 %s737_s13, 5  ;;  %s431_s21 = sshll.u32 %s739_s19, 1 }
  0x12   : > { %s611_s22 = sadd.s32 %s432_s20, %s431_s21 }
  0x13   : > { %s433_s23 = sshll.u32 %s611_s22, 2  ;;  %s437_s4 = sshll.u32 %s611_s22, 3 }
  0x14   : > { %s617_s26 = scalar_lea.vmem %s722_s0, %s433_s23  ;;  %s649_s7 = scalar_lea.vmem %s725_s3, %s437_s4 }
  0x15   : > { %v443_v1 = vld [vmem:[%s617_s26] sm:$0xff]   ;;  %v474_v2 = vld [vmem:[%s617_s26 + $0x8] sm:$0xff]   ;;  %v475_v3 = vld [vmem:[%s617_s26 + $0x10] sm:$0xff]  }
  0x16   : > { %v444_v4 = vunpack.c.l.bf16 %v443_v1  ;;  %v445_v5 = vunpack.c.h.bf16 %v443_v1  ;;  %v448_v6 = vunpack.c.l.bf16 %v474_v2  ;;  %v449_v7 = vunpack.c.h.bf16 %v474_v2  ;;  %v476_v8 = vld [vmem:[%s617_s26 + $0x18] sm:$0xff]   ;;  %v477_v30 = vld [vmem:[%s617_s26 + $0x20] sm:$0xff]   ;;  %v478_v31 = vld [vmem:[%s617_s26 + $0x28] sm:$0xff]  }
  0x17   : > { %v452_v10 = vunpack.c.l.bf16 %v475_v3  ;;  %v453_v11 = vunpack.c.h.bf16 %v475_v3  ;;  %v456_v12 = vunpack.c.l.bf16 %v476_v8  ;;  %v457_v13 = vunpack.c.h.bf16 %v476_v8  ;;  %v479_v36 = vld [vmem:[%s617_s26 + $0x30] sm:$0xff]   ;;  %v480_v37 = vld [vmem:[%s617_s26 + $0x38] sm:$0xff]  }
  0x18   : > { %v254_v14 = vmul.f32 %v444_v4, %v622_v0  ;;  %v255_v15 = vmul.f32 %v445_v5, %v622_v0  ;;  %v256_v16 = vmul.f32 %v448_v6, %v622_v0  ;;  %v257_v17 = vmul.f32 %v449_v7, %v622_v0 }
  0x19   : > { %v258_v18 = vmul.f32 %v452_v10, %v622_v0  ;;  %v259_v19 = vmul.f32 %v453_v11, %v622_v0  ;;  %v260_v20 = vmul.f32 %v456_v12, %v622_v0  ;;  %v261_v21 = vmul.f32 %v457_v13, %v622_v0 }
  0x1a   : > { %v277_v22 = vadd.f32 %v631_v9, %v254_v14  ;;  %v278_v23 = vadd.f32 %v631_v9, %v255_v15  ;;  %v279_v24 = vadd.f32 %v631_v9, %v256_v16  ;;  %v280_v25 = vadd.f32 %v631_v9, %v257_v17 }
  0x1b   : > { %v281_v26 = vadd.f32 %v631_v9, %v258_v18  ;;  %v282_v27 = vadd.f32 %v631_v9, %v259_v19  ;;  %v283_v28 = vadd.f32 %v631_v9, %v260_v20  ;;  %v284_v29 = vadd.f32 %v631_v9, %v261_v21 }
  0x1c   : > { %v293_v32 = vmax.f32 %v277_v22, 0.0  ;;  %v294_v33 = vmax.f32 %v278_v23, 0.0  ;;  %v295_v34 = vmax.f32 %v279_v24, 0.0  ;;  %v296_v35 = vmax.f32 %v280_v25, 0.0 }
  0x1d   : > { %v297_v38 = vmax.f32 %v281_v26, 0.0  ;;  %v298_v39 = vmax.f32 %v282_v27, 0.0  ;;  %v299_v40 = vmax.f32 %v283_v28, 0.0  ;;  %v300_v41 = vmax.f32 %v284_v29, 0.0 }
  0x1e   : > { %310 = vst.msk [vmem:[%s649_s7] sm:$0xff] %vm309_vm0, %v293_v32  ;;  %311 = vst.msk [vmem:[%s649_s7 + $0x8] sm:$0xff] %vm309_vm0, %v294_v33  ;;  %v460_v42 = vunpack.c.l.bf16 %v477_v30  ;;  %v461_v43 = vunpack.c.h.bf16 %v477_v30  ;;  %v464_v44 = vunpack.c.l.bf16 %v478_v31  ;;  %v465_v45 = vunpack.c.h.bf16 %v478_v31 }
  0x1f   : > { %312 = vst.msk [vmem:[%s649_s7 + $0x10] sm:$0xff] %vm309_vm0, %v295_v34  ;;  %313 = vst.msk [vmem:[%s649_s7 + $0x18] sm:$0xff] %vm309_vm0, %v296_v35  ;;  %v468_v46 = vunpack.c.l.bf16 %v479_v36  ;;  %v469_v47 = vunpack.c.h.bf16 %v479_v36  ;;  %v472_v48 = vunpack.c.l.bf16 %v480_v37  ;;  %v473_v49 = vunpack.c.h.bf16 %v480_v37 }
  0x20   : > { %314 = vst.msk [vmem:[%s649_s7 + $0x20] sm:$0xff] %vm309_vm0, %v297_v38  ;;  %315 = vst.msk [vmem:[%s649_s7 + $0x28] sm:$0xff] %vm309_vm0, %v298_v39  ;;  %v262_v50 = vmul.f32 %v460_v42, %v622_v0  ;;  %v263_v51 = vmul.f32 %v461_v43, %v622_v0  ;;  %v264_v52 = vmul.f32 %v464_v44, %v622_v0 }
  0x21   : > { %316 = vst.msk [vmem:[%s649_s7 + $0x30] sm:$0xff] %vm309_vm0, %v299_v40  ;;  %317 = vst.msk [vmem:[%s649_s7 + $0x38] sm:$0xff] %vm309_vm0, %v300_v41  ;;  %v265_v53 = vmul.f32 %v465_v45, %v622_v0  ;;  %v266_v54 = vmul.f32 %v468_v46, %v622_v0  ;;  %v267_v55 = vmul.f32 %v469_v47, %v622_v0 }
  0x22   : > { %v268_v56 = vmul.f32 %v472_v48, %v622_v0  ;;  %v269_v57 = vmul.f32 %v473_v49, %v622_v0  ;;  %v285_v58 = vadd.f32 %v631_v9, %v262_v50  ;;  %v286_v59 = vadd.f32 %v631_v9, %v263_v51 }
  0x23   : > { %v287_v60 = vadd.f32 %v631_v9, %v264_v52  ;;  %v288_v61 = vadd.f32 %v631_v9, %v265_v53  ;;  %v289_v62 = vadd.f32 %v631_v9, %v266_v54  ;;  %v290_v63 = vadd.f32 %v631_v9, %v267_v55 }
  0x24   : > { %v291_v0 = vadd.f32 %v631_v9, %v268_v56  ;;  %v292_v1 = vadd.f32 %v631_v9, %v269_v57  ;;  %v301_v2 = vmax.f32 %v285_v58, 0.0  ;;  %v302_v3 = vmax.f32 %v286_v59, 0.0 }
  0x25   : > { %v303_v4 = vmax.f32 %v287_v60, 0.0  ;;  %v304_v5 = vmax.f32 %v288_v61, 0.0  ;;  %v305_v6 = vmax.f32 %v289_v62, 0.0  ;;  %v306_v7 = vmax.f32 %v290_v63, 0.0 }
  0x26   : > { %v307_v8 = vmax.f32 %v291_v0, 0.0  ;;  %v308_v10 = vmax.f32 %v292_v1, 0.0  ;;  %318 = vst.msk [vmem:[%s649_s7 + $0x40] sm:$0xff] %vm309_vm0, %v301_v2  ;;  %319 = vst.msk [vmem:[%s649_s7 + $0x48] sm:$0xff] %vm309_vm0, %v302_v3 }
  0x27   : > { %320 = vst.msk [vmem:[%s649_s7 + $0x50] sm:$0xff] %vm309_vm0, %v303_v4  ;;  %321 = vst.msk [vmem:[%s649_s7 + $0x58] sm:$0xff] %vm309_vm0, %v304_v5 }
  0x28   : > { %322 = vst.msk [vmem:[%s649_s7 + $0x60] sm:$0xff] %vm309_vm0, %v305_v6  ;;  %323 = vst.msk [vmem:[%s649_s7 + $0x68] sm:$0xff] %vm309_vm0, %v306_v7 }
  0x29   : > { %324 = vst.msk [vmem:[%s649_s7 + $0x70] sm:$0xff] %vm309_vm0, %v307_v8  ;;  %325 = vst.msk [vmem:[%s649_s7 + $0x78] sm:$0xff] %vm309_vm0, %v308_v10 }
  0x2a PF: > { %s13_s16 = sadd.s32 1, %s559_s16   ;;  %s726_s12 = smov %s551_s14 }
  0x2b   : > { %p10_p7 = scmp.ge.s32.totalorder %s13_s16, 6   ;;  %s727_s13 = smov %s555_s15 }
  0x2c   : > { %s728_s14 = smov %s731_s17  ;;  %s729_s15 = smov %s735_s18 }
  0x2d   :  { %12 = sbr.rel (!%p10_p7) target bundleno = 3 (0x3), region = 62 }

// kernel: double_conv.4
= control target key start
LH: loop header
LB: loop body
LE: loop exit
PB: predicated region body
PF: predicated region fallthrough
CT: control target
= control target key end

     0   :  { %s4687_s18 = smov 0   ;;  %s4689_s19 = smov 0   ;;  %s6068_s0 = inlined_call_operand.vmem [shape: bf16[2,16,16,8], index: 0, kind: input, shape index: {}]   ;;  %s6069_s1 = inlined_call_operand.vmem [shape: f32[1,1,8], index: 1, kind: input, shape index: {}]   ;;  %s6070_s2 = inlined_call_operand.vmem [shape: f32[1,1,8], index: 2, kind: input, shape index: {}]   ;;  %s6071_s3 = inlined_call_operand.vmem [shape: bf16[9,8,8], index: 3, kind: input, shape index: {}]   ;;  %s6072_s4 = inlined_call_operand.vmem [shape: bf16[2,16,16,8], index: 4, kind: output, shape index: {0}]   ;;  %s6073_s5 = inlined_call_operand.vmem [shape: f32[2,2,2,8], index: 5, kind: output, shape index: {1}]  }
   0x1   :  { %s4691_s20 = smov 0   ;;  %s4693_s21 = smov 0  }
   0x2   :  { %s4695_s22 = smov 0  }
   0x3 LB: > { %s25_s23 = sadd.s32 1, %s4646_s20  ;;  %s28_s24 = sadd.s32 1, %s4650_s21  ;;  %s4654_s22 = sphi %s4695_s22, %s16_s22   ;;  %s4650_s21 = sphi %s4693_s21, %s6160_s21   ;;  %s4646_s20 = sphi %s4691_s20, %s6159_s20   ;;  %s4642_s19 = sphi %s4689_s19, %s6158_s19   ;;  %s4638_s18 = sphi %s4687_s18, %s6157_s18  }
   0x4   : > { %p26_p0 = scmp.ge.s32.totalorder %s25_s23, 2  ;;  %p3737_p1 = scmp.ge.s32.totalorder %s4654_s22, 1 }
   0x5   : > { %p206_p2 = scmp.lt.s32.totalorder %s4654_s22, 5 }
   0x6   : > { %s6162_s23 = smov (%p26_p0, %s25_s23), 0  ;;  %s6164_s24 = smov (!%p26_p0, %s28_s24), %s4650_s21 }
   0x7   : > { %p207_p3 = pnand %p3737_p1, %p206_p2  ;;  %p30_p4 = scmp.ge.s32.totalorder %s6164_s24, 2 }
   0x9   : > { %s6166_s24 = smov (%p30_p4, %s6164_s24), 0  ;;  %210 = sbr.rel (%p207_p3) target bundleno = 552 (0x228), region = 36 }
   0xa   : > { %6094 = sst [smem:[#allocation3_spill]] %s6166_s24 }
  0x10   : > { %p247_p5 = scmp.lt.s32.totalorder %s4642_s19, 1  ;;  %s3740_s25 = sshll.u32 %s4638_s18, 3 }
  0x11   : > { %p255_p6 = scmp.lt.s32.totalorder %s3740_s25, 15  ;;  %p265_p7 = scmp.lt.s32.totalorder %s4638_s18, 1 }
  0x12   : > { %s6168_s19 = smov (!%p247_p5, %s4642_s19), 1  ;;  %p3746_p8 = scmp.ne.s32.totalorder %s4638_s18, 0 }
  0x13   : > { %s6170_s25 = smov (!%p255_p6, %s3740_s25), 15  ;;  %s4030_s26 = sshll.u32 %s6168_s19, 7  ;;  %vm276_vm0 = vcmask (!%p3746_p8), 60416   ;;  %vm279_vm1 = vcmask (!%p3746_p8), 57344   ;;  %v4744_v1 = vld [vmem:[%s6069_s1] ss:$0 sm:$0xff] (!%p3746_p8) }
  0x14   : > { %s3742_s27 = sshll.u32 %s6168_s19, 5  ;;  %s4724_s30 = scalar_lea.vmem %s6068_s0, %s4030_s26  ;;  %v4656_v2 = vmov (!%p3746_p8), 0   ;;  %v4804_v4 = vld [vmem:[%s6070_s2] ss:$0 sm:$0xff] (!%p3746_p8)  ;;  %vm927_vm2 = vsmask.f32 (!%p3746_p8), 7938 }
  0x15   : > { %s3741_s6 = sshll.u32 %s6170_s25, 1  ;;  %s3744_s12 = sshll.u32 %s6168_s19, 1  ;;  %v4739_v0 = vld [vmem:[%s4724_s30] sm:$0xff] (!%p3746_p8)   ;;  %281 = vst.msk [vmem:[#allocation2 + $0xc] sm:$0xf] (!%p3746_p8), %vm276_vm0, %v4656_v2  ;;  %v4144_v6 = vld [vmem:[%s4724_s30 + $0x8] sm:$0xff] (!%p3746_p8)   ;;  %vm4828_vm5 = vmand (!%p3746_p8), %vm276_vm0, %vm927_vm2 }
  0x16   : > { %s259_s7 = sadd.s32 %s3742_s27, %s3741_s6  ;;  %277 = vst.msk [vmem:[#allocation2] sm:$0xf] (!%p3746_p8), %vm276_vm0, %v4656_v2  ;;  %278 = vst.msk [vmem:[#allocation2 + $0x4] sm:$0xf] (!%p3746_p8), %vm276_vm0, %v4656_v2  ;;  %v4082_v3 = vunpack.c.l.bf16 (!%p3746_p8), %v4739_v0  ;;  %v4083_v5 = vunpack.c.h.bf16 (!%p3746_p8), %v4739_v0  ;;  %vm602_vm3 = vsmask.f32 (!%p3746_p8), 256  ;;  %v4086_v10 = vunpack.c.l.bf16 (!%p3746_p8), %v4144_v6 }
  0x17   : > { %s3743_s8 = sshll.u32 %s259_s7, 2  ;;  %275 = sbr.rel (%p3746_p8) target bundleno = 129 (0x81), region = 40  ;;  %282 = vst.msk [vmem:[#allocation2 + $0x10] sm:$0xf] (!%p3746_p8), %vm276_vm0, %v4656_v2  ;;  %284 = vst.msk [vmem:[#allocation2 + $0x18] sm:$0xf] (!%p3746_p8), %vm276_vm0, %v4656_v2  ;;  %v4087_v11 = vunpack.c.h.bf16 (!%p3746_p8), %v4144_v6 }
  0x18   : > { %s4729_s11 = scalar_lea.vmem %s6072_s4, %s3743_s8  ;;  %285 = vst.msk [vmem:[#allocation2 + $0x1c] sm:$0xf] (!%p3746_p8), %vm276_vm0, %v4656_v2  ;;  %287 = vst.msk [vmem:[#allocation2 + $0x24] sm:$0xf] (!%p3746_p8), %vm276_vm0, %v4656_v2  ;;  %vm603_vm4 = vsmask.f32 (!%p3746_p8), 4368  ;;  %v403_v8 = vmul.f32 (!%p3746_p8), %v4082_v3, %v4744_v1  ;;  %v404_v9 = vmul.f32 (!%p3746_p8), %v4083_v5, %v4744_v1  ;;  %v405_v19 = vmul.f32 (!%p3746_p8), %v4086_v10, %v4744_v1 }
  0x19   : > { %s266_s13 = scalar_select %p265_p7, %s4638_s18, 1 }
  0x1a   : > { %288 = vst.msk [vmem:[#allocation2 + $0x28] sm:$0xf] (!%p3746_p8), %vm276_vm0, %v4656_v2  ;;  %290 = vst.msk [vmem:[#allocation2 + $0x30] sm:$0xf] (!%p3746_p8), %vm276_vm0, %v4656_v2  ;;  %v4145_v7 = vld [vmem:[%s4724_s30 + $0x10] sm:$0xff] (!%p3746_p8)   ;;  %v4146_v12 = vld [vmem:[%s4724_s30 + $0x18] sm:$0xff] (!%p3746_p8)   ;;  %v442_v17 = vadd.f32 (!%p3746_p8), %v4804_v4, %v403_v8  ;;  %v443_v18 = vadd.f32 (!%p3746_p8), %v4804_v4, %v404_v9  ;;  %v406_v20 = vmul.f32 (!%p3746_p8), %v4087_v11, %v4744_v1 }
  0x1b   : > { %s268_s14 = sadd.s32 %s3744_s12, %s266_s13  ;;  %291 = vst.msk [vmem:[#allocation2 + $0x34] sm:$0xf] (!%p3746_p8), %vm276_vm0, %v4656_v2  ;;  %293 = vst.msk [vmem:[#allocation2 + $0x3c] sm:$0xf] (!%p3746_p8), %vm276_vm0, %v4656_v2  ;;  %v4090_v13 = vunpack.c.l.bf16 (!%p3746_p8), %v4145_v7  ;;  %v4091_v14 = vunpack.c.h.bf16 (!%p3746_p8), %v4145_v7  ;;  %v4094_v15 = vunpack.c.l.bf16 (!%p3746_p8), %v4146_v12  ;;  %v4095_v16 = vunpack.c.h.bf16 (!%p3746_p8), %v4146_v12 }
  0x1c   : > { %s3745_s15 = sshll.u32 %s268_s14, 1  ;;  %294 = vst.msk [vmem:[#allocation2 + $0x40] sm:$0xf] (!%p3746_p8), %vm276_vm0, %v4656_v2  ;;  %296 = vst.msk [vmem:[#allocation2 + $0x48] sm:$0xf] (!%p3746_p8), %vm276_vm0, %v4656_v2  ;;  %v474_v25 = vmax.f32 (!%p3746_p8), %v442_v17, 0.0  ;;  %v444_v27 = vadd.f32 (!%p3746_p8), %v4804_v4, %v405_v19  ;;  %v445_v28 = vadd.f32 (!%p3746_p8), %v4804_v4, %v406_v20 }
  0x1d   : > { %s4735_s24 = scalar_lea.vmem %s6073_s5, %s3745_s15  ;;  %297 = vst.msk [vmem:[#allocation2 + $0x4c] sm:$0xf] (!%p3746_p8), %vm276_vm0, %v4656_v2  ;;  %299 = vst.msk [vmem:[#allocation2 + $0x54] sm:$0xf] (!%p3746_p8), %vm276_vm0, %v4656_v2  ;;  %v407_v21 = vmul.f32 (!%p3746_p8), %v4090_v13, %v4744_v1  ;;  %v408_v22 = vmul.f32 (!%p3746_p8), %v4091_v14, %v4744_v1  ;;  %v409_v23 = vmul.f32 (!%p3746_p8), %v4094_v15, %v4744_v1  ;;  %v475_v26 = vmax.f32 (!%p3746_p8), %v443_v18, 0.0 }
  0x1e   : > { %300 = vst.msk [vmem:[#allocation2 + $0x58] sm:$0xf] %vm276_vm0, %v4656_v2  ;;  %302 = vst.msk [vmem:[#allocation2 + $0x60] sm:$0xf] %vm276_vm0, %v4656_v2  ;;  %v410_v24 = vmul.f32 %v4095_v16, %v4744_v1  ;;  %v4031_v33 = vpack.c.bf16 %v474_v25, %v474_v25  ;;  %v476_v35 = vmax.f32 %v444_v27, 0.0  ;;  %v477_v36 = vmax.f32 %v445_v28, 0.0 }
  0x1f   : > { %303 = vst.msk [vmem:[#allocation2 + $0x64] sm:$0xf] %vm276_vm0, %v4656_v2  ;;  %305 = vst.msk [vmem:[#allocation2 + $0x6c] sm:$0xf] %vm276_vm0, %v4656_v2  ;;  %v446_v29 = vadd.f32 %v4804_v4, %v407_v21  ;;  %v447_v30 = vadd.f32 %v4804_v4, %v408_v22  ;;  %v448_v31 = vadd.f32 %v4804_v4, %v409_v23  ;;  %v929_v51 = vld [vmem:[#allocation2 + $0xc] sm:$0xf] }
  0x20   : > { %306 = vst.msk [vmem:[#allocation2 + $0x70] sm:$0xf] %vm276_vm0, %v4656_v2  ;;  %308 = vst.msk [vmem:[#allocation2 + $0x78] sm:$0xf] %vm276_vm0, %v4656_v2  ;;  %v449_v32 = vadd.f32 %v4804_v4, %v410_v24  ;;  %v4032_v34 = vpack.c.bf16 %v475_v26, %v475_v26  ;;  %v606_v41 = vshrl.u32 %v4031_v33, 16  ;;  %v609_v42 = vshll.u32 %v4031_v33, 16 }
  0x21   : > { %309 = vst.msk [vmem:[#allocation2 + $0x7c] sm:$0xf] %vm276_vm0, %v4656_v2  ;;  %311 = vst.msk [vmem:[#allocation2 + $0x84] sm:$0xf] %vm276_vm0, %v4656_v2  ;;  %v478_v37 = vmax.f32 %v446_v29, 0.0  ;;  %v479_v38 = vmax.f32 %v447_v30, 0.0  ;;  %v4033_v46 = vpack.c.bf16 %v476_v35, %v476_v35  ;;  %v4034_v47 = vpack.c.bf16 %v477_v36, %v477_v36 }
  0x22   : > { %312 = vst.msk [vmem:[#allocation2 + $0x88] sm:$0xf] %vm276_vm0, %v4656_v2  ;;  %314 = vst.msk [vmem:[#allocation2 + $0x90] sm:$0xf] %vm276_vm0, %v4656_v2  ;;  %v480_v39 = vmax.f32 %v448_v31, 0.0  ;;  %v481_v40 = vmax.f32 %v449_v32, 0.0 }
  0x23   : > { %315 = vst.msk [vmem:[#allocation2 + $0x94] sm:$0xf] %vm276_vm0, %v4656_v2  ;;  %317 = vst.msk [vmem:[#allocation2 + $0x9c] sm:$0xf] %vm276_vm0, %v4656_v2  ;;  %v614_v43 = vshrl.u32 %v4032_v34, 16  ;;  %v617_v44 = vshll.u32 %v4032_v34, 16  ;;  %v4035_v48 = vpack.c.bf16 %v478_v37, %v478_v37  ;;  %v4036_v49 = vpack.c.bf16 %v479_v38, %v479_v38 }
  0x24   : > { %318 = vst.msk [vmem:[#allocation2 + $0xa0] sm:$0xf] %vm276_vm0, %v4656_v2  ;;  %320 = vst.msk [vmem:[#allocation2 + $0xa8] sm:$0xf] %vm276_vm0, %v4656_v2  ;;  %v608_v50 = vrot.slane %v606_v41, 7  ;;  %v4037_v54 = vpack.c.bf16 %v480_v39, %v480_v39  ;;  %v4838_v55 = vpack.c.bf16 %v481_v40, %v481_v40  ;;  %v623_v58 = vshrl.u32 %v4033_v46, 16 }
  0x25   : > { %321 = vst.msk [vmem:[#allocation2 + $0xac] sm:$0xf] %vm276_vm0, %v4656_v2  ;;  %323 = vst.msk [vmem:[#allocation2 + $0xb4] sm:$0xf] %vm276_vm0, %v4656_v2  ;;  %v616_v53 = vrot.slane %v614_v43, 7  ;;  %v626_v59 = vshll.u32 %v4033_v46, 16 }
  0x26   : > { %324 = vst.msk [vmem:[#allocation2 + $0xb8] sm:$0xf] %vm276_vm0, %v4656_v2  ;;  %326 = vst.msk [vmem:[#allocation2 + $0xc0] sm:$0xf] %vm276_vm0, %v4656_v2  ;;  %v631_v60 = vshrl.u32 %v4034_v47, 16  ;;  %v634_v61 = vshll.u32 %v4034_v47, 16  ;;  %v611_v62 = vor.u32 %v609_v42, %v608_v50 }
  0x27   : > { %327 = vst.msk [vmem:[#allocation2 + $0xc4] sm:$0xf] %vm276_vm0, %v4656_v2  ;;  %329 = vst.msk [vmem:[#allocation2 + $0xcc] sm:$0xf] %vm276_vm0, %v4656_v2  ;;  %v612_v63 = vrot.slane %v608_v50, 4  ;;  %v619_v0 = vor.u32 %v617_v44, %v616_v53  ;;  %v625_v3 = vrot.slane %v623_v58, 7 }
  0x28   : > { %330 = vst.msk [vmem:[#allocation2 + $0xd0] sm:$0xf] %vm276_vm0, %v4656_v2  ;;  %vm4834_vm6 = vmor %vm602_vm3, %vm603_vm4  ;;  %v633_v5 = vrot.slane %v631_v60, 7  ;;  %v640_v6 = vshrl.u32 %v4035_v48, 16  ;;  %v643_v7 = vshll.u32 %v4035_v48, 16  ;;  %v930_v8 = vsel %vm4828_vm5, %v611_v62, %v929_v51  ;;  %v4147_v22 = vld [vmem:[%s4724_s30 + $0x20] sm:$0xff]  }
  0x29   : > { %283 = vst.msk [vmem:[#allocation2 + $0x14] sm:$0x1] %vm279_vm1, %v4656_v2  ;;  %280 = vst.msk [vmem:[#allocation2 + $0x8] sm:$0x1] %vm279_vm1, %v4656_v2  ;;  %v620_v9 = vsel %vm4834_vm6, %v612_v63, %v619_v0  ;;  %v938_v11 = vld [vmem:[#allocation2 + $0x18] sm:$0xf]  ;;  %v628_v14 = vor.u32 %v626_v59, %v625_v3  ;;  %v4098_v36 = vunpack.c.l.bf16 %v4147_v22  ;;  %v4099_v43 = vunpack.c.h.bf16 %v4147_v22 }
  0x2a   : > { %286 = vst.msk [vmem:[#allocation2 + $0x20] sm:$0x1] %vm279_vm1, %v4656_v2  ;;  %289 = vst.msk [vmem:[#allocation2 + $0x2c] sm:$0x1] %vm279_vm1, %v4656_v2  ;;  %v648_v13 = vshrl.u32 %v4036_v49, 16  ;;  %v629_v15 = vrot.slane %v625_v3, 4  ;;  %v636_v16 = vor.u32 %v634_v61, %v633_v5 }
  0x2b   : > { %292 = vst.msk [vmem:[#allocation2 + $0x38] sm:$0x1] %vm279_vm1, %v4656_v2  ;;  %295 = vst.msk [vmem:[#allocation2 + $0x44] sm:$0x1] %vm279_vm1, %v4656_v2  ;;  %v638_v17 = vrot.slane %v633_v5, 4  ;;  %v642_v18 = vrot.slane %v640_v6, 7  ;;  %v939_v23 = vsel %vm4828_vm5, %v628_v14, %v938_v11  ;;  %v411_v48 = vmul.f32 %v4098_v36, %v4744_v1 }
  0x2c   : > { %298 = vst.msk [vmem:[#allocation2 + $0x50] sm:$0x1] %vm279_vm1, %v4656_v2  ;;  %301 = vst.msk [vmem:[#allocation2 + $0x5c] sm:$0x1] %vm279_vm1, %v4656_v2  ;;  %v650_v19 = vrot.slane %v648_v13, 7  ;;  %v651_v20 = vshll.u32 %v4036_v49, 16  ;;  %v637_v24 = vsel %vm4834_vm6, %v629_v15, %v636_v16  ;;  %v412_v50 = vmul.f32 %v4099_v43, %v4744_v1 }
  0x2d   : > { %304 = vst.msk [vmem:[#allocation2 + $0x68] sm:$0x1] %vm279_vm1, %v4656_v2  ;;  %307 = vst.msk [vmem:[#allocation2 + $0x74] sm:$0x1] %vm279_vm1, %v4656_v2  ;;  %v657_v21 = vshrl.u32 %v4037_v54, 16  ;;  %v660_v28 = vshll.u32 %v4037_v54, 16  ;;  %v645_v29 = vor.u32 %v643_v7, %v642_v18  ;;  %v450_v59 = vadd.f32 %v4804_v4, %v411_v48 }
  0x2e   : > { %310 = vst.msk [vmem:[#allocation2 + $0x80] sm:$0x1] %vm279_vm1, %v4656_v2  ;;  %313 = vst.msk [vmem:[#allocation2 + $0x8c] sm:$0x1] %vm279_vm1, %v4656_v2  ;;  %v945_v26 = vld [vmem:[#allocation2 + $0x24] sm:$0xf]  ;;  %v653_v31 = vor.u32 %v651_v20, %v650_v19  ;;  %v451_v60 = vadd.f32 %v4804_v4, %v412_v50 }
  0x2f   : > { %316 = vst.msk [vmem:[#allocation2 + $0x98] sm:$0x1] %vm279_vm1, %v4656_v2  ;;  %319 = vst.msk [vmem:[#allocation2 + $0xa4] sm:$0x1] %vm279_vm1, %v4656_v2  ;;  %v646_v30 = vrot.slane %v642_v18, 4  ;;  %v655_v32 = vrot.slane %v650_v19, 4  ;;  %v946_v39 = vsel %vm4828_vm5, %v645_v29, %v945_v26 }
  0x30   : > { %322 = vst.msk [vmem:[#allocation2 + $0xb0] sm:$0x1] %vm279_vm1, %v4656_v2  ;;  %325 = vst.msk [vmem:[#allocation2 + $0xbc] sm:$0x1] %vm279_vm1, %v4656_v2  ;;  %v935_v57 = vld [vmem:[#allocation2 + $0x14] sm:$0x1] }
  0x31   : > { %328 = vst.msk [vmem:[#allocation2 + $0xc8] sm:$0x1] %vm279_vm1, %v4656_v2  ;;  %331 = vst.msk [vmem:[#allocation2 + $0xd4] sm:$0x1] %vm279_vm1, %v4656_v2  ;;  %v621_v2 = vrot.slane %v616_v53, 4  ;;  %v659_v33 = vrot.slane %v657_v21, 7  ;;  %v654_v40 = vsel %vm4834_vm6, %v646_v30, %v653_v31 }
  0x32   : > { %vm4842_vm7 = vmand %vm279_vm1, %vm602_vm3  ;;  %v942_v12 = vld [vmem:[#allocation2 + $0x20] sm:$0x1]  ;;  %931 = vst [vmem:[#allocation2 + $0xc] sm:$0xf] %v930_v8  ;;  %v949_v27 = vld [vmem:[#allocation2 + $0x2c] sm:$0x1] }
  0x33   : > { %v936_v10 = vsel %vm4842_vm7, %v621_v2, %v935_v57  ;;  %932 = vst.msk [vmem:[#allocation2 + $0x10] sm:$0xf] %vm276_vm0, %v620_v9  ;;  %v943_v25 = vsel %vm4842_vm7, %v638_v17, %v942_v12  ;;  %940 = vst [vmem:[#allocation2 + $0x18] sm:$0xf] %v939_v23  ;;  %v665_v34 = vshrl.u32 %v4838_v55, 16  ;;  %v668_v35 = vshll.u32 %v4838_v55, 16 }
  0x34   : > { %937 = vst [vmem:[#allocation2 + $0x14] sm:$0x1] %v936_v10  ;;  %941 = vst.msk [vmem:[#allocation2 + $0x1c] sm:$0xf] %vm276_vm0, %v637_v24  ;;  %v4148_v37 = vld [vmem:[%s4724_s30 + $0x28] sm:$0xff]   ;;  %v4149_v38 = vld [vmem:[%s4724_s30 + $0x30] sm:$0xff]   ;;  %v950_v41 = vsel %vm4842_vm7, %v655_v32, %v949_v27  ;;  %v662_v44 = vor.u32 %v660_v28, %v659_v33 }
  0x35   : > { %944 = vst [vmem:[#allocation2 + $0x20] sm:$0x1] %v943_v25  ;;  %v952_v42 = vld [vmem:[#allocation2 + $0x30] sm:$0xf]  ;;  %947 = vst [vmem:[#allocation2 + $0x24] sm:$0xf] %v946_v39  ;;  %v4102_v51 = vunpack.c.l.bf16 %v4148_v37  ;;  %v4103_v53 = vunpack.c.h.bf16 %v4148_v37  ;;  %v4106_v54 = vunpack.c.l.bf16 %v4149_v38  ;;  %v4107_v6 = vunpack.c.h.bf16 %v4149_v38 }
  0x36   : > { %948 = vst.msk [vmem:[#allocation2 + $0x28] sm:$0xf] %vm276_vm0, %v654_v40  ;;  %951 = vst [vmem:[#allocation2 + $0x2c] sm:$0x1] %v950_v41  ;;  %v663_v46 = vrot.slane %v659_v33, 4  ;;  %v667_v47 = vrot.slane %v665_v34, 7  ;;  %v953_v55 = vsel %vm4828_vm5, %v662_v44, %v952_v42 }
  0x37   : > { %v956_v49 = vld [vmem:[#allocation2 + $0x38] sm:$0x1]  ;;  %954 = vst [vmem:[#allocation2 + $0x30] sm:$0xf] %v953_v55  ;;  %v413_v61 = vmul.f32 %v4102_v51, %v4744_v1  ;;  %v414_v62 = vmul.f32 %v4103_v53, %v4744_v1  ;;  %v415_v63 = vmul.f32 %v4106_v54, %v4744_v1  ;;  %v482_v5 = vmax.f32 %v450_v59, 0.0 }
  0x38   : > { %v670_v57 = vor.u32 %v668_v35, %v667_v47  ;;  %v672_v58 = vrot.slane %v667_v47, 4  ;;  %v4882_v0 = vld [vmem:[%s4724_s30 + $0x38] sm:$0xff]   ;;  %v483_v7 = vmax.f32 %v451_v60, 0.0  ;;  %v416_v12 = vmul.f32 %v4107_v6, %v4744_v1  ;;  %v963_v38 = vld [vmem:[#allocation2 + $0x44] sm:$0x1]  ;;  %v4152_v6 = vld [vmem:[%s4724_s30 + $0x48] sm:$0xff]  }
  0x39   : > { %v452_v8 = vadd.f32 %v4804_v4, %v413_v61  ;;  %v453_v9 = vadd.f32 %v4804_v4, %v414_v62  ;;  %v454_v10 = vadd.f32 %v4804_v4, %v415_v63  ;;  %v4039_v11 = vpack.c.bf16 %v482_v5, %v482_v5  ;;  %v959_v31 = vld [vmem:[#allocation2 + $0x3c] sm:$0xf]  ;;  %v966_v47 = vld [vmem:[#allocation2 + $0x48] sm:$0xf]  ;;  %v4151_v63 = vld [vmem:[%s4724_s30 + $0x40] sm:$0xff]  }
  0x3a   : > { %v671_v2 = vsel %vm4834_vm6, %v663_v46, %v670_v57  ;;  %v957_v3 = vsel %vm4842_vm7, %v672_v58, %v956_v49  ;;  %v4110_v13 = vunpack.c.l.bf16 %v4882_v0  ;;  %v4111_v14 = vunpack.c.h.bf16 %v4882_v0  ;;  %v970_v57 = vld [vmem:[#allocation2 + $0x50] sm:$0x1]  ;;  %v973_v58 = vld [vmem:[#allocation2 + $0x54] sm:$0xf] }
  0x3b   : > { %955 = vst.msk [vmem:[#allocation2 + $0x34] sm:$0xf] %vm276_vm0, %v671_v2  ;;  %958 = vst [vmem:[#allocation2 + $0x38] sm:$0x1] %v957_v3  ;;  %v4040_v15 = vpack.c.bf16 %v483_v7, %v483_v7  ;;  %v484_v16 = vmax.f32 %v452_v8, 0.0  ;;  %v485_v17 = vmax.f32 %v453_v9, 0.0  ;;  %v455_v21 = vadd.f32 %v4804_v4, %v416_v12 }
  0x3c   : > { %v486_v18 = vmax.f32 %v454_v10, 0.0  ;;  %v674_v19 = vshrl.u32 %v4039_v11, 16  ;;  %v677_v20 = vshll.u32 %v4039_v11, 16  ;;  %v417_v22 = vmul.f32 %v4110_v13, %v4744_v1  ;;  %v4910_v7 = vld [vmem:[%s4724_s30 + $0x50] sm:$0xff]  }
  0x3d   : > { %v682_v23 = vshrl.u32 %v4040_v15, 16  ;;  %v685_v24 = vshll.u32 %v4040_v15, 16  ;;  %v4041_v25 = vpack.c.bf16 %v484_v16, %v484_v16  ;;  %v4042_v26 = vpack.c.bf16 %v485_v17, %v485_v17  ;;  %v977_v17 = vld [vmem:[#allocation2 + $0x5c] sm:$0x1] }
  0x3e   : > { %v676_v27 = vrot.slane %v674_v19, 7  ;;  %v4043_v28 = vpack.c.bf16 %v486_v18, %v486_v18  ;;  %v487_v29 = vmax.f32 %v455_v21, 0.0  ;;  %v456_v30 = vadd.f32 %v4804_v4, %v417_v22 }
  0x3f   : > { %v684_v32 = vrot.slane %v682_v23, 7  ;;  %v691_v33 = vshrl.u32 %v4041_v25, 16  ;;  %v694_v34 = vshll.u32 %v4041_v25, 16  ;;  %v699_v35 = vshrl.u32 %v4042_v26, 16 }
  0x40   : > { %v679_v36 = vor.u32 %v677_v20, %v676_v27  ;;  %v680_v37 = vrot.slane %v676_v27, 4  ;;  %v702_v39 = vshll.u32 %v4042_v26, 16  ;;  %v708_v40 = vshrl.u32 %v4043_v28, 16 }
  0x41   : > { %v687_v41 = vor.u32 %v685_v24, %v684_v32  ;;  %v689_v42 = vrot.slane %v684_v32, 4  ;;  %v693_v43 = vrot.slane %v691_v33, 7  ;;  %v701_v44 = vrot.slane %v699_v35, 7  ;;  %v980_v33 = vld [vmem:[#allocation2 + $0x60] sm:$0xf] }
  0x42   : > { %v960_v46 = vsel %vm4828_vm5, %v679_v36, %v959_v31  ;;  %v710_v48 = vrot.slane %v708_v40, 7  ;;  %v711_v49 = vshll.u32 %v4043_v28, 16  ;;  %v4044_v50 = vpack.c.bf16 %v487_v29, %v487_v29 }
  0x43   : > { %961 = vst [vmem:[#allocation2 + $0x3c] sm:$0xf] %v960_v46  ;;  %v688_v51 = vsel %vm4834_vm6, %v680_v37, %v687_v41  ;;  %v964_v53 = vsel %vm4842_vm7, %v689_v42, %v963_v38  ;;  %v696_v54 = vor.u32 %v694_v34, %v693_v43  ;;  %v697_v55 = vrot.slane %v693_v43, 4 }
  0x44   : > { %962 = vst.msk [vmem:[#allocation2 + $0x40] sm:$0xf] %vm276_vm0, %v688_v51  ;;  %965 = vst [vmem:[#allocation2 + $0x44] sm:$0x1] %v964_v53  ;;  %v704_v59 = vor.u32 %v702_v39, %v701_v44  ;;  %v706_v60 = vrot.slane %v701_v44, 4  ;;  %v713_v61 = vor.u32 %v711_v49, %v710_v48  ;;  %v714_v62 = vrot.slane %v710_v48, 4 }
  0x45   : > { %v967_v0 = vsel %vm4828_vm5, %v696_v54, %v966_v47  ;;  %v716_v2 = vshrl.u32 %v4044_v50, 16  ;;  %v719_v3 = vshll.u32 %v4044_v50, 16  ;;  %v488_v5 = vmax.f32 %v456_v30, 0.0  ;;  %v4937_v47 = vld [vmem:[%s4724_s30 + $0x58] sm:$0xff]  }
  0x46   : > { %968 = vst [vmem:[#allocation2 + $0x48] sm:$0xf] %v967_v0  ;;  %v705_v8 = vsel %vm4834_vm6, %v697_v55, %v704_v59  ;;  %v971_v9 = vsel %vm4842_vm7, %v706_v60, %v970_v57  ;;  %v974_v10 = vsel %vm4828_vm5, %v713_v61, %v973_v58  ;;  %v418_v11 = vmul.f32 %v4111_v14, %v4744_v1  ;;  %v984_v58 = vld [vmem:[#allocation2 + $0x68] sm:$0x1] }
  0x47   : > { %969 = vst.msk [vmem:[#allocation2 + $0x4c] sm:$0xf] %vm276_vm0, %v705_v8  ;;  %972 = vst [vmem:[#allocation2 + $0x50] sm:$0x1] %v971_v9  ;;  %v718_v12 = vrot.slane %v716_v2, 7  ;;  %v4045_v13 = vpack.c.bf16 %v488_v5, %v488_v5  ;;  %v4114_v15 = vunpack.c.l.bf16 %v4151_v63  ;;  %v4115_v16 = vunpack.c.h.bf16 %v4151_v63 }
  0x48   : > { %975 = vst [vmem:[#allocation2 + $0x54] sm:$0xf] %v974_v10  ;;  %v457_v18 = vadd.f32 %v4804_v4, %v418_v11  ;;  %v4118_v19 = vunpack.c.l.bf16 %v4152_v6  ;;  %v4119_v20 = vunpack.c.h.bf16 %v4152_v6  ;;  %v4122_v21 = vunpack.c.l.bf16 %v4910_v7 }
  0x49   : > { %v721_v22 = vor.u32 %v719_v3, %v718_v12  ;;  %v723_v23 = vrot.slane %v718_v12, 4  ;;  %v725_v24 = vshrl.u32 %v4045_v13, 16  ;;  %v728_v25 = vshll.u32 %v4045_v13, 16  ;;  %v987_v13 = vld [vmem:[#allocation2 + $0x6c] sm:$0xf] }
  0x4a   : > { %v489_v14 = vmax.f32 %v457_v18, 0.0  ;;  %v419_v26 = vmul.f32 %v4114_v15, %v4744_v1  ;;  %v420_v27 = vmul.f32 %v4115_v16, %v4744_v1  ;;  %v421_v28 = vmul.f32 %v4118_v19, %v4744_v1 }
  0x4b   : > { %v722_v29 = vsel %vm4834_vm6, %v714_v62, %v721_v22  ;;  %v978_v30 = vsel %vm4842_vm7, %v723_v23, %v977_v17  ;;  %v727_v31 = vrot.slane %v725_v24, 7  ;;  %v422_v32 = vmul.f32 %v4119_v20, %v4744_v1  ;;  %v994_v22 = vld [vmem:[#allocation2 + $0x78] sm:$0xf] }
  0x4c   : > { %976 = vst.msk [vmem:[#allocation2 + $0x58] sm:$0xf] %vm276_vm0, %v722_v29  ;;  %979 = vst [vmem:[#allocation2 + $0x5c] sm:$0x1] %v978_v30  ;;  %v4046_v34 = vpack.c.bf16 %v489_v14, %v489_v14  ;;  %v458_v35 = vadd.f32 %v4804_v4, %v419_v26  ;;  %v459_v36 = vadd.f32 %v4804_v4, %v420_v27  ;;  %v4123_v57 = vunpack.c.h.bf16 %v4910_v7 }
  0x4d   : > { %v460_v37 = vadd.f32 %v4804_v4, %v421_v28  ;;  %v730_v38 = vor.u32 %v728_v25, %v727_v31  ;;  %v731_v39 = vrot.slane %v727_v31, 4  ;;  %v461_v40 = vadd.f32 %v4804_v4, %v422_v32  ;;  %v998_v28 = vld [vmem:[#allocation2 + $0x80] sm:$0x1] }
  0x4e   : > { %v423_v41 = vmul.f32 %v4122_v21, %v4744_v1  ;;  %v733_v42 = vshrl.u32 %v4046_v34, 16  ;;  %v736_v43 = vshll.u32 %v4046_v34, 16  ;;  %v490_v44 = vmax.f32 %v458_v35, 0.0  ;;  %v991_v21 = vld [vmem:[#allocation2 + $0x74] sm:$0x1] }
  0x4f   : > { %v491_v46 = vmax.f32 %v459_v36, 0.0  ;;  %v981_v48 = vsel %vm4828_vm5, %v730_v38, %v980_v33  ;;  %v492_v49 = vmax.f32 %v460_v37, 0.0  ;;  %v493_v50 = vmax.f32 %v461_v40, 0.0  ;;  %v4155_v33 = vld [vmem:[%s4724_s30 + $0x60] sm:$0xff]   ;;  %v4156_v38 = vld [vmem:[%s4724_s30 + $0x68] sm:$0xff]  }
  0x50   : > { %v462_v51 = vadd.f32 %v4804_v4, %v423_v41  ;;  %982 = vst [vmem:[#allocation2 + $0x60] sm:$0xf] %v981_v48  ;;  %v735_v53 = vrot.slane %v733_v42, 7  ;;  %v4047_v54 = vpack.c.bf16 %v490_v44, %v490_v44  ;;  %v4126_v62 = vunpack.c.l.bf16 %v4937_v47 }
  0x51   : > { %v4048_v55 = vpack.c.bf16 %v491_v46, %v491_v46  ;;  %v4049_v59 = vpack.c.bf16 %v492_v49, %v492_v49  ;;  %v4050_v60 = vpack.c.bf16 %v493_v50, %v493_v50  ;;  %v424_v24 = vmul.f32 %v4123_v57, %v4744_v1 }
  0x52   : > { %v494_v61 = vmax.f32 %v462_v51, 0.0  ;;  %v738_v63 = vor.u32 %v736_v43, %v735_v53  ;;  %v740_v0 = vrot.slane %v735_v53, 4  ;;  %v742_v2 = vshrl.u32 %v4047_v54, 16  ;;  %v1001_v43 = vld [vmem:[#allocation2 + $0x84] sm:$0xf] }
  0x53   : > { %v745_v3 = vshll.u32 %v4047_v54, 16  ;;  %v750_v5 = vshrl.u32 %v4048_v55, 16  ;;  %v753_v6 = vshll.u32 %v4048_v55, 16  ;;  %v759_v8 = vshrl.u32 %v4049_v59, 16 }
  0x54   : > { %v762_v9 = vshll.u32 %v4049_v59, 16  ;;  %v739_v10 = vsel %vm4834_vm6, %v731_v39, %v738_v63  ;;  %v985_v7 = vsel %vm4842_vm7, %v740_v0, %v984_v58  ;;  %v744_v11 = vrot.slane %v742_v2, 7 }
  0x55   : > { %v767_v12 = vshrl.u32 %v4050_v60, 16  ;;  %983 = vst.msk [vmem:[#allocation2 + $0x64] sm:$0xf] %vm276_vm0, %v739_v10  ;;  %986 = vst [vmem:[#allocation2 + $0x68] sm:$0x1] %v985_v7  ;;  %v752_v15 = vrot.slane %v750_v5, 7  ;;  %v4051_v18 = vpack.c.bf16 %v494_v61, %v494_v61  ;;  %v463_v42 = vadd.f32 %v4804_v4, %v424_v24 }
  0x56   : > { %v761_v16 = vrot.slane %v759_v8, 7  ;;  %v770_v17 = vshll.u32 %v4050_v60, 16  ;;  %v747_v19 = vor.u32 %v745_v3, %v744_v11  ;;  %v748_v20 = vrot.slane %v744_v11, 4  ;;  %v4980_v5 = vld [vmem:[%s4724_s30 + $0x70] sm:$0xff]  }
  0x57   : > { %v769_v23 = vrot.slane %v767_v12, 7  ;;  %v755_v25 = vor.u32 %v753_v6, %v752_v15  ;;  %v757_v14 = vrot.slane %v752_v15, 4  ;;  %v776_v32 = vshrl.u32 %v4051_v18, 16 }
  0x58   : > { %v764_v26 = vor.u32 %v762_v9, %v761_v16  ;;  %v765_v27 = vrot.slane %v761_v16, 4  ;;  %v988_v29 = vsel %vm4828_vm5, %v747_v19, %v987_v13  ;;  %v779_v37 = vshll.u32 %v4051_v18, 16  ;;  %v1005_v19 = vld [vmem:[#allocation2 + $0x8c] sm:$0x1] }
  0x59   : > { %v772_v30 = vor.u32 %v770_v17, %v769_v23  ;;  %v774_v31 = vrot.slane %v769_v23, 4  ;;  %989 = vst [vmem:[#allocation2 + $0x6c] sm:$0xf] %v988_v29  ;;  %v756_v34 = vsel %vm4834_vm6, %v748_v20, %v755_v25  ;;  %v992_v35 = vsel %vm4842_vm7, %v757_v14, %v991_v21 }
  0x5a   : > { %v995_v36 = vsel %vm4828_vm5, %v764_v26, %v994_v22  ;;  %990 = vst.msk [vmem:[#allocation2 + $0x70] sm:$0xf] %vm276_vm0, %v756_v34  ;;  %993 = vst [vmem:[#allocation2 + $0x74] sm:$0x1] %v992_v35  ;;  %v778_v41 = vrot.slane %v776_v32, 7  ;;  %v425_v44 = vmul.f32 %v4126_v62, %v4744_v1  ;;  %v4127_v46 = vunpack.c.h.bf16 %v4937_v47 }
  0x5b   : > { %996 = vst [vmem:[#allocation2 + $0x78] sm:$0xf] %v995_v36  ;;  %v773_v39 = vsel %vm4834_vm6, %v765_v27, %v772_v30  ;;  %v999_v40 = vsel %vm4842_vm7, %v774_v31, %v998_v28  ;;  %v4130_v48 = vunpack.c.l.bf16 %v4155_v33  ;;  %v4131_v49 = vunpack.c.h.bf16 %v4155_v33  ;;  %v1008_v33 = vld [vmem:[#allocation2 + $0x90] sm:$0xf] }
  0x5c   : > { %997 = vst.msk [vmem:[#allocation2 + $0x7c] sm:$0xf] %vm276_vm0, %v773_v39  ;;  %1000 = vst [vmem:[#allocation2 + $0x80] sm:$0x1] %v999_v40  ;;  %v781_v50 = vor.u32 %v779_v37, %v778_v41  ;;  %v495_v51 = vmax.f32 %v463_v42, 0.0  ;;  %v782_v53 = vrot.slane %v778_v41, 4  ;;  %v4134_v54 = vunpack.c.l.bf16 %v4156_v38 }
  0x5d   : > { %v464_v55 = vadd.f32 %v4804_v4, %v425_v44  ;;  %v426_v57 = vmul.f32 %v4127_v46, %v4744_v1  ;;  %v427_v58 = vmul.f32 %v4130_v48, %v4744_v1  ;;  %v428_v59 = vmul.f32 %v4131_v49, %v4744_v1  ;;  %v1012_v39 = vld [vmem:[#allocation2 + $0x98] sm:$0x1]  ;;  %v1015_v41 = vld [vmem:[#allocation2 + $0x9c] sm:$0xf] }
  0x5e   : > { %v1002_v60 = vsel %vm4828_vm5, %v781_v50, %v1001_v43  ;;  %v4052_v61 = vpack.c.bf16 %v495_v51, %v495_v51  ;;  %v429_v47 = vmul.f32 %v4134_v54, %v4744_v1  ;;  %v4135_v62 = vunpack.c.h.bf16 %v4156_v38 }
  0x5f   : > { %1003 = vst [vmem:[#allocation2 + $0x84] sm:$0xf] %v1002_v60  ;;  %v496_v63 = vmax.f32 %v464_v55, 0.0  ;;  %v465_v0 = vadd.f32 %v4804_v4, %v426_v57  ;;  %v466_v2 = vadd.f32 %v4804_v4, %v427_v58  ;;  %v467_v3 = vadd.f32 %v4804_v4, %v428_v59  ;;  %v4158_v59 = vld [vmem:[%s4724_s30 + $0x78] sm:$0xff]  }
  0x60   : > { %v784_v6 = vshrl.u32 %v4052_v61, 16  ;;  %v787_v8 = vshll.u32 %v4052_v61, 16  ;;  %v468_v9 = vadd.f32 %v4804_v4, %v429_v47  ;;  %v430_v10 = vmul.f32 %v4135_v62, %v4744_v1  ;;  %v1022_v62 = vld [vmem:[#allocation2 + $0xa8] sm:$0xf] }
  0x61   : > { %v4053_v7 = vpack.c.bf16 %v496_v63, %v496_v63  ;;  %v497_v11 = vmax.f32 %v465_v0, 0.0  ;;  %v498_v12 = vmax.f32 %v466_v2, 0.0  ;;  %v499_v13 = vmax.f32 %v467_v3, 0.0 }
  0x62   : > { %v786_v15 = vrot.slane %v784_v6, 7  ;;  %v500_v16 = vmax.f32 %v468_v9, 0.0  ;;  %v469_v17 = vadd.f32 %v4804_v4, %v430_v10  ;;  %v4138_v18 = vunpack.c.l.bf16 %v4980_v5 }
  0x63   : > { %v793_v20 = vshrl.u32 %v4053_v7, 16  ;;  %v796_v21 = vshll.u32 %v4053_v7, 16  ;;  %v4054_v22 = vpack.c.bf16 %v497_v11, %v497_v11  ;;  %v4055_v23 = vpack.c.bf16 %v498_v12, %v498_v12 }
  0x64   : > { %v789_v24 = vor.u32 %v787_v8, %v786_v15  ;;  %v791_v25 = vrot.slane %v786_v15, 4  ;;  %v4056_v14 = vpack.c.bf16 %v499_v13, %v499_v13  ;;  %v4057_v26 = vpack.c.bf16 %v500_v16, %v500_v16 }
  0x65   : > { %v795_v27 = vrot.slane %v793_v20, 7  ;;  %v801_v28 = vshrl.u32 %v4054_v22, 16  ;;  %v804_v29 = vshll.u32 %v4054_v22, 16  ;;  %v810_v30 = vshrl.u32 %v4055_v23, 16  ;;  %v1026_v22 = vld [vmem:[#allocation2 + $0xb0] sm:$0x1] }
  0x66   : > { %v790_v31 = vsel %vm4834_vm6, %v782_v53, %v789_v24  ;;  %v1006_v32 = vsel %vm4842_vm7, %v791_v25, %v1005_v19  ;;  %v813_v34 = vshll.u32 %v4055_v23, 16  ;;  %v818_v35 = vshrl.u32 %v4056_v14, 16  ;;  %v1019_v53 = vld [vmem:[#allocation2 + $0xa4] sm:$0x1] }
  0x67   : > { %1004 = vst.msk [vmem:[#allocation2 + $0x88] sm:$0xf] %vm276_vm0, %v790_v31  ;;  %1007 = vst [vmem:[#allocation2 + $0x8c] sm:$0x1] %v1006_v32  ;;  %v798_v36 = vor.u32 %v796_v21, %v795_v27  ;;  %v799_v37 = vrot.slane %v795_v27, 4  ;;  %v803_v38 = vrot.slane %v801_v28, 7  ;;  %v431_v8 = vmul.f32 %v4138_v18, %v4744_v1 }
  0x68   : > { %v812_v40 = vrot.slane %v810_v30, 7  ;;  %v820_v42 = vrot.slane %v818_v35, 7  ;;  %v821_v43 = vshll.u32 %v4056_v14, 16  ;;  %v827_v44 = vshrl.u32 %v4057_v26, 16 }
  0x69   : > { %v830_v46 = vshll.u32 %v4057_v26, 16  ;;  %v1009_v48 = vsel %vm4828_vm5, %v798_v36, %v1008_v33  ;;  %v806_v49 = vor.u32 %v804_v29, %v803_v38  ;;  %v808_v50 = vrot.slane %v803_v38, 4  ;;  %v1029_v36 = vld [vmem:[#allocation2 + $0xb4] sm:$0xf] }
  0x6a   : > { %v815_v51 = vor.u32 %v813_v34, %v812_v40  ;;  %1010 = vst [vmem:[#allocation2 + $0x90] sm:$0xf] %v1009_v48  ;;  %v816_v54 = vrot.slane %v812_v40, 4  ;;  %v823_v55 = vor.u32 %v821_v43, %v820_v42  ;;  %v825_v57 = vrot.slane %v820_v42, 4 }
  0x6b   : > { %v829_v58 = vrot.slane %v827_v44, 7  ;;  %v807_v60 = vsel %vm4834_vm6, %v799_v37, %v806_v49  ;;  %v1013_v61 = vsel %vm4842_vm7, %v808_v50, %v1012_v39  ;;  %v501_v63 = vmax.f32 %v469_v17, 0.0  ;;  %v1033_v50 = vld [vmem:[#allocation2 + $0xbc] sm:$0x1] }
  0x6c   : > { %v1016_v47 = vsel %vm4828_vm5, %v815_v51, %v1015_v41  ;;  %1011 = vst.msk [vmem:[#allocation2 + $0x94] sm:$0xf] %vm276_vm0, %v807_v60  ;;  %1014 = vst [vmem:[#allocation2 + $0x98] sm:$0x1] %v1013_v61  ;;  %v824_v0 = vsel %vm4834_vm6, %v816_v54, %v823_v55  ;;  %v1020_v2 = vsel %vm4842_vm7, %v825_v57, %v1019_v53  ;;  %v4139_v9 = vunpack.c.h.bf16 %v4980_v5  ;;  %v1036_v51 = vld [vmem:[#allocation2 + $0xc0] sm:$0xf] }
  0x6d   : > { %1017 = vst [vmem:[#allocation2 + $0x9c] sm:$0xf] %v1016_v47  ;;  %v832_v3 = vor.u32 %v830_v46, %v829_v58  ;;  %1018 = vst.msk [vmem:[#allocation2 + $0xa0] sm:$0xf] %vm276_vm0, %v824_v0  ;;  %v4058_v6 = vpack.c.bf16 %v501_v63, %v501_v63  ;;  %v4142_v10 = vunpack.c.l.bf16 %v4158_v59  ;;  %v4143_v11 = vunpack.c.h.bf16 %v4158_v59  ;;  %v1040_v59 = vld [vmem:[#allocation2 + $0xc8] sm:$0x1] }
  0x6e   : > { %1021 = vst [vmem:[#allocation2 + $0xa4] sm:$0x1] %v1020_v2  ;;  %v470_v15 = vadd.f32 %v4804_v4, %v431_v8  ;;  %v432_v16 = vmul.f32 %v4139_v9, %v4744_v1  ;;  %v833_v20 = vrot.slane %v829_v58, 4 }
  0x6f   : > { %v1023_v7 = vsel %vm4828_vm5, %v832_v3, %v1022_v62  ;;  %v835_v12 = vshrl.u32 %v4058_v6, 16  ;;  %v838_v13 = vshll.u32 %v4058_v6, 16  ;;  %v433_v17 = vmul.f32 %v4142_v10, %v4744_v1 }
  0x70   : > { %1024 = vst [vmem:[#allocation2 + $0xa8] sm:$0xf] %v1023_v7  ;;  %v434_v19 = vmul.f32 %v4143_v11, %v4744_v1  ;;  %v502_v21 = vmax.f32 %v470_v15, 0.0  ;;  %v471_v5 = vadd.f32 %v4804_v4, %v432_v16 }
  0x71   : > { %v837_v18 = vrot.slane %v835_v12, 7  ;;  %v472_v23 = vadd.f32 %v4804_v4, %v433_v17 }
  0x72   : > { %v473_v24 = vadd.f32 %v4804_v4, %v434_v19  ;;  %v4059_v26 = vpack.c.bf16 %v502_v21, %v502_v21  ;;  %v503_v27 = vmax.f32 %v471_v5, 0.0 }
  0x73   : > { %v840_v25 = vor.u32 %v838_v13, %v837_v18  ;;  %v842_v14 = vrot.slane %v837_v18, 4  ;;  %v504_v28 = vmax.f32 %v472_v23, 0.0 }
  0x74   : > { %v505_v29 = vmax.f32 %v473_v24, 0.0  ;;  %v844_v31 = vshrl.u32 %v4059_v26, 16  ;;  %v847_v32 = vshll.u32 %v4059_v26, 16  ;;  %v4060_v33 = vpack.c.bf16 %v503_v27, %v503_v27 }
  0x75   : > { %v841_v30 = vsel %vm4834_vm6, %v833_v20, %v840_v25  ;;  %v1027_v1 = vsel %vm4842_vm7, %v842_v14, %v1026_v22  ;;  %v4061_v34 = vpack.c.bf16 %v504_v28, %v504_v28 }
  0x76   : > { %1025 = vst.msk [vmem:[#allocation2 + $0xac] sm:$0xf] %vm276_vm0, %v841_v30  ;;  %1028 = vst [vmem:[#allocation2 + $0xb0] sm:$0x1] %v1027_v1  ;;  %v4062_v4 = vpack.c.bf16 %v505_v29, %v505_v29  ;;  %v846_v35 = vrot.slane %v844_v31, 7  ;;  %v852_v37 = vshrl.u32 %v4060_v33, 16 }
  0x77   : > { %v855_v38 = vshll.u32 %v4060_v33, 16  ;;  %v861_v39 = vshrl.u32 %v4061_v34, 16  ;;  %v864_v40 = vshll.u32 %v4061_v34, 16 }
  0x78   : > { %v849_v41 = vor.u32 %v847_v32, %v846_v35  ;;  %v869_v42 = vshrl.u32 %v4062_v4, 16  ;;  %v872_v43 = vshll.u32 %v4062_v4, 16  ;;  %v850_v44 = vrot.slane %v846_v35, 4 }
  0x79   : > { %v854_v46 = vrot.slane %v852_v37, 7  ;;  %v863_v48 = vrot.slane %v861_v39, 7 }
  0x7a   : > { %v1030_v49 = vsel %vm4828_vm5, %v849_v41, %v1029_v36  ;;  %v871_v53 = vrot.slane %v869_v42, 7 }
  0x7b   : > { %1031 = vst [vmem:[#allocation2 + $0xb4] sm:$0xf] %v1030_v49  ;;  %v857_v54 = vor.u32 %v855_v38, %v854_v46  ;;  %v859_v55 = vrot.slane %v854_v46, 4  ;;  %v866_v57 = vor.u32 %v864_v40, %v863_v48  ;;  %v867_v58 = vrot.slane %v863_v48, 4 }
  0x7c   : > { %v874_v60 = vor.u32 %v872_v43, %v871_v53  ;;  %v876_v61 = vrot.slane %v871_v53, 4 }
  0x7d   : > { %v858_v47 = vsel %vm4834_vm6, %v850_v44, %v857_v54  ;;  %v1034_v62 = vsel %vm4842_vm7, %v859_v55, %v1033_v50  ;;  %v1037_v63 = vsel %vm4828_vm5, %v866_v57, %v1036_v51 }
  0x7e   : > { %1032 = vst.msk [vmem:[#allocation2 + $0xb8] sm:$0xf] %vm276_vm0, %v858_v47  ;;  %1035 = vst [vmem:[#allocation2 + $0xbc] sm:$0x1] %v1034_v62  ;;  %v875_v0 = vsel %vm4834_vm6, %v867_v58, %v874_v60  ;;  %v1041_v2 = vsel %vm4842_vm7, %v876_v61, %v1040_v59 }
  0x7f   : > { %1038 = vst [vmem:[#allocation2 + $0xc0] sm:$0xf] %v1037_v63  ;;  %1039 = vst.msk [vmem:[#allocation2 + $0xc4] sm:$0xf] %vm276_vm0, %v875_v0 }
  0x80   : > { %1042 = vst [vmem:[#allocation2 + $0xc8] sm:$0x1] %v1041_v2 }
  0x81 PF: > { %v3784_v45 = vld [vmem:[%s6071_s3 + $0x4] sm:$0xf]  ;;  %vm1318_vm8 = vcmask 1043456   ;;  %v3885_v3 = vld [vmem:[%s6071_s3 + $0x10] sm:$0xf]  ;;  %s4063_s7 = smul.u32 96, %s4638_s18 }
  0x82   : > { %4532 = vmatprep.subr.msk.bf16.mxu1 %vm1318_vm8, %v3784_v45  ;;  %4536 = vmatprep.subr.msk.bf16.mxu0 %vm1318_vm8, %v3885_v3  ;;  %v1320_v52 = vsel %vm1318_vm8, %v3784_v45, 0  ;;  %v5047_v56 = vsel %vm1318_vm8, %v3885_v3, 0  ;;  %vm1072_vm9 = vsmask.f32 3328  ;;  %vm1073_vm10 = vsmask.f32 7440 }
  0x83   : > { %6101 = vst [vmem:[#allocation4_spill] sm:$0xff] %v5047_v56  ;;  %4241 = vmatpush3.bf16.msra.mxu1 %v1320_v52  ;;  %4313 = vmatpush3.bf16.msra.mxu0 %v5047_v56  ;;  %v5053_v6 = vld [vmem:[%s6071_s3] sm:$0xf]  ;;  %v5058_v8 = vld [vmem:[%s6071_s3 + $0x14] sm:$0xf]  ;;  %s5060_s12 = scalar_lea.vmem [#allocation2], %s4063_s7  ;;  %vm5102_vm11 = vmor %vm1072_vm9, %vm1073_vm10 }
  0x84   : > { %4533 = vmatprep.subr.msk.bf16.mxu1 %vm1318_vm8, %v5053_v6  ;;  %4538 = vmatprep.subr.msk.bf16.mxu0 %vm1318_vm8, %v5058_v8  ;;  %vm1293_vm12 = vcmask 64512   ;;  %v1484_v3 = vsel %vm1318_vm8, %v5053_v6, 0  ;;  %vm1591_vm13 = vcmask 1042432   ;;  %vm1592_vm14 = vcmask 1046532  }
  0x85   : > { %vm5259_vm15 = vmor %vm1591_vm13, %vm1592_vm14  ;;  %vm3476_vm0 = vcmask 60416   ;;  %vm3530_vm1 = vcmask 57344  }
  0x87   : > { %v5063_v9 = vld [vmem:[%s5060_s12] sm:$0xf]  ;;  %v5066_v10 = vld [vmem:[%s5060_s12 + $0x4] sm:$0xf]  ;;  %v5069_v7 = vld [vmem:[%s5060_s12 + $0x8] sm:$0x1] }
  0x88   : > { %v1076_v11 = vshrl.u32 %v5063_v9, 16  ;;  %v1079_v12 = vshll.u32 %v5063_v9, 16  ;;  %v1085_v13 = vshll.u32 %v5066_v10, 16  ;;  %v1089_v15 = vshrl.u32 %v5066_v10, 16  ;;  %v5080_v16 = vld [vmem:[%s5060_s12 + $0xc] sm:$0xf] }
  0x89   : > { %v1095_v17 = vshll.u32 %v5069_v7, 16  ;;  %v5084_v19 = vld [vmem:[%s5060_s12 + $0x10] sm:$0xf]  ;;  %v5087_v20 = vld [vmem:[%s5060_s12 + $0x14] sm:$0x1]  ;;  %v2027_v24 = vshrl.u32 %v5080_v16, 16 }
  0x8a   : > { %v1078_v18 = vrot.slane %v1076_v11, 4  ;;  %v1081_v21 = vrot.slane %v1079_v12, 5  ;;  %v1087_v5 = vrot.slane %v1085_v13, 5  ;;  %v1091_v22 = vrot.slane %v1089_v15, 4  ;;  %v5095_v30 = vld [vmem:[%s5060_s12 + $0xc] sm:$0xf] }
  0x8b   : > { %v1097_v23 = vrot.slane %v1095_v17, 5  ;;  %v2030_v25 = vshll.u32 %v5080_v16, 16  ;;  %v2036_v14 = vshll.u32 %v5084_v19, 16  ;;  %v2040_v28 = vshrl.u32 %v5084_v19, 16  ;;  %v5098_v1 = vld [vmem:[%s5060_s12 + $0x10] sm:$0xf] }
  0x8c   : > { %v1082_v26 = vor.u32 %v1081_v21, %v1078_v18  ;;  %v1092_v27 = vor.u32 %v1091_v22, %v1087_v5  ;;  %v2046_v29 = vshll.u32 %v5087_v20, 16  ;;  %v2029_v32 = vrot.slane %v2027_v24, 4  ;;  %v5107_v39 = vld [vmem:[%s5060_s12 + $0x14] sm:$0x1]  ;;  %v5119_v59 = vld [vmem:[%s5060_s12 + $0x18] sm:$0xf] }
  0x8d   : > { %v2032_v33 = vrot.slane %v2030_v25, 5  ;;  %v2038_v34 = vrot.slane %v2036_v14, 5  ;;  %v2042_v36 = vrot.slane %v2040_v28, 4  ;;  %v1100_v40 = vshrl.u32 %v5095_v30, 16  ;;  %v5126_v62 = vld [vmem:[%s5060_s12 + $0x1c] sm:$0xf] }
  0x8e   : > { %v1083_v4 = vrot.slane %v1082_v26, 4  ;;  %v1093_v35 = vrot.slane %v1092_v27, 4  ;;  %v2048_v37 = vrot.slane %v2046_v29, 5  ;;  %v1103_v41 = vshll.u32 %v5095_v30, 16  ;;  %v5129_v63 = vld [vmem:[%s5060_s12 + $0x20] sm:$0x1] }
  0x8f   : > { %v2033_v38 = vor.u32 %v2032_v33, %v2029_v32  ;;  %v1109_v42 = vshll.u32 %v5098_v1, 16  ;;  %v2043_v46 = vor.u32 %v2042_v36, %v2038_v34  ;;  %v1113_v48 = vshrl.u32 %v5098_v1, 16  ;;  %v5138_v15 = vld [vmem:[%s5060_s12 + $0x18] sm:$0xf]  ;;  %v5144_v22 = vld [vmem:[%s5060_s12 + $0x1c] sm:$0xf] }
  0x90   : > { %v1088_v43 = vsel %vm5102_vm11, %v1083_v4, %v1087_v5  ;;  %v1098_v44 = vsel %vm5102_vm11, %v1093_v35, %v1097_v23  ;;  %v1102_v51 = vrot.slane %v1100_v40, 4  ;;  %v1105_v53 = vrot.slane %v1103_v41, 5  ;;  %v5151_v14 = vld [vmem:[%s5060_s12 + $0x20] sm:$0x1]  ;;  %v5156_v32 = vld [vmem:[%s5060_s12 + $0x24] sm:$0xf] }
  0x91   : > { %v3785_v49 = vcombine.low %v1088_v43, %v1098_v44  ;;  %v2034_v50 = vrot.slane %v2033_v38, 4  ;;  %v2044_v54 = vrot.slane %v2043_v46, 4  ;;  %v1111_v55 = vrot.slane %v1109_v42, 5  ;;  %v5168_v44 = vld [vmem:[%s5060_s12 + $0x28] sm:$0xf] }
  0x92   : > { %v1115_v57 = vrot.slane %v1113_v48, 4  ;;  %v1119_v58 = vshll.u32 %v5107_v39, 16  ;;  %v2397_v61 = vrot.slane %v5087_v20, 5  ;;  %v1106_v47 = vor.u32 %v1105_v53, %v1102_v51  ;;  %v5172_v51 = vld [vmem:[%s5060_s12 + $0x2c] sm:$0x1] }
  0x93   : > { %4242 = vmatprep.mubr.msk.bf16.mxu1 %vm1293_vm12, %v3785_v49  ;;  %v2039_v60 = vsel %vm5102_vm11, %v2034_v50, %v2038_v34  ;;  %v2049_v0 = vsel %vm5102_vm11, %v2044_v54, %v2048_v37  ;;  %v2051_v12 = vshrl.u32 %v5119_v59, 16  ;;  %v2054_v13 = vshll.u32 %v5119_v59, 16 }
  0x94   : > { %v1116_v2 = vor.u32 %v1115_v57, %v1111_v55  ;;  %v1121_v45 = vrot.slane %v1119_v58, 5  ;;  %v3886_v52 = vcombine.low %v2039_v60, %v2049_v0  ;;  %v1107_v11 = vrot.slane %v1106_v47, 4  ;;  %v5177_v58 = vld [vmem:[%s5060_s12 + $0x24] sm:$0xf] }
  0x95   : > { %v2060_v18 = vshll.u32 %v5126_v62, 16  ;;  %v2064_v21 = vshrl.u32 %v5126_v62, 16  ;;  %v2070_v5 = vshll.u32 %v5129_v63, 16  ;;  %v2053_v23 = vrot.slane %v2051_v12, 4  ;;  %v5186_v12 = vld [vmem:[%s5060_s12 + $0x28] sm:$0xf] }
  0x96   : > { %v1117_v17 = vrot.slane %v1116_v2, 4  ;;  %4314 = vmatprep.mubr.msk.bf16.mxu0 %vm1293_vm12, %v3886_v52  ;;  %v1112_v6 = vsel %vm5102_vm11, %v1107_v11, %v1111_v55  ;;  %v2056_v24 = vrot.slane %v2054_v13, 5  ;;  %v2401_v25 = vrot.slane %v5126_v62, 5 }
  0x97   : > { %v2062_v27 = vrot.slane %v2060_v18, 5  ;;  %v2066_v28 = vrot.slane %v2064_v21, 4  ;;  %v2072_v29 = vrot.slane %v2070_v5, 5  ;;  %v2404_v4 = vrot.slane %v5129_v63, 5  ;;  %v5192_v5 = vld [vmem:[%s6071_s3 + $0x18] sm:$0xf] }
  0x98   : > { %v1122_v26 = vsel %vm5102_vm11, %v1117_v17, %v1121_v45  ;;  %v2057_v34 = vor.u32 %v2056_v24, %v2053_v23  ;;  %v2499_v35 = vsel %vm1318_vm8, %v5058_v8, 0  ;;  %v1124_v37 = vshrl.u32 %v5138_v15, 16 }
  0x99   : > { %v3786_v33 = vcombine.low %v1112_v6, %v1122_v26  ;;  %v2067_v36 = vor.u32 %v2066_v28, %v2062_v27  ;;  %v1127_v38 = vshll.u32 %v5138_v15, 16  ;;  %v1133_v40 = vshll.u32 %v5144_v22, 16  ;;  %v5196_v26 = vld [vmem:[%s5060_s12 + $0x2c] sm:$0x1] }
  0x9a   : > { %v2058_v41 = vrot.slane %v2057_v34, 4  ;;  %v1137_v42 = vshrl.u32 %v5144_v22, 16  ;;  %v1143_v43 = vshll.u32 %v5151_v14, 16  ;;  %v2075_v8 = vshrl.u32 %v5156_v32, 16 }
  0x9b   : > { %4243 = vmatmul.mubr.msk.bf16.vlgmr.msra.gmra.mrb[0].mxu1 %vm1293_vm12, %v3786_v33  ;;  %v2068_v46 = vrot.slane %v2067_v36, 4  ;;  %v1126_v48 = vrot.slane %v1124_v37, 4  ;;  %v1129_v49 = vrot.slane %v1127_v38, 5  ;;  %v1135_v50 = vrot.slane %v1133_v40, 5  ;;  %v5203_v36 = vld [vmem:[%s5060_s12 + $0x30] sm:$0xf] }
  0x9c   : > { %4259 = vmatpush3.bf16.msra.mxu1 %v1484_v3  ;;  %v2063_v53 = vsel %vm5102_vm11, %v2058_v41, %v2062_v27  ;;  %v1139_v54 = vrot.slane %v1137_v42, 4  ;;  %v1145_v55 = vrot.slane %v1143_v43, 5  ;;  %v2077_v57 = vrot.slane %v2075_v8, 4  ;;  %v5208_v37 = vld [vmem:[%s6071_s3 + $0x8] sm:$0xf] }
  0x9d   : > { %v2073_v60 = vsel %vm5102_vm11, %v2068_v46, %v2072_v29  ;;  %v1130_v47 = vor.u32 %v1129_v49, %v1126_v48  ;;  %v2078_v0 = vshll.u32 %v5156_v32, 16  ;;  %v2084_v2 = vshll.u32 %v5168_v44, 16  ;;  %v5214_v42 = vld [vmem:[%s5060_s12 + $0x34] sm:$0xf]  ;;  %4534 = vmatprep.subr.msk.bf16.mxu1 %vm1318_vm8, %v5208_v37 }
  0x9e   : > { %v3887_v45 = vcombine.low %v2063_v53, %v2073_v60  ;;  %v1140_v3 = vor.u32 %v1139_v54, %v1135_v50  ;;  %v2088_v52 = vshrl.u32 %v5168_v44, 16  ;;  %v2094_v11 = vshll.u32 %v5172_v51, 16  ;;  %v5222_v54 = vld [vmem:[%s5060_s12 + $0x38] sm:$0x1] }
  0x9f   : > { %v1131_v13 = vrot.slane %v1130_v47, 4  ;;  %v2080_v17 = vrot.slane %v2078_v0, 5  ;;  %v2086_v18 = vrot.slane %v2084_v2, 5  ;;  %v1148_v21 = vshrl.u32 %v5177_v58, 16  ;;  %v5231_v2 = vld [vmem:[%s5060_s12 + $0x30] sm:$0xf] }
  0xa0   : > { %4315 = vmatmul.mubr.msk.bf16.vlgmr.msra.gmra.mrb[0].mxu0 %vm1293_vm12, %v3887_v45  ;;  %v1141_v6 = vrot.slane %v1140_v3, 4  ;;  %v2090_v23 = vrot.slane %v2088_v52, 4  ;;  %v2096_v24 = vrot.slane %v2094_v11, 5  ;;  %v1151_v27 = vshll.u32 %v5177_v58, 16 }
  0xa1   : > { %4331 = vmatpush3.bf16.msra.mxu0 %v2499_v35  ;;  %v1136_v28 = vsel %vm5102_vm11, %v1131_v13, %v1135_v50  ;;  %v2081_v29 = vor.u32 %v2080_v17, %v2077_v57  ;;  %v1150_v33 = vrot.slane %v1148_v21, 4  ;;  %v1157_v34 = vshll.u32 %v5186_v12, 16  ;;  %v5236_v13 = vld [vmem:[%s5060_s12 + $0x34] sm:$0xf] }
  0xa2   : > { %v1146_v38 = vsel %vm5102_vm11, %v1141_v6, %v1145_v55  ;;  %v2091_v40 = vor.u32 %v2090_v23, %v2086_v18  ;;  %v1153_v35 = vrot.slane %v1151_v27, 5  ;;  %v1161_v41 = vshrl.u32 %v5186_v12, 16  ;;  %4539 = vmatprep.subr.msk.bf16.mxu0 %vm1318_vm8, %v5192_v5 }
  0xa3   : > { %v3787_v43 = vcombine.low %v1136_v28, %v1146_v38  ;;  %v2082_v8 = vrot.slane %v2081_v29, 4  ;;  %v1159_v46 = vrot.slane %v1157_v34, 5  ;;  %v1167_v48 = vshll.u32 %v5196_v26, 16  ;;  %v5245_v34 = vld [vmem:[%s5060_s12 + $0x38] sm:$0x1] }
  0xa4   : > { %v2092_v49 = vrot.slane %v2091_v40, 4  ;;  %v1154_v50 = vor.u32 %v1153_v35, %v1150_v33  ;;  %v1163_v53 = vrot.slane %v1161_v41, 4  ;;  %v2099_v55 = vshrl.u32 %v5203_v36, 16 }
  0xa5   : > { %4246 = vmatprep.mubr.msk.bf16.mxu1 %vm1293_vm12, %v3787_v43  ;;  %v2087_v57 = vsel %vm5102_vm11, %v2082_v8, %v2086_v18  ;;  %v1169_v60 = vrot.slane %v1167_v48, 5  ;;  %v2102_v47 = vshll.u32 %v5203_v36, 16  ;;  %v2108_v0 = vshll.u32 %v5214_v42, 16 }
  0xa6   : > { %v2097_v45 = vsel %vm5102_vm11, %v2092_v49, %v2096_v24  ;;  %v1155_v3 = vrot.slane %v1154_v50, 4  ;;  %v1164_v52 = vor.u32 %v1163_v53, %v1159_v46  ;;  %v2101_v11 = vrot.slane %v2099_v55, 4 }
  0xa7   : > { %v3888_v17 = vcombine.low %v2087_v57, %v2097_v45  ;;  %v2104_v21 = vrot.slane %v2102_v47, 5  ;;  %v2110_v6 = vrot.slane %v2108_v0, 5  ;;  %v2112_v18 = vshrl.u32 %v5214_v42, 16  ;;  %v5254_v47 = vld [vmem:[%s5060_s12 + $0x3c] sm:$0xf] }
  0xa8   : > { %v1160_v23 = vsel %vm5102_vm11, %v1155_v3, %v1159_v46  ;;  %v1165_v27 = vrot.slane %v1164_v52, 4  ;;  %v2118_v28 = vshll.u32 %v5222_v54, 16  ;;  %v1172_v29 = vshrl.u32 %v5231_v2, 16 }
  0xa9   : > { %4318 = vmatprep.mubr.msk.bf16.mxu0 %vm1293_vm12, %v3888_v17  ;;  %v2105_v24 = vor.u32 %v2104_v21, %v2101_v11  ;;  %v2114_v33 = vrot.slane %v2112_v18, 4  ;;  %v1175_v38 = vshll.u32 %v5231_v2, 16  ;;  %v1181_v40 = vshll.u32 %v5236_v13, 16  ;;  %v5266_v18 = vld [vmem:[%s5060_s12 + $0x40] sm:$0xf] }
  0xaa   : > { %v1170_v35 = vsel %vm5102_vm11, %v1165_v27, %v1169_v60  ;;  %v2120_v41 = vrot.slane %v2118_v28, 5  ;;  %v1174_v43 = vrot.slane %v1172_v29, 4  ;;  %v1185_v8 = vshrl.u32 %v5236_v13, 16 }
  0xab   : > { %v3788_v46 = vcombine.low %v1160_v23, %v1170_v35  ;;  %v2106_v48 = vrot.slane %v2105_v24, 4  ;;  %v2115_v49 = vor.u32 %v2114_v33, %v2110_v6  ;;  %v1177_v50 = vrot.slane %v1175_v38, 5 }
  0xac   : > { %v1183_v53 = vrot.slane %v1181_v40, 5  ;;  %v1187_v55 = vrot.slane %v1185_v8, 4  ;;  %v1191_v57 = vshll.u32 %v5245_v34, 16  ;;  %v3902_v17 = vrot.slane %v5080_v16, 9 }
  0xad   : > { %4247 = vmatmul.mubr.msk.bf16.gmra.mrb[4].mxu1 %vm1293_vm12, %v3788_v46  ;;  %v2111_v60 = vsel %vm5102_vm11, %v2106_v48, %v2110_v6  ;;  %v2116_v0 = vrot.slane %v2115_v49, 4  ;;  %v1178_v45 = vor.u32 %v1177_v50, %v1174_v43  ;;  %v2394_v21 = vrot.slane %v5084_v19, 5  ;;  %v5271_v6 = vld [vmem:[%s5060_s12 + $0x44] sm:$0x1]  ;;  %v5290_v49 = vld [vmem:[%s5060_s12 + $0x48] sm:$0xf] }
  0xae   : > { %v1188_v3 = vor.u32 %v1187_v55, %v1183_v53  ;;  %v1193_v52 = vrot.slane %v1191_v57, 5  ;;  %v1196_v28 = vshrl.u32 %v5254_v47, 16  ;;  %v1199_v29 = vshll.u32 %v5254_v47, 16 }
  0xaf   : > { %v2121_v23 = vsel %vm5102_vm11, %v2116_v0, %v2120_v41  ;;  %v1179_v27 = vrot.slane %v1178_v45, 4  ;;  %v2395_v16 = vsel %vm5259_vm15, %v3902_v17, %v2394_v21  ;;  %v2396_v19 = vrot.slane %v2394_v21, 4  ;;  %v5303_v17 = vld [vmem:[%s5060_s12 + $0x50] sm:$0x1] }
  0xb0   : > { %v3889_v24 = vcombine.low %v2111_v60, %v2121_v23  ;;  %v1189_v33 = vrot.slane %v1188_v3, 4  ;;  %v1198_v40 = vrot.slane %v1196_v28, 4  ;;  %v1201_v35 = vrot.slane %v1199_v29, 5  ;;  %v5293_v60 = vld [vmem:[%s5060_s12 + $0x4c] sm:$0xf] }
  0xb1   : > { %v1184_v38 = vsel %vm5102_vm11, %v1179_v27, %v1183_v53  ;;  %v1205_v41 = vshll.u32 %v5266_v18, 16  ;;  %v2398_v8 = vsel %vm5259_vm15, %v2396_v19, %v2397_v61  ;;  %v1209_v46 = vshrl.u32 %v5266_v18, 16  ;;  %v5319_v19 = vld [vmem:[%s5060_s12 + $0x54] sm:$0xf] }
  0xb2   : > { %4319 = vmatmul.mubr.msk.bf16.gmra.mrb[4].mxu0 %vm1293_vm12, %v3889_v24  ;;  %v1194_v43 = vsel %vm5102_vm11, %v1189_v33, %v1193_v52  ;;  %v1215_v48 = vshll.u32 %v5271_v6, 16  ;;  %v3911_v53 = vcombine.low %v2395_v16, %v2398_v8  ;;  %v1202_v55 = vor.u32 %v1201_v35, %v1198_v40  ;;  %v5324_v40 = vld [vmem:[%s5060_s12 + $0x58] sm:$0xf]  ;;  %v5332_v8 = vld [vmem:[%s6071_s3 + $0x1c] sm:$0xf] }
  0xb3   : > { %v3789_v50 = vcombine.low %v1184_v38, %v1194_v43  ;;  %v1207_v57 = vrot.slane %v1205_v41, 5  ;;  %v1211_v0 = vrot.slane %v1209_v46, 4  ;;  %v3903_v20 = vrot.slane %v5119_v59, 9 }
  0xb4   : > { %v1217_v45 = vrot.slane %v1215_v48, 5  ;;  %v2403_v61 = vrot.slane %v2401_v25, 4  ;;  %4332 = vmatprep.mubr.msk.bf16.mxu0 %vm1293_vm12, %v3911_v53  ;;  %v1203_v3 = vrot.slane %v1202_v55, 4  ;;  %v2709_v52 = vsel %vm1318_vm8, %v5192_v5, 0  ;;  %v5338_v53 = vld [vmem:[%s5060_s12 + $0x5c] sm:$0x1] }
  0xb5   : > { %4250 = vmatprep.mubr.msk.bf16.mxu1 %vm1293_vm12, %v3789_v50  ;;  %v1220_v21 = vshrl.u32 %v5290_v49, 16  ;;  %v1223_v23 = vshll.u32 %v5290_v49, 16  ;;  %v1212_v59 = vor.u32 %v1211_v0, %v1207_v57  ;;  %v2402_v27 = vsel %vm5259_vm15, %v3903_v20, %v2401_v25 }
  0xb6   : > { %v2405_v28 = vsel %vm5259_vm15, %v2403_v61, %v2404_v4  ;;  %v1229_v5 = vshll.u32 %v5293_v60, 16  ;;  %v1208_v29 = vsel %vm5102_vm11, %v1203_v3, %v1207_v57  ;;  %v1233_v25 = vshrl.u32 %v5293_v60, 16 }
  0xb7   : > { %v3912_v24 = vcombine.low %v2402_v27, %v2405_v28  ;;  %v1222_v33 = vrot.slane %v1220_v21, 4  ;;  %v1225_v16 = vrot.slane %v1223_v23, 5  ;;  %v1213_v62 = vrot.slane %v1212_v59, 4  ;;  %v5355_v59 = vld [vmem:[%s5060_s12 + $0x3c] sm:$0xf] }
  0xb8   : > { %v1231_v38 = vrot.slane %v1229_v5, 5  ;;  %v1239_v63 = vshll.u32 %v5303_v17, 16  ;;  %v3904_v35 = vrot.slane %v5156_v32, 9  ;;  %v2408_v41 = vrot.slane %v5168_v44, 5 }
  0xb9   : > { %v1226_v4 = vor.u32 %v1225_v16, %v1222_v33  ;;  %v2411_v43 = vrot.slane %v5172_v51, 5  ;;  %v1218_v46 = vsel %vm5102_vm11, %v1213_v62, %v1217_v45  ;;  %v1235_v48 = vrot.slane %v1233_v25, 4  ;;  %v5363_v25 = vld [vmem:[%s5060_s12 + $0x44] sm:$0x1] }
  0xba   : > { %4333 = vmatmul.mubr.msk.bf16.vlgmr.msra.gmra.mrb[0].mxu0 %vm1293_vm12, %v3912_v24  ;;  %v1241_v50 = vrot.slane %v1239_v63, 5  ;;  %v1244_v32 = vshrl.u32 %v5319_v19, 16  ;;  %v3790_v44 = vcombine.low %v1208_v29, %v1218_v46  ;;  %v2409_v55 = vsel %vm5259_vm15, %v3904_v35, %v2408_v41  ;;  %v5358_v24 = vld [vmem:[%s5060_s12 + $0x40] sm:$0xf]  ;;  %6106 = vst [vmem:[#allocation5_spill] sm:$0xff] %v5363_v25 }
  0xbb   : > { %4349 = vmatpush3.bf16.msra.mxu0 %v2709_v52  ;;  %v1227_v51 = vrot.slane %v1226_v4, 4  ;;  %v2410_v57 = vrot.slane %v2408_v41, 4  ;;  %v1236_v0 = vor.u32 %v1235_v48, %v1231_v38  ;;  %v1247_v45 = vshll.u32 %v5319_v19, 16 }
  0xbc   : > { %v1246_v20 = vrot.slane %v1244_v32, 4  ;;  %v1253_v61 = vshll.u32 %v5324_v40, 16  ;;  %4540 = vmatprep.subr.msk.bf16.mxu0 %vm1318_vm8, %v5332_v8  ;;  %4251 = vmatmul.mubr.msk.bf16.gmra.mrb[8].mxu1 %vm1293_vm12, %v3790_v44  ;;  %v1257_v21 = vshrl.u32 %v5324_v40, 16  ;;  %v1263_v23 = vshll.u32 %v5338_v53, 16 }
  0xbd   : > { %v1232_v3 = vsel %vm5102_vm11, %v1227_v51, %v1231_v38  ;;  %v2412_v52 = vsel %vm5259_vm15, %v2410_v57, %v2411_v43  ;;  %v1237_v27 = vrot.slane %v1236_v0, 4  ;;  %v1249_v5 = vrot.slane %v1247_v45, 5 }
  0xbe   : > { %v3913_v28 = vcombine.low %v2409_v55, %v2412_v52  ;;  %v1255_v29 = vrot.slane %v1253_v61, 5  ;;  %v1259_v33 = vrot.slane %v1257_v21, 4  ;;  %v1265_v16 = vrot.slane %v1263_v23, 5  ;;  %v5392_v52 = vld [vmem:[%s5060_s12 + $0x50] sm:$0x1] }
  0xbf   : > { %v3905_v62 = vrot.slane %v5203_v36, 9  ;;  %v2415_v38 = vrot.slane %v5214_v42, 5  ;;  %v1242_v63 = vsel %vm5102_vm11, %v1237_v27, %v1241_v50  ;;  %v1250_v4 = vor.u32 %v1249_v5, %v1246_v20  ;;  %v5382_v20 = vld [vmem:[%s5060_s12 + $0x48] sm:$0xf]  ;;  %v5398_v27 = vld [vmem:[%s5060_s12 + $0x54] sm:$0xf] }
  0xc0   : > { %4336 = vmatprep.mubr.msk.bf16.mxu0 %vm1293_vm12, %v3913_v28  ;;  %v2418_v35 = vrot.slane %v5222_v54, 5  ;;  %v3906_v41 = vrot.slane %v5355_v59, 9  ;;  %v3791_v43 = vcombine.low %v1232_v3, %v1242_v63  ;;  %v1260_v46 = vor.u32 %v1259_v33, %v1255_v29  ;;  %v5389_v3 = vld [vmem:[%s5060_s12 + $0x4c] sm:$0xf]  ;;  %6107 = vst [vmem:[#allocation6_spill] sm:$0xff] %v5398_v27 }
  0xc1   : > { %v2416_v36 = vsel %vm5259_vm15, %v3905_v62, %v2415_v38  ;;  %v2417_v42 = vrot.slane %v2415_v38, 4  ;;  %v1251_v48 = vrot.slane %v1250_v4, 4  ;;  %v2422_v32 = vrot.slane %v5358_v24, 5  ;;  %v5401_v28 = vld [vmem:[%s5060_s12 + $0x58] sm:$0xf] }
  0xc2   : > { %v2425_v50 = vrot.slane %v5363_v25, 5  ;;  %4254 = vmatprep.mubr.msk.bf16.mxu1 %vm1293_vm12, %v3791_v43  ;;  %v1261_v54 = vrot.slane %v1260_v46, 4  ;;  %v3801_v61 = vcombine.low %v5063_v9, %v5066_v10  ;;  %6108 = vst [vmem:[#allocation7_spill] sm:$0xff] %v5401_v28  ;;  %v5404_v5 = vld [vmem:[%s5060_s12 + $0x5c] sm:$0x1]  ;;  %v3907_v33 = vrot.slane %v5382_v20, 9 }
  0xc3   : > { %v2419_v44 = vsel %vm5259_vm15, %v2417_v42, %v2418_v35  ;;  %v1256_v51 = vsel %vm5102_vm11, %v1251_v48, %v1255_v29  ;;  %v2423_v57 = vsel %vm5259_vm15, %v3906_v41, %v2422_v32  ;;  %v2424_v0 = vrot.slane %v2422_v32, 4  ;;  %6109 = vst [vmem:[#allocation8_spill] sm:$0xff] %v5404_v5  ;;  %v5411_v38 = vld [vmem:[%s5060_s12 + $0x60] sm:$0xf]  ;;  %v5414_v63 = vld [vmem:[%s5060_s12 + $0x64] sm:$0xf] }
  0xc4   : > { %v3914_v55 = vcombine.low %v2416_v36, %v2419_v44  ;;  %v1266_v45 = vsel %vm5102_vm11, %v1261_v54, %v1265_v16  ;;  %v2429_v16 = vrot.slane %v5389_v3, 5  ;;  %v2432_v62 = vrot.slane %v5392_v52, 5  ;;  %6110 = vst [vmem:[#allocation9_spill] sm:$0xff] %v5411_v38  ;;  %6111 = vst [vmem:[#allocation10_spill] sm:$0xff] %v5414_v63  ;;  %v5422_v43 = vld [vmem:[%s5060_s12 + $0x68] sm:$0x1] }
  0xc5   : > { %v3792_v21 = vcombine.low %v1256_v51, %v1266_v45  ;;  %v2426_v23 = vsel %vm5259_vm15, %v2424_v0, %v2425_v50  ;;  %v3908_v4 = vrot.slane %v5398_v27, 9  ;;  %v2436_v35 = vrot.slane %v5401_v28, 5  ;;  %6112 = vst [vmem:[#allocation11_spill] sm:$0xff] %v5422_v43  ;;  %v5664_v27 = vld [vmem:[%s5060_s12 + $0x6c] sm:$0xf] }
  0xc6   : > { %4337 = vmatmul.mubr.msk.bf16.gmra.mrb[4].mxu0 %vm1293_vm12, %v3914_v55  ;;  %v3915_v29 = vcombine.low %v2423_v57, %v2426_v23  ;;  %v2439_v41 = vrot.slane %v5404_v5, 5  ;;  %v2430_v46 = vsel %vm5259_vm15, %v3907_v33, %v2429_v16  ;;  %v2431_v36 = vrot.slane %v2429_v16, 4  ;;  %v5445_v23 = vld [vmem:[%s6071_s3 + $0xc] sm:$0xf]  ;;  %v5456_v16 = vld [vmem:[%s5060_s12 + $0x18] sm:$0xf] }
  0xc7   : > { %4255 = vmatmul.mubr.msk.bf16.gmra.mrb[12].mxu1 %vm1293_vm12, %v3792_v21  ;;  %v2437_v42 = vsel %vm5259_vm15, %v3908_v4, %v2436_v35  ;;  %v2438_v48 = vrot.slane %v2436_v35, 4  ;;  %v2443_v32 = vrot.slane %v5414_v63, 5  ;;  %v3802_v50 = vcombine.low %v5095_v30, %v5098_v1 }
  0xc8   : > { %4260 = vmatprep.mubr.msk.bf16.mxu1 %vm1293_vm12, %v3801_v61  ;;  %4340 = vmatprep.mubr.msk.bf16.mxu0 %vm1293_vm12, %v3915_v29  ;;  %v2433_v54 = vsel %vm5259_vm15, %v2431_v36, %v2432_v62  ;;  %v3909_v44 = vrot.slane %v5411_v38, 9  ;;  %v2446_v51 = vrot.slane %v5422_v43, 5  ;;  %v3803_v57 = vcombine.low %v5138_v15, %v5144_v22  ;;  %v5459_v62 = vld [vmem:[%s5060_s12 + $0x1c] sm:$0xf]  ;;  %v5472_v36 = vld [vmem:[%s5060_s12 + $0x28] sm:$0xf] }
  0xc9   : > { %v3916_v55 = vcombine.low %v2430_v46, %v2433_v54  ;;  %v2440_v0 = vsel %vm5259_vm15, %v2438_v48, %v2439_v41  ;;  %v2445_v45 = vrot.slane %v2443_v32, 4  ;;  %v1701_v61 = vsel %vm1318_vm8, %v5208_v37, 0  ;;  %v5469_v46 = vld [vmem:[%s5060_s12 + $0x24] sm:$0xf] }
  0xca   : > { %v3917_v21 = vcombine.low %v2437_v42, %v2440_v0  ;;  %v2444_v29 = vsel %vm5259_vm15, %v3909_v44, %v2443_v32  ;;  %v1603_v33 = vrot.slane %v5098_v1, 5  ;;  %v1606_v4 = vrot.slane %v5107_v39, 5  ;;  %6113 = vst [vmem:[#allocation12_spill] sm:$0xff] %v5469_v46  ;;  %v5492_v0 = vld [vmem:[%s5060_s12 + $0x30] sm:$0xf] }
  0xcb   : > { %v2447_v37 = vsel %vm5259_vm15, %v2445_v45, %v2446_v51  ;;  %v3804_v41 = vcombine.low %v5177_v58, %v5186_v12  ;;  %v3954_v1 = vcombine.low %v5456_v16, %v5459_v62  ;;  %v3818_v42 = vrot.slane %v5095_v30, 9  ;;  %6114 = vst [vmem:[#allocation13_spill] sm:$0xff] %v5492_v0 }
  0xcc   : > { %v3918_v35 = vcombine.low %v2444_v29, %v2447_v37  ;;  %v1599_v48 = vrot.slane %v5069_v7, 5  ;;  %v3805_v32 = vcombine.low %v5231_v2, %v5236_v13  ;;  %v2825_v39 = vshrl.u32 %v5456_v16, 16  ;;  %v5503_v29 = vld [vmem:[%s5060_s12 + $0x34] sm:$0xf]  ;;  %v5623_v7 = vld [vmem:[%s5060_s12 + $0x64] sm:$0xf] }
  0xcd   : > { %v2828_v54 = vshll.u32 %v5456_v16, 16  ;;  %v2838_v44 = vshrl.u32 %v5459_v62, 16  ;;  %v3806_v51 = vcombine.low %v5254_v47, %v5266_v18  ;;  %v3955_v30 = vcombine.low %v5469_v46, %v5472_v36 }
  0xce   : > { %4341 = vmatmul.mubr.msk.bf16.gmra.mrb[8].mxu0 %vm1293_vm12, %v3916_v55  ;;  %v5485_v55 = vsel %vm5259_vm15, %v3818_v42, %v1603_v33  ;;  %v6122_v63 = vshrl.u32 %v5472_v36, 16 }
  0xcf   : > { %4261 = vmatmul.mubr.msk.bf16.vlgmr.msra.gmra.mrb[0].mxu1 %vm1293_vm12, %v3802_v50  ;;  %4344 = vmatprep.mubr.msk.bf16.mxu0 %vm1293_vm12, %v3917_v21  ;;  %v1605_v50 = vrot.slane %v1603_v33, 4  ;;  %v1610_v33 = vrot.slane %v5144_v22, 5  ;;  %v5528_v21 = vld [vmem:[%s5060_s12 + $0x3c] sm:$0xf] }
  0xd0   : > { %4277 = vmatpush3.bf16.msra.mxu1 %v1701_v61  ;;  %4264 = vmatprep.mubr.msk.bf16.mxu1 %vm1293_vm12, %v3803_v57  ;;  %v3819_v61 = vrot.slane %v5138_v15, 9  ;;  %v1620_v15 = vrot.slane %v5196_v26, 5  ;;  %6115 = vst [vmem:[#allocation14_spill] sm:$0xff] %v5528_v21  ;;  %v3821_v26 = vrot.slane %v5231_v2, 9  ;;  %v3808_v2 = vcombine.low %v5319_v19, %v5324_v40 }
  0xd1   : > { %4535 = vmatprep.subr.msk.bf16.mxu1 %vm1318_vm8, %v5445_v23  ;;  %v5496_v45 = vsel %vm5259_vm15, %v1605_v50, %v1606_v4  ;;  %v3067_v4 = vsel %vm1318_vm8, %v5332_v8, 0  ;;  %v1612_v22 = vrot.slane %v1610_v33, 4  ;;  %v3956_v50 = vcombine.low %v5492_v0, %v5503_v29 }
  0xd2   : > { %v5518_v42 = vsel %vm5259_vm15, %v3819_v61, %v1610_v33  ;;  %v5540_v33 = vld [vmem:[%s5060_s12 + $0x40] sm:$0xf]  ;;  %v1624_v8 = vrot.slane %v5236_v13, 5  ;;  %v5573_v13 = vld [vmem:[%s5060_s12 + $0x48] sm:$0xf]  ;;  %v1631_v57 = vrot.slane %v5266_v18, 5 }
  0xd3   : > { %6116 = vst [vmem:[#allocation15_spill] sm:$0xff] %v5540_v33  ;;  %v2840_v18 = vrot.slane %v2838_v44, 4  ;;  %v1641_v44 = vrot.slane %v5303_v17, 5  ;;  %v2864_v28 = vrot.slane %v6122_v63, 4  ;;  %v6123_v63 = vshrl.u32 %v5492_v0, 16 }
  0xd4   : > { %v1626_v37 = vrot.slane %v1624_v8, 4 }
  0xd6   : > { %4345 = vmatmul.mubr.msk.bf16.gmra.mrb[12].mxu0 %vm1293_vm12, %v3918_v35  ;;  %v1613_v35 = vrot.slane %v5151_v14, 5  ;;  %v3820_v14 = vrot.slane %v5177_v58, 9 }
  0xd7   : > { %4265 = vmatmul.mubr.msk.bf16.gmra.mrb[4].mxu1 %vm1293_vm12, %v3804_v41  ;;  %4350 = vmatprep.mubr.msk.bf16.mxu0 %vm1293_vm12, %v3954_v1  ;;  %v3807_v41 = vcombine.low %v5290_v49, %v5293_v60  ;;  %v1596_v1 = vrot.slane %v5066_v10, 5  ;;  %v3817_v10 = vrot.slane %v5063_v9, 9  ;;  %v1627_v9 = vrot.slane %v5245_v34, 5 }
  0xd8   : > { %4268 = vmatprep.mubr.msk.bf16.mxu1 %vm1293_vm12, %v3805_v32  ;;  %v1617_v32 = vrot.slane %v5186_v12, 5  ;;  %v5533_v61 = vsel %vm5259_vm15, %v1612_v22, %v1613_v35  ;;  %v5560_v34 = vsel %vm5259_vm15, %v3821_v26, %v1624_v8  ;;  %v2827_v26 = vrot.slane %v2825_v39, 4  ;;  %v5579_v35 = vld [vmem:[%s5060_s12 + $0x4c] sm:$0xf] }
  0xd9   : > { %v1598_v22 = vrot.slane %v1596_v1, 4  ;;  %v3822_v8 = vrot.slane %v5254_v47, 9 }
  0xda   : > { %v5537_v58 = vsel %vm5259_vm15, %v3820_v14, %v1617_v32  ;;  %v1619_v12 = vrot.slane %v1617_v32, 4  ;;  %v2834_v32 = vshll.u32 %v5459_v62, 16 }
  0xdb   : > { %v1600_v47 = vsel %vm5259_vm15, %v1598_v22, %v1599_v48  ;;  %v5605_v48 = vld [vmem:[%s5060_s12 + $0x54] sm:$0xf]  ;;  %v2858_v22 = vshll.u32 %v5472_v36, 16 }
  0xdc   : > { %v5550_v14 = vsel %vm5259_vm15, %v1619_v12, %v1620_v15  ;;  %v5565_v15 = vld [vmem:[%s6071_s3 + $0x20] sm:$0xf]  ;;  %v1597_v12 = vsel %vm5259_vm15, %v3817_v10, %v1596_v1  ;;  %v1634_v1 = vrot.slane %v5271_v6, 5  ;;  %6117 = vst [vmem:[#allocation16_spill] sm:$0xff] %v5605_v48 }
  0xdd   : > { %v3826_v39 = vcombine.low %v1597_v12, %v1600_v47  ;;  %v5620_v6 = vld [vmem:[%s5060_s12 + $0x60] sm:$0xf]  ;;  %v3823_v12 = vrot.slane %v5290_v49, 9  ;;  %v5658_v38 = vrot.slane %v2858_v22, 5  ;;  %v1911_v22 = vsel %vm1318_vm8, %v5445_v23, 0 }
  0xde   : > { %4351 = vmatmul.mubr.msk.bf16.vlgmr.msra.gmra.mrb[0].mxu0 %vm1293_vm12, %v3955_v30  ;;  %v3957_v30 = vcombine.low %v5528_v21, %v5540_v33  ;;  %6118 = vst [vmem:[#allocation17_spill] sm:$0xff] %v5620_v6  ;;  %v2906_v23 = vshll.u32 %v5540_v33, 16 }
  0xdf   : > { %4269 = vmatmul.mubr.msk.bf16.gmra.mrb[8].mxu1 %vm1293_vm12, %v3806_v51  ;;  %4367 = vmatpush3.bf16.msra.mxu0 %v3067_v4  ;;  %v5583_v51 = vsel %vm5259_vm15, %v1626_v37, %v1627_v9  ;;  %v2830_v4 = vrot.slane %v2828_v54, 5  ;;  %v5596_v37 = vrot.slane %v2834_v32, 5  ;;  %v5609_v54 = vsel %vm5259_vm15, %v3822_v8, %v1631_v57  ;;  %v5617_v32 = vld [vmem:[%s5060_s12 + $0x58] sm:$0xf] }
  0xe0   : > { %4272 = vmatprep.mubr.msk.bf16.mxu1 %vm1293_vm12, %v3807_v41  ;;  %4354 = vmatprep.mubr.msk.bf16.mxu0 %vm1293_vm12, %v3956_v50  ;;  %v5594_v41 = vld [vmem:[%s5060_s12 + $0x20] sm:$0x1]  ;;  %v1633_v50 = vrot.slane %v1631_v57, 4  ;;  %v3958_v9 = vcombine.low %v5573_v13, %v5579_v35  ;;  %v3959_v49 = vcombine.low %v5605_v48, %v5617_v32 }
  0xe1   : > { %4541 = vmatprep.subr.msk.bf16.mxu0 %vm1318_vm8, %v5565_v15  ;;  %v2831_v8 = vor.u32 %v2830_v4, %v2827_v26  ;;  %v2844_v57 = vshll.u32 %v5594_v41, 16  ;;  %v2841_v43 = vor.u32 %v2840_v18, %v5596_v37  ;;  %v5638_v26 = vld [vmem:[%s5060_s12 + $0x2c] sm:$0x1]  ;;  %v6120_v4 = vshrl.u32 %v5469_v46, 16 }
  0xe2   : > { %v5628_v10 = vsel %vm5259_vm15, %v1633_v50, %v1634_v1  ;;  %6119 = vst [vmem:[#allocation18_spill] sm:$0xff] %v5638_v26  ;;  %v6121_v1 = vshll.u32 %v5469_v46, 16  ;;  %v1638_v18 = vrot.slane %v5293_v60, 5  ;;  %v2868_v17 = vshll.u32 %v5638_v26, 16 }
  0xe3   : > { %v2851_v5 = vrot.slane %v6120_v4, 4  ;;  %v2882_v4 = vshll.u32 %v5503_v29, 16  ;;  %v2846_v60 = vrot.slane %v2844_v57, 5  ;;  %v2842_v47 = vrot.slane %v2841_v43, 4  ;;  %v5673_v43 = vld [vmem:[%s5060_s12 + $0x70] sm:$0xf] }
  0xe4   : > { %v2854_v50 = vrot.slane %v6121_v1, 5  ;;  %v2832_v1 = vrot.slane %v2831_v8, 4  ;;  %v3824_v8 = vrot.slane %v5319_v19, 9  ;;  %v1645_v57 = vrot.slane %v5324_v40, 5 }
  0xe5   : > { %v1648_v26 = vrot.slane %v5338_v53, 5  ;;  %v2972_v46 = vshll.u32 %v5620_v6, 16 }
  0xe6   : > { %4355 = vmatmul.mubr.msk.bf16.gmra.mrb[4].mxu0 %vm1293_vm12, %v3957_v30  ;;  %v3960_v30 = vcombine.low %v5620_v6, %v5623_v7  ;;  %v2855_v25 = vor.u32 %v2854_v50, %v2851_v5  ;;  %v5681_v50 = vrot.slane %v2882_v4, 5  ;;  %v5687_v19 = vsel %vm5259_vm15, %v3824_v8, %v1645_v57 }
  0xe7   : > { %4273 = vmatmul.mubr.msk.bf16.gmra.mrb[12].mxu1 %vm1293_vm12, %v3808_v2  ;;  %4358 = vmatprep.mubr.msk.bf16.mxu0 %vm1293_vm12, %v3958_v9  ;;  %v5656_v2 = vsel %vm5259_vm15, %v3823_v12, %v1638_v18  ;;  %v1640_v9 = vrot.slane %v1638_v18, 4  ;;  %v2875_v12 = vrot.slane %v6123_v63, 4  ;;  %v6124_v18 = vshll.u32 %v5492_v0, 16 }
  0xe8   : > { %4278 = vmatprep.mubr.msk.bf16.mxu1 %vm1293_vm12, %v3826_v39  ;;  %v1647_v40 = vrot.slane %v1645_v57, 4  ;;  %v2945_v63 = vshrl.u32 %v5605_v48, 16  ;;  %v2948_v0 = vshll.u32 %v5605_v48, 16  ;;  %v2865_v4 = vor.u32 %v2864_v28, %v5658_v38 }
  0xe9   : > { %v5668_v39 = vsel %vm5259_vm15, %v1640_v9, %v1641_v44  ;;  %v2878_v5 = vrot.slane %v6124_v18, 5  ;;  %v6125_v44 = vshrl.u32 %v5503_v29, 16  ;;  %v5696_v18 = vld [vmem:[%s5060_s12 + $0x38] sm:$0x1]  ;;  %v3961_v8 = vcombine.low %v5664_v27, %v5673_v43 }
  0xea   : > { %6126 = vst [vmem:[#allocation19_spill] sm:$0xff] %v5696_v18  ;;  %v5704_v53 = vsel %vm5259_vm15, %v1647_v40, %v1648_v26  ;;  %v6127_v57 = vcombine.low %v5485_v55, %v5496_v45  ;;  %v2837_v28 = vsel %vm5102_vm11, %v2832_v1, %v5596_v37  ;;  %v2870_v48 = vrot.slane %v2868_v17, 5 }
  0xeb   : > { %v2888_v9 = vrot.slane %v6125_v44, 4  ;;  %v2958_v44 = vshrl.u32 %v5617_v32, 16  ;;  %v6128_v55 = vcombine.low %v5518_v42, %v5533_v61  ;;  %v2856_v45 = vrot.slane %v2855_v25, 4  ;;  %v4607_v42 = vld [vmem:[%s6071_s3 + $0x10] sm:$0xf] }
  0xec   : > { %v2892_v37 = vshll.u32 %v5696_v18, 16  ;;  %v2866_v1 = vrot.slane %v2865_v4, 4  ;;  %v6130_v17 = vshll.u32 %v5528_v21, 16  ;;  %v2930_v25 = vshll.u32 %v5579_v35, 16  ;;  %v5735_v61 = vld [vmem:[%s5060_s12 + $0x44] sm:$0x1] }
  0xed   : > { %v2889_v40 = vor.u32 %v2888_v9, %v5681_v50  ;;  %v6132_v9 = vshrl.u32 %v5573_v13, 16  ;;  %v6134_v18 = vshrl.u32 %v5579_v35, 16 }
  0xee   : > { %4359 = vmatmul.mubr.msk.bf16.gmra.mrb[8].mxu0 %vm1293_vm12, %v3959_v49  ;;  %v2847_v49 = vsel %vm5102_vm11, %v2842_v47, %v2846_v60  ;;  %v6129_v47 = vshrl.u32 %v5528_v21, 16  ;;  %v5747_v21 = vld [vmem:[%s5060_s12 + $0x50] sm:$0x1]  ;;  %v2894_v56 = vrot.slane %v2892_v37, 5  ;;  %v6136_v37 = vcombine.low %v5560_v34, %v5583_v51 }
  0xef   : > { %4279 = vmatmul.mubr.msk.bf16.vlgmr.msra.gmra.mrb[0].mxu1 %vm1293_vm12, %v6127_v57  ;;  %4362 = vmatprep.mubr.msk.bf16.mxu0 %vm1293_vm12, %v3960_v30  ;;  %v2879_v30 = vor.u32 %v2878_v5, %v2875_v12  ;;  %v2902_v57 = vrot.slane %v6130_v17, 5  ;;  %v6131_v12 = vshrl.u32 %v5540_v33, 16  ;;  %v2923_v4 = vrot.slane %v6132_v9, 4 }
  0xf0   : > { %4295 = vmatpush3.bf16.msra.mxu1 %v1911_v22  ;;  %4282 = vmatprep.mubr.msk.bf16.mxu1 %vm1293_vm12, %v6128_v55  ;;  %v2899_v60 = vrot.slane %v6129_v47, 4  ;;  %v5737_v22 = vrot.slane %v2906_v23, 5  ;;  %v6133_v55 = vshll.u32 %v5573_v13, 16  ;;  %v2969_v17 = vshrl.u32 %v5620_v6, 16 }
  0xf1   : > { %4537 = vmatprep.subr.msk.bf16.mxu1 %vm1318_vm8, %v4607_v42  ;;  %v2912_v5 = vrot.slane %v6131_v12, 4  ;;  %v3971_v26 = vcombine.low %v2837_v28, %v2847_v49  ;;  %v5749_v42 = vrot.slane %v2930_v25, 5  ;;  %v2936_v23 = vrot.slane %v6134_v18, 4 }
  0xf2   : > { %v2926_v47 = vrot.slane %v6133_v55, 5  ;;  %v2880_v33 = vrot.slane %v2879_v30, 4  ;;  %v2890_v12 = vrot.slane %v2889_v40, 4  ;;  %v2861_v9 = vsel %vm5102_vm11, %v2856_v45, %v5658_v38 }
  0xf3   : > { %v2871_v55 = vsel %vm5102_vm11, %v2866_v1, %v2870_v48  ;;  %v2903_v28 = vor.u32 %v2902_v57, %v2899_v60  ;;  %v2916_v49 = vshll.u32 %v5735_v61, 16  ;;  %v2982_v25 = vshrl.u32 %v5623_v7, 16 }
  0xf4   : > { %v2913_v18 = vor.u32 %v2912_v5, %v5737_v22  ;;  %v2927_v6 = vor.u32 %v2926_v47, %v2923_v4  ;;  %v2940_v30 = vshll.u32 %v5747_v21, 16  ;;  %v6135_v40 = vcombine.low %v5537_v58, %v5550_v14 }
  0xf5   : > { %v2993_v38 = vshrl.u32 %v5664_v27, 16  ;;  %v2996_v48 = vshll.u32 %v5664_v27, 16  ;;  %v2937_v45 = vor.u32 %v2936_v23, %v5749_v42  ;;  %v3972_v1 = vcombine.low %v2861_v9, %v2871_v55  ;;  %v5784_v9 = vld [vmem:[%s5060_s12 + $0x5c] sm:$0x1] }
  0xf6   : > { %4363 = vmatmul.mubr.msk.bf16.gmra.mrb[12].mxu0 %vm1293_vm12, %v3961_v8  ;;  %v2954_v8 = vshll.u32 %v5617_v32, 16  ;;  %v2885_v58 = vsel %vm5102_vm11, %v2880_v33, %v5681_v50  ;;  %v2895_v14 = vsel %vm5102_vm11, %v2890_v12, %v2894_v56  ;;  %v2904_v60 = vrot.slane %v2903_v28, 4 }
  0xf7   : > { %4283 = vmatmul.mubr.msk.bf16.gmra.mrb[4].mxu1 %vm1293_vm12, %v6135_v40  ;;  %4368 = vmatprep.mubr.msk.bf16.mxu0 %vm1293_vm12, %v3971_v26  ;;  %v2978_v26 = vshll.u32 %v5623_v7, 16  ;;  %v2918_v57 = vrot.slane %v2916_v49, 5  ;;  %v2947_v5 = vrot.slane %v2945_v63, 4  ;;  %v2950_v4 = vrot.slane %v2948_v0, 5 }
  0xf8   : > { %4286 = vmatprep.mubr.msk.bf16.mxu1 %vm1293_vm12, %v6136_v37  ;;  %v2914_v47 = vrot.slane %v2913_v18, 4  ;;  %v2928_v23 = vrot.slane %v2927_v6, 4  ;;  %v2942_v34 = vrot.slane %v2940_v30, 5  ;;  %v2960_v51 = vrot.slane %v2958_v44, 4  ;;  %v5791_v37 = vld [vmem:[%s5060_s12 + $0x68] sm:$0x1] }
  0xf9   : > { %v2938_v40 = vrot.slane %v2937_v45, 4  ;;  %v5786_v55 = vrot.slane %v2954_v8, 5  ;;  %v2971_v33 = vrot.slane %v2969_v17, 4  ;;  %v2974_v50 = vrot.slane %v2972_v46, 5 }
  0xfa   : > { %v3297_v56 = vsel %vm1318_vm8, %v5565_v15, 0  ;;  %v3973_v12 = vcombine.low %v2885_v58, %v2895_v14  ;;  %v5793_v28 = vrot.slane %v2978_v26, 5  ;;  %v2984_v0 = vrot.slane %v2982_v25, 4 }
  0xfb   : > { %v3006_v6 = vshrl.u32 %v5673_v43, 16  ;;  %v2909_v63 = vsel %vm5102_vm11, %v2904_v60, %v5737_v22  ;;  %v2951_v44 = vor.u32 %v2950_v4, %v2947_v5  ;;  %v2919_v46 = vsel %vm5102_vm11, %v2914_v47, %v2918_v57  ;;  %v4608_v60 = vld [vmem:[%s5060_s12 + $0xc] sm:$0xf]  ;;  %v4609_v57 = vld [vmem:[%s5060_s12 + $0x10] sm:$0xf] }
  0xfc   : > { %v2933_v15 = vsel %vm5102_vm11, %v2928_v23, %v5749_v42  ;;  %v2964_v17 = vshll.u32 %v5784_v9, 16  ;;  %v3002_v49 = vshll.u32 %v5673_v43, 16  ;;  %v6137_v25 = vcombine.low %v5609_v54, %v5628_v10 }
  0xfd   : > { %v2943_v22 = vsel %vm5102_vm11, %v2938_v40, %v2942_v34  ;;  %v2961_v18 = vor.u32 %v2960_v51, %v5786_v55  ;;  %v2975_v30 = vor.u32 %v2974_v50, %v2971_v33  ;;  %v2988_v42 = vshll.u32 %v5791_v37, 16 }
  0xfe   : > { %4369 = vmatmul.mubr.msk.bf16.vlgmr.msra.gmra.mrb[0].mxu0 %vm1293_vm12, %v3972_v1  ;;  %v6138_v45 = vcombine.low %v5656_v2, %v5668_v39  ;;  %v2985_v54 = vor.u32 %v2984_v0, %v5793_v28  ;;  %v2995_v10 = vrot.slane %v2993_v38, 4  ;;  %v2998_v8 = vrot.slane %v2996_v48, 5  ;;  %v5830_v38 = vld [vmem:[%s5060_s12 + $0x74] sm:$0x1] }
  0xff   : > { %4287 = vmatmul.mubr.msk.bf16.gmra.mrb[8].mxu1 %vm1293_vm12, %v6137_v25  ;;  %4385 = vmatpush3.bf16.msra.mxu0 %v3297_v56  ;;  %v3874_v1 = vcombine.low %v5382_v20, %v5389_v3  ;;  %v2147_v58 = vshrl.u32 %v5382_v20, 16  ;;  %v2150_v14 = vshll.u32 %v5382_v20, 16  ;;  %v3974_v26 = vcombine.low %v2909_v63, %v2919_v46 }
 0x100   : > { %4290 = vmatprep.mubr.msk.bf16.mxu1 %vm1293_vm12, %v6138_v45  ;;  %4372 = vmatprep.mubr.msk.bf16.mxu0 %vm1293_vm12, %v3973_v12  ;;  %v3869_v2 = vcombine.low %v4608_v60, %v4609_v57  ;;  %v5827_v39 = vrot.slane %v3002_v49, 5  ;;  %v3008_v5 = vrot.slane %v3006_v6, 4  ;;  %v3975_v4 = vcombine.low %v2933_v15, %v2943_v22 }
 0x101   : > { %v2952_v47 = vrot.slane %v2951_v44, 4  ;;  %v2962_v23 = vrot.slane %v2961_v18, 4  ;;  %v2966_v34 = vrot.slane %v2964_v17, 5  ;;  %v2976_v48 = vrot.slane %v2975_v30, 4 }
 0x102   : > { %v2986_v51 = vrot.slane %v2985_v54, 4  ;;  %v2990_v40 = vrot.slane %v2988_v42, 5  ;;  %v2999_v33 = vor.u32 %v2998_v8, %v2995_v10  ;;  %v2156_v50 = vshll.u32 %v5389_v3, 16  ;;  %v4610_v54 = vld [vmem:[%s5060_s12 + $0x18] sm:$0xf] }
 0x103   : > { %v2160_v56 = vshrl.u32 %v5389_v3, 16  ;;  %v3192_v12 = vrot.slane %v5459_v62, 5  ;;  %v2149_v0 = vrot.slane %v2147_v58, 4  ;;  %v3009_v6 = vor.u32 %v3008_v5, %v5827_v39  ;;  %v4611_v10 = vld [vmem:[%s5060_s12 + $0x1c] sm:$0xf] }
 0x104   : > { %v3012_v63 = vshll.u32 %v5830_v38, 16  ;;  %v2152_v44 = vrot.slane %v2150_v14, 5  ;;  %v2166_v46 = vshll.u32 %v5392_v52, 16  ;;  %v6139_v15 = vcombine.low %v5687_v19, %v5704_v53  ;;  %v4612_v14 = vld [vmem:[%s5060_s12 + $0x24] sm:$0xf] }
 0x105   : > { %v2957_v62 = vsel %vm5102_vm11, %v2952_v47, %v5786_v55  ;;  %v2967_v17 = vsel %vm5102_vm11, %v2962_v23, %v2966_v34  ;;  %v2981_v52 = vsel %vm5102_vm11, %v2976_v48, %v5793_v28  ;;  %v2991_v19 = vsel %vm5102_vm11, %v2986_v51, %v2990_v40 }
 0x106   : > { %4373 = vmatmul.mubr.msk.bf16.gmra.mrb[4].mxu0 %vm1293_vm12, %v3974_v26  ;;  %v3000_v53 = vrot.slane %v2999_v33, 4  ;;  %v3987_v49 = vrot.slane %v5456_v16, 9  ;;  %v2158_v25 = vrot.slane %v2156_v50, 5  ;;  %v2162_v22 = vrot.slane %v2160_v56, 4  ;;  %v4613_v26 = vld [vmem:[%s5060_s12 + $0x28] sm:$0xf] }
 0x107   : > { %4291 = vmatmul.mubr.msk.bf16.gmra.mrb[12].mxu1 %vm1293_vm12, %v6139_v15  ;;  %4376 = vmatprep.mubr.msk.bf16.mxu0 %vm1293_vm12, %v3975_v4  ;;  %v3194_v55 = vrot.slane %v3192_v12, 4  ;;  %v3195_v18 = vrot.slane %v5594_v41, 5  ;;  %v3976_v30 = vcombine.low %v2957_v62, %v2967_v17  ;;  %v3010_v42 = vrot.slane %v3009_v6, 4  ;;  %v6140_v33 = vld [vmem:[#allocation4_spill] sm:$0xff]  ;;  %v4614_v50 = vld [vmem:[%s5060_s12 + $0x30] sm:$0xf] }
 0x108   : > { %4296 = vmatprep.mubr.msk.bf16.mxu1 %vm1293_vm12, %v3869_v2  ;;  %v3014_v45 = vrot.slane %v3012_v63, 5  ;;  %v3870_v8 = vcombine.low %v4610_v54, %v4611_v10  ;;  %v3977_v28 = vcombine.low %v2981_v52, %v2991_v19  ;;  %v2168_v58 = vrot.slane %v2166_v46, 5  ;;  %v6142_v6 = vld [vmem:[#allocation18_spill] sm:$0xff] }
 0x109   : > { %v3871_v60 = vcombine.low %v4612_v14, %v4613_v26  ;;  %v3005_v16 = vsel %vm5102_vm11, %v3000_v53, %v5827_v39  ;;  %v3193_v57 = vsel %vm5259_vm15, %v3987_v49, %v3192_v12  ;;  %v3196_v41 = vsel %vm5259_vm15, %v3194_v55, %v3195_v18  ;;  %v6141_v12 = vld [vmem:[#allocation12_spill] sm:$0xff]  ;;  %v6144_v49 = vld [vmem:[#allocation19_spill] sm:$0xff]  ;;  %v6146_v14 = vld [vmem:[#allocation5_spill] sm:$0xff] }
 0x10a   : > { %v3199_v2 = vrot.slane %v5472_v36, 5  ;;  %v2153_v5 = vor.u32 %v2152_v44, %v2149_v0  ;;  %v2163_v4 = vor.u32 %v2162_v22, %v2158_v25  ;;  %v3015_v47 = vsel %vm5102_vm11, %v3010_v42, %v3014_v45  ;;  %v6143_v44 = vld [vmem:[#allocation13_spill] sm:$0xff] }
 0x10b   : > { %v3206_v23 = vrot.slane %v5503_v29, 5  ;;  %v2123_v39 = vshrl.u32 %v5355_v59, 16  ;;  %v2126_v34 = vshll.u32 %v5355_v59, 16  ;;  %v2132_v36 = vshll.u32 %v5358_v24, 16  ;;  %v4615_v29 = vld [vmem:[%s5060_s12 + $0x34] sm:$0xf] }
 0x10c   : > { %v2136_v48 = vshrl.u32 %v5358_v24, 16  ;;  %v2154_v51 = vrot.slane %v2153_v5, 4  ;;  %v2164_v40 = vrot.slane %v2163_v4, 4  ;;  %v3872_v56 = vcombine.low %v4614_v50, %v4615_v29  ;;  %v6148_v4 = vld [vmem:[#allocation6_spill] sm:$0xff] }
 0x10d   : > { %v3988_v0 = vrot.slane %v6141_v12, 9  ;;  %v3202_v63 = vrot.slane %v6142_v6, 5  ;;  %v3989_v46 = vrot.slane %v6143_v44, 9  ;;  %v3996_v15 = vcombine.low %v3193_v57, %v3196_v41  ;;  %v6147_v41 = vld [vmem:[#allocation14_spill] sm:$0xff] }
 0x10e   : > { %4377 = vmatmul.mubr.msk.bf16.gmra.mrb[8].mxu0 %vm1293_vm12, %v3976_v30  ;;  %v3201_v62 = vrot.slane %v3199_v2, 4  ;;  %v2159_v17 = vsel %vm5102_vm11, %v2154_v51, %v2158_v25  ;;  %v2169_v52 = vsel %vm5102_vm11, %v2164_v40, %v2168_v58  ;;  %v3978_v19 = vcombine.low %v3005_v16, %v3015_v47  ;;  %v6150_v12 = vld [vmem:[#allocation10_spill] sm:$0xff] }
 0x10f   : > { %4297 = vmatmul.mubr.msk.bf16.vlgmr.msra.gmra.mrb[0].mxu1 %vm1293_vm12, %v3870_v8  ;;  %4380 = vmatprep.mubr.msk.bf16.mxu0 %vm1293_vm12, %v3977_v28  ;;  %v3208_v53 = vrot.slane %v3206_v23, 4  ;;  %v3209_v22 = vrot.slane %v6144_v49, 5  ;;  %v5891_v55 = vcombine.low %v2159_v17, %v2169_v52  ;;  %v2125_v18 = vrot.slane %v2123_v39, 4  ;;  %v6145_v28 = vld [vmem:[#allocation15_spill] sm:$0xff] }
 0x110   : > { %4403 = vmatpush3.bf16.msra.mxu1 %v6140_v33  ;;  %4300 = vmatprep.mubr.msk.bf16.mxu1 %vm1293_vm12, %v3871_v60  ;;  %v2128_v30 = vrot.slane %v2126_v34, 5  ;;  %v2134_v42 = vrot.slane %v2132_v36, 5  ;;  %v2138_v45 = vrot.slane %v2136_v48, 4  ;;  %v3873_v54 = vcombine.low %v5355_v59, %v5358_v24  ;;  %v6149_v39 = vld [vmem:[#allocation7_spill] sm:$0xff] }
 0x111   : > { %v3200_v10 = vsel %vm5259_vm15, %v3988_v0, %v3199_v2  ;;  %v3203_v25 = vsel %vm5259_vm15, %v3201_v62, %v3202_v63  ;;  %v3207_v8 = vsel %vm5259_vm15, %v3989_v46, %v3206_v23  ;;  %v3213_v58 = vrot.slane %v6145_v28, 5  ;;  %v6151_v0 = vld [vmem:[#allocation9_spill] sm:$0xff] }
 0x112   : > { %v2142_v26 = vshll.u32 %v6146_v14, 16  ;;  %v3210_v59 = vsel %vm5259_vm15, %v3208_v53, %v3209_v22  ;;  %v2129_v24 = vor.u32 %v2128_v30, %v2125_v18  ;;  %v2139_v60 = vor.u32 %v2138_v45, %v2134_v42 }
 0x113   : > { %v3220_v16 = vrot.slane %v5579_v35, 5  ;;  %v3997_v57 = vcombine.low %v3200_v10, %v3203_v25  ;;  %v3990_v2 = vrot.slane %v6147_v41, 9  ;;  %v3216_v5 = vrot.slane %v5735_v61, 5  ;;  %v6153_v10 = vld [vmem:[#allocation16_spill] sm:$0xff] }
 0x114   : > { %v2171_v47 = vshrl.u32 %v6148_v4, 16  ;;  %v2174_v23 = vshll.u32 %v6148_v4, 16  ;;  %v2180_v34 = vshll.u32 %v6149_v39, 16  ;;  %v2184_v36 = vshrl.u32 %v6149_v39, 16 }
 0x115   : > { %v3998_v48 = vcombine.low %v3207_v8, %v3210_v59  ;;  %v3215_v51 = vrot.slane %v3213_v58, 4  ;;  %v2144_v40 = vrot.slane %v2142_v26, 5  ;;  %v3991_v35 = vrot.slane %v5573_v13, 9 }
 0x116   : > { %4381 = vmatmul.mubr.msk.bf16.gmra.mrb[12].mxu0 %vm1293_vm12, %v3978_v19  ;;  %v2130_v33 = vrot.slane %v2129_v24, 4  ;;  %v2140_v50 = vrot.slane %v2139_v60, 4  ;;  %v3222_v29 = vrot.slane %v3220_v16, 4  ;;  %v3875_v61 = vcombine.low %v6148_v4, %v6149_v39 }
 0x117   : > { %4301 = vmatmul.mubr.msk.bf16.gmra.mrb[4].mxu1 %vm1293_vm12, %v3872_v56  ;;  %4386 = vmatprep.mubr.msk.bf16.mxu0 %vm1293_vm12, %v3996_v15  ;;  %v3223_v56 = vrot.slane %v5747_v21, 5  ;;  %v3876_v6 = vcombine.low %v6151_v0, %v6150_v12  ;;  %v2173_v63 = vrot.slane %v2171_v47, 4  ;;  %v2176_v44 = vrot.slane %v2174_v23, 5 }
 0x118   : > { %4304 = vmatprep.mubr.msk.bf16.mxu1 %vm1293_vm12, %v3873_v54  ;;  %v2182_v46 = vrot.slane %v2180_v34, 5  ;;  %v2186_v15 = vrot.slane %v2184_v36, 4  ;;  %v3214_v13 = vsel %vm5259_vm15, %v3990_v2, %v3213_v58  ;;  %v3217_v62 = vsel %vm5259_vm15, %v3215_v51, %v3216_v5  ;;  %v6154_v58 = vld [vmem:[#allocation17_spill] sm:$0xff]  ;;  %v6155_v36 = vld [vmem:[#allocation11_spill] sm:$0xff] }
 0x119   : > { %v3221_v21 = vsel %vm5259_vm15, %v3991_v35, %v3220_v16  ;;  %v3227_v17 = vrot.slane %v5617_v32, 5  ;;  %v2135_v52 = vsel %vm5102_vm11, %v2130_v33, %v2134_v42  ;;  %v2145_v19 = vsel %vm5102_vm11, %v2140_v50, %v2144_v40  ;;  %v6152_v42 = vld [vmem:[#allocation8_spill] sm:$0xff] }
 0x11a   : > { %v3224_v53 = vsel %vm5259_vm15, %v3222_v29, %v3223_v56  ;;  %v3234_v49 = vrot.slane %v5623_v7, 5  ;;  %v2195_v32 = vshrl.u32 %v6151_v0, 16  ;;  %v2198_v20 = vshll.u32 %v6151_v0, 16 }
 0x11b   : > { %v2204_v3 = vshll.u32 %v6150_v12, 16  ;;  %v3999_v22 = vcombine.low %v3214_v13, %v3217_v62  ;;  %v2177_v18 = vor.u32 %v2176_v44, %v2173_v63  ;;  %v2187_v30 = vor.u32 %v2186_v15, %v2182_v46 }
 0x11c   : > { %v2190_v45 = vshll.u32 %v6152_v42, 16  ;;  %v4000_v54 = vcombine.low %v3221_v21, %v3224_v53  ;;  %v3992_v25 = vrot.slane %v6153_v10, 9  ;;  %v3229_v8 = vrot.slane %v3227_v17, 4 }
 0x11d   : > { %v3230_v7 = vrot.slane %v5784_v9, 5  ;;  %v3890_v28 = vcombine.low %v2135_v52, %v2145_v19  ;;  %v3993_v14 = vrot.slane %v6154_v58, 9  ;;  %v3236_v26 = vrot.slane %v3234_v49, 4 }
 0x11e   : > { %4387 = vmatmul.mubr.msk.bf16.vlgmr.msra.gmra.mrb[0].mxu0 %vm1293_vm12, %v3997_v57  ;;  %v3237_v59 = vrot.slane %v5791_v37, 5  ;;  %v2197_v24 = vrot.slane %v2195_v32, 4  ;;  %v2200_v60 = vrot.slane %v2198_v20, 5  ;;  %v2206_v16 = vrot.slane %v2204_v3, 5 }
 0x11f   : > { %4305 = vmatmul.mubr.msk.bf16.gmra.mrb[8].mxu1 %vm1293_vm12, %v3874_v1  ;;  %4390 = vmatprep.mubr.msk.bf16.mxu0 %vm1293_vm12, %v3998_v48  ;;  %v2208_v1 = vshrl.u32 %v6150_v12, 16  ;;  %v2178_v41 = vrot.slane %v2177_v18, 4  ;;  %v2188_v2 = vrot.slane %v2187_v30, 4  ;;  %v2192_v5 = vrot.slane %v2190_v45, 5 }
 0x120   : > { %4308 = vmatprep.mubr.msk.bf16.mxu1 %vm1293_vm12, %v3875_v61  ;;  %v3228_v9 = vsel %vm5259_vm15, %v3992_v25, %v3227_v17  ;;  %v3231_v4 = vsel %vm5259_vm15, %v3229_v8, %v3230_v7  ;;  %v3235_v37 = vsel %vm5259_vm15, %v3993_v14, %v3234_v49  ;;  %v3241_v47 = vrot.slane %v5673_v43, 5 }
 0x121   : > { %v2210_v57 = vrot.slane %v2208_v1, 4  ;;  %v3238_v23 = vsel %vm5259_vm15, %v3236_v26, %v3237_v59  ;;  %v2201_v39 = vor.u32 %v2200_v60, %v2197_v24  ;;  %v2214_v48 = vshll.u32 %v6155_v36, 16 }
 0x122   : > { %v2183_v51 = vsel %vm5102_vm11, %v2178_v41, %v2182_v46  ;;  %v2193_v40 = vsel %vm5102_vm11, %v2188_v2, %v2192_v5  ;;  %v4001_v35 = vcombine.low %v3228_v9, %v3231_v4  ;;  %v4002_v33 = vcombine.low %v3235_v37, %v3238_v23 }
 0x123   : > { %v2211_v34 = vor.u32 %v2210_v57, %v2206_v16  ;;  %v3994_v50 = vrot.slane %v5664_v27, 9  ;;  %v3243_v43 = vrot.slane %v3241_v47, 4  ;;  %v3244_v29 = vrot.slane %v5830_v38, 5 }
 0x124   : > { %v3892_v56 = vcombine.low %v2183_v51, %v2193_v40  ;;  %v2202_v61 = vrot.slane %v2201_v39, 4  ;;  %v2216_v0 = vrot.slane %v2214_v48, 5 }
 0x125   : > { %v2212_v12 = vrot.slane %v2211_v34, 4  ;;  %v3245_v27 = vsel %vm5259_vm15, %v3243_v43, %v3244_v29 }
 0x126   : > { %4391 = vmatmul.mubr.msk.bf16.gmra.mrb[4].mxu0 %vm1293_vm12, %v3999_v22  ;;  %v2207_v38 = vsel %vm5102_vm11, %v2202_v61, %v2206_v16 }
 0x127   : > { %4309 = vmatmul.mubr.msk.bf16.gmra.mrb[12].mxu1 %vm1293_vm12, %v3876_v6  ;;  %4394 = vmatprep.mubr.msk.bf16.mxu0 %vm1293_vm12, %v4000_v54  ;;  %v3242_v6 = vsel %vm5259_vm15, %v3994_v50, %v3241_v47  ;;  %v2217_v63 = vsel %vm5102_vm11, %v2212_v12, %v2216_v0 }
 0x128   : > { %4322 = vmatprep.mubr.msk.bf16.mxu1 %vm1293_vm12, %v3890_v28  ;;  %v4003_v44 = vcombine.low %v3242_v6, %v3245_v27  ;;  %v3893_v46 = vcombine.low %v2207_v38, %v2217_v63 }
 0x12e   : > { %4395 = vmatmul.mubr.msk.bf16.gmra.mrb[8].mxu0 %vm1293_vm12, %v4001_v35 }
 0x12f   : > { %4323 = vmatmul.mubr.msk.bf16.vlgmr.msra.gmra.mrb[8].mxu1 %vm1293_vm12, %v5891_v55  ;;  %4398 = vmatprep.mubr.msk.bf16.mxu0 %vm1293_vm12, %v4002_v33 }
 0x130   : > { %4326 = vmatprep.mubr.msk.bf16.mxu1 %vm1293_vm12, %v3892_v56 }
 0x136   : > { %4399 = vmatmul.mubr.msk.bf16.gmra.mrb[12].mxu0 %vm1293_vm12, %v4003_v44 }
 0x137   : > { %4327 = vmatmul.mubr.msk.bf16.gmra.mrb[12].mxu1 %vm1293_vm12, %v3893_v46 }
 0x1e2   : > { %v4298_v55 = vpop.f32.mrb[0].mxu1 }
 0x1e3   : > { %v1947_v15 = vpop.f32.mrb[1].mxu1 }
 0x1e4   : > { %v4299_v13 = vpop.f32.mrb[2].mxu1 }
 0x1e5   : > { %v1950_v62 = vpop.f32.mrb[3].mxu1 }
 0x1ea   : > { %v4302_v11 = vpop.f32.mrb[4].mxu1 }
 0x1eb   : > { %v1963_v21 = vpop.f32.mrb[5].mxu1 }
 0x1ec   : > { %v4303_v17 = vpop.f32.mrb[6].mxu1 }
 0x1ed   : > { %v1966_v52 = vpop.f32.mrb[7].mxu1 }
 0x1f1   : > { %v4388_v19 = vpop.f32.mrb[0].mxu0 }
 0x1f2   : > { %v4404_v53 = vadd.f32 %v4388_v19, %v4298_v55  ;;  %v3333_v31 = vpop.f32.mrb[1].mxu0 }
 0x1f3   : > { %v4405_v49 = vadd.f32 %v3333_v31, %v1947_v15  ;;  %v4389_v32 = vpop.f32.mrb[2].mxu0 }
 0x1f4   : > { %v4066_v20 = vpack.c.bf16 %v4404_v53, %v4404_v53  ;;  %v4406_v3 = vadd.f32 %v4389_v32, %v4299_v13  ;;  %v3336_v1 = vpop.f32.mrb[3].mxu0  ;;  %v3534_v42 = vmul.f32 %v4404_v53, %v4404_v53  ;;  %v3496_v58 = vsel %vm1293_vm12, %v4404_v53, 0.0 }
 0x1f5   : > { %v4064_v22 = vpack.c.bf16 %v4405_v49, %v4405_v49  ;;  %v3532_v18 = vmul.f32 %v4405_v49, %v4405_v49  ;;  %v4407_v30 = vadd.f32 %v3336_v1, %v1950_v62  ;;  %v3493_v54 = vsel %vm1293_vm12, %v4405_v49, 0.0 }
 0x1f6   : > { %3479 = vst.msk [vmem:[%s4729_s11 + $0x8] sm:$0xf] %vm3476_vm0, %v4066_v20  ;;  %v4067_v45 = vpack.c.bf16 %v4406_v3, %v4406_v3  ;;  %v3535_v7 = vmul.f32 %v4406_v3, %v4406_v3  ;;  %v3551_v41 = vsel %vm1293_vm12, %v3534_v42, 0.0  ;;  %v3498_v9 = vsel %vm1293_vm12, %v4406_v3, 0.0 }
 0x1f7   : > { %3477 = vst.msk [vmem:[%s4729_s11] sm:$0xf] %vm3476_vm0, %v4064_v22  ;;  %v4065_v10 = vpack.c.bf16 %v4407_v30, %v4407_v30  ;;  %v3494_v25 = vsel %vm1293_vm12, %v4407_v30, 0.0  ;;  %v3533_v8 = vmul.f32 %v4407_v30, %v4407_v30  ;;  %v3548_v14 = vsel %vm1293_vm12, %v3532_v18, 0.0 }
 0x1f8   : > { %3480 = vst.msk [vmem:[%s4729_s11 + $0xc] sm:$0xf] %vm3476_vm0, %v4067_v45  ;;  %v3495_v28 = vadd.f32 %v3494_v25, %v3493_v54  ;;  %v3553_v4 = vsel %vm1293_vm12, %v3535_v7, 0.0 }
 0x1f9   : > { %3478 = vst.msk [vmem:[%s4729_s11 + $0x4] sm:$0xf] %vm3476_vm0, %v4065_v10  ;;  %v3549_v26 = vsel %vm1293_vm12, %v3533_v8, 0.0  ;;  %v4392_v59 = vpop.f32.mrb[4].mxu0 }
 0x1fa   : > { %v3497_v24 = vadd.f32 %v3496_v58, %v3495_v28  ;;  %v3550_v60 = vadd.f32 %v3549_v26, %v3548_v14  ;;  %v4408_v16 = vadd.f32 %v4392_v59, %v4302_v11  ;;  %v3349_v57 = vpop.f32.mrb[5].mxu0 }
 0x1fb   : > { %v4409_v2 = vadd.f32 %v3349_v57, %v1963_v21  ;;  %v4393_v5 = vpop.f32.mrb[6].mxu0 }
 0x1fc   : > { %v3552_v37 = vadd.f32 %v3551_v41, %v3550_v60  ;;  %v4070_v47 = vpack.c.bf16 %v4408_v16, %v4408_v16  ;;  %v3352_v23 = vpop.f32.mrb[7].mxu0  ;;  %v3499_v34 = vadd.f32 %v3498_v9, %v3497_v24  ;;  %v4410_v40 = vadd.f32 %v4393_v5, %v4303_v17 }
 0x1fd   : > { %v4068_v39 = vpack.c.bf16 %v4409_v2, %v4409_v2  ;;  %v3500_v36 = vsel %vm1293_vm12, %v4409_v2, 0.0  ;;  %v3536_v48 = vmul.f32 %v4409_v2, %v4409_v2  ;;  %v4411_v35 = vadd.f32 %v3352_v23, %v1966_v52 }
 0x1fe   : > { %3483 = vst.msk [vmem:[%s4729_s11 + $0x18] sm:$0xf] %vm3476_vm0, %v4070_v47  ;;  %v3554_v51 = vadd.f32 %v3553_v4, %v3552_v37  ;;  %v3501_v33 = vadd.f32 %v3500_v36, %v3499_v34  ;;  %v4071_v29 = vpack.c.bf16 %v4410_v40, %v4410_v40  ;;  %v3538_v56 = vmul.f32 %v4408_v16, %v4408_v16 }
 0x1ff   : > { %3481 = vst.msk [vmem:[%s4729_s11 + $0x10] sm:$0xf] %vm3476_vm0, %v4068_v39  ;;  %v3555_v50 = vsel %vm1293_vm12, %v3536_v48, 0.0  ;;  %v4069_v61 = vpack.c.bf16 %v4411_v35, %v4411_v35  ;;  %v3502_v12 = vsel %vm1293_vm12, %v4411_v35, 0.0  ;;  %v3537_v0 = vmul.f32 %v4411_v35, %v4411_v35 }
 0x200   : > { %v3556_v43 = vadd.f32 %v3555_v50, %v3554_v51  ;;  %3484 = vst.msk [vmem:[%s4729_s11 + $0x1c] sm:$0xf] %vm3476_vm0, %v4071_v29  ;;  %v3503_v27 = vadd.f32 %v3502_v12, %v3501_v33  ;;  %v3504_v44 = vsel %vm1293_vm12, %v4408_v16, 0.0  ;;  %v3539_v46 = vmul.f32 %v4410_v40, %v4410_v40 }
 0x201   : > { %v4396_v6 = vpop.f32.mrb[8].mxu0  ;;  %3482 = vst.msk [vmem:[%s4729_s11 + $0x14] sm:$0xf] %vm3476_vm0, %v4069_v61  ;;  %v3557_v55 = vsel %vm1293_vm12, %v3537_v0, 0.0  ;;  %v3559_v53 = vsel %vm1293_vm12, %v3538_v56, 0.0  ;;  %v3506_v31 = vsel %vm1293_vm12, %v4410_v40, 0.0 }
 0x202   : > { %v4324_v38 = vpop.f32.mrb[8].mxu1  ;;  %v3365_v63 = vpop.f32.mrb[9].mxu0  ;;  %v3505_v11 = vadd.f32 %v3504_v44, %v3503_v27  ;;  %v3558_v21 = vadd.f32 %v3557_v55, %v3556_v43  ;;  %v3561_v30 = vsel %vm1293_vm12, %v3539_v46, 0.0 }
 0x203   : > { %v4412_v15 = vadd.f32 %v4396_v6, %v4324_v38  ;;  %v2337_v13 = vpop.f32.mrb[9].mxu1  ;;  %v4397_v62 = vpop.f32.mrb[10].mxu0 }
 0x204   : > { %v4413_v17 = vadd.f32 %v3365_v63, %v2337_v13  ;;  %v4325_v52 = vpop.f32.mrb[10].mxu1  ;;  %v3368_v19 = vpop.f32.mrb[11].mxu0  ;;  %v3560_v3 = vadd.f32 %v3559_v53, %v3558_v21  ;;  %v3507_v22 = vadd.f32 %v3506_v31, %v3505_v11 }
 0x205   : > { %v4074_v49 = vpack.c.bf16 %v4412_v15, %v4412_v15  ;;  %v4414_v32 = vadd.f32 %v4397_v62, %v4325_v52  ;;  %v2340_v20 = vpop.f32.mrb[11].mxu1  ;;  %v3542_v54 = vmul.f32 %v4412_v15, %v4412_v15  ;;  %v3512_v5 = vsel %vm1293_vm12, %v4412_v15, 0.0 }
 0x206   : > { %v4072_v1 = vpack.c.bf16 %v4413_v17, %v4413_v17  ;;  %v3508_v18 = vsel %vm1293_vm12, %v4413_v17, 0.0  ;;  %v3540_v42 = vmul.f32 %v4413_v17, %v4413_v17  ;;  %v3562_v25 = vadd.f32 %v3561_v30, %v3560_v3 }
 0x207   : > { %3487 = vst.msk [vmem:[%s4729_s11 + $0x28] sm:$0xf] %vm3476_vm0, %v4074_v49  ;;  %v4075_v45 = vpack.c.bf16 %v4414_v32, %v4414_v32  ;;  %v3509_v10 = vadd.f32 %v3508_v18, %v3507_v22  ;;  %v4415_v8 = vadd.f32 %v3368_v19, %v2340_v20  ;;  %v3567_v9 = vsel %vm1293_vm12, %v3542_v54, 0.0 }
 0x208   : > { %3485 = vst.msk [vmem:[%s4729_s11 + $0x20] sm:$0xf] %vm3476_vm0, %v4072_v1  ;;  %v3563_v7 = vsel %vm1293_vm12, %v3540_v42, 0.0  ;;  %v3543_v23 = vmul.f32 %v4414_v32, %v4414_v32  ;;  %v3514_v51 = vsel %vm1293_vm12, %v4414_v32, 0.0 }
 0x209   : > { %3488 = vst.msk [vmem:[%s4729_s11 + $0x2c] sm:$0xf] %vm3476_vm0, %v4075_v45  ;;  %v4400_v28 = vpop.f32.mrb[12].mxu0  ;;  %v3564_v58 = vadd.f32 %v3563_v7, %v3562_v25  ;;  %v4073_v14 = vpack.c.bf16 %v4415_v8, %v4415_v8  ;;  %v3510_v26 = vsel %vm1293_vm12, %v4415_v8, 0.0  ;;  %v3541_v16 = vmul.f32 %v4415_v8, %v4415_v8 }
 0x20a   : > { %v4328_v59 = vpop.f32.mrb[12].mxu1  ;;  %v3381_v24 = vpop.f32.mrb[13].mxu0  ;;  %v3511_v60 = vadd.f32 %v3510_v26, %v3509_v10  ;;  %v3569_v12 = vsel %vm1293_vm12, %v3543_v23, 0.0 }
 0x20b   : > { %v4416_v57 = vadd.f32 %v4400_v28, %v4328_v59  ;;  %v2353_v41 = vpop.f32.mrb[13].mxu1  ;;  %v4401_v2 = vpop.f32.mrb[14].mxu0  ;;  %3486 = vst.msk [vmem:[%s4729_s11 + $0x24] sm:$0xf] %vm3476_vm0, %v4073_v14  ;;  %v3565_v34 = vsel %vm1293_vm12, %v3541_v16, 0.0 }
 0x20c   : > { %v4417_v4 = vadd.f32 %v3381_v24, %v2353_v41  ;;  %v4329_v37 = vpop.f32.mrb[14].mxu1  ;;  %v3384_v47 = vpop.f32.mrb[15].mxu0  ;;  %v3513_v39 = vadd.f32 %v3512_v5, %v3511_v60  ;;  %v3566_v40 = vadd.f32 %v3565_v34, %v3564_v58 }
 0x20d   : > { %v4078_v36 = vpack.c.bf16 %v4416_v57, %v4416_v57  ;;  %v2356_v48 = vpop.f32.mrb[15].mxu1  ;;  %v4418_v29 = vadd.f32 %v4401_v2, %v4329_v37  ;;  %v3546_v46 = vmul.f32 %v4416_v57, %v4416_v57  ;;  %v3520_v13 = vsel %vm1293_vm12, %v4416_v57, 0.0 }
 0x20e   : > { %v4076_v35 = vpack.c.bf16 %v4417_v4, %v4417_v4  ;;  %v3516_v33 = vsel %vm1293_vm12, %v4417_v4, 0.0  ;;  %v3515_v50 = vadd.f32 %v3514_v51, %v3513_v39  ;;  %v3544_v43 = vmul.f32 %v4417_v4, %v4417_v4 }
 0x20f   : > { %3491 = vst.msk [vmem:[%s4729_s11 + $0x38] sm:$0xf] %vm3476_vm0, %v4078_v36  ;;  %v4419_v56 = vadd.f32 %v3384_v47, %v2356_v48  ;;  %v3568_v61 = vadd.f32 %v3567_v9, %v3566_v40  ;;  %v4079_v27 = vpack.c.bf16 %v4418_v29, %v4418_v29  ;;  %v3547_v11 = vmul.f32 %v4418_v29, %v4418_v29 }
 0x210   : > { %3489 = vst.msk [vmem:[%s4729_s11 + $0x30] sm:$0xf] %vm3476_vm0, %v4076_v35  ;;  %v3517_v0 = vadd.f32 %v3516_v33, %v3515_v50  ;;  %v3571_v6 = vsel %vm1293_vm12, %v3544_v43, 0.0  ;;  %v3522_v52 = vsel %vm1293_vm12, %v4418_v29, 0.0  ;;  %v3575_v53 = vsel %vm1293_vm12, %v3546_v46, 0.0 }
 0x211   : > { %v3570_v38 = vadd.f32 %v3569_v12, %v3568_v61  ;;  %v4077_v63 = vpack.c.bf16 %v4419_v56, %v4419_v56  ;;  %v3518_v44 = vsel %vm1293_vm12, %v4419_v56, 0.0  ;;  %3492 = vst.msk [vmem:[%s4729_s11 + $0x3c] sm:$0xf] %vm3476_vm0, %v4079_v27  ;;  %v3545_v15 = vmul.f32 %v4419_v56, %v4419_v56 }
 0x212   : > { %v3519_v55 = vadd.f32 %v3518_v44, %v3517_v0  ;;  %v3577_v32 = vsel %vm1293_vm12, %v3547_v11, 0.0 }
 0x213   : > { %v3572_v62 = vadd.f32 %v3571_v6, %v3570_v38  ;;  %3490 = vst.msk [vmem:[%s4729_s11 + $0x34] sm:$0xf] %vm3476_vm0, %v4077_v63  ;;  %v3573_v17 = vsel %vm1293_vm12, %v3545_v15, 0.0 }
 0x214   : > { %v3521_v21 = vadd.f32 %v3520_v13, %v3519_v55 }
 0x215   : > { %v3574_v19 = vadd.f32 %v3573_v17, %v3572_v62 }
 0x216   : > { %v3523_v31 = vadd.f32 %v3522_v52, %v3521_v21 }
 0x217   : > { %v3576_v49 = vadd.f32 %v3575_v53, %v3574_v19 }
 0x218   : > { %v3524_v20 = vrot.slane %v3523_v31, 4 }
 0x219   : > { %v3578_v3 = vadd.f32 %v3577_v32, %v3576_v49 }
 0x21a   : > { %v3525_v1 = vadd.f32 %v3524_v20, %v3523_v31 }
 0x21b   : > { %v3579_v22 = vrot.slane %v3578_v3, 4 }
 0x21c   : > { %v3526_v18 = vrot.slane %v3525_v1, 2 }
 0x21d   : > { %v3580_v30 = vadd.f32 %v3579_v22, %v3578_v3 }
 0x21e   : > { %v3527_v42 = vadd.f32 %v3526_v18, %v3525_v1 }
 0x21f   : > { %v3581_v45 = vrot.slane %v3580_v30, 2 }
 0x220   : > { %v3528_v54 = vrot.slane %v3527_v42, 1 }
 0x221   : > { %v3582_v10 = vadd.f32 %v3581_v45, %v3580_v30 }
 0x222   : > { %v3529_v25 = vadd.f32 %v3528_v54, %v3527_v42 }
 0x223   : > { %v3583_v8 = vrot.slane %v3582_v10, 1 }
 0x224   : > { %3531 = vst.msk [vmem:[%s4735_s24] sm:$0x1] %vm3530_vm1, %v3529_v25 }
 0x225   : > { %v3584_v7 = vadd.f32 %v3583_v8, %v3582_v10 }
 0x227   : > { %3585 = vst.msk [vmem:[%s4735_s24 + $0x1] sm:$0x1] %vm3530_vm1, %v3584_v7 }
 0x228 PF: > { %s16_s22 = sadd.s32 1, %s4654_s22   ;;  %s6156_s11 = sld [smem:[#allocation3_spill]] }
 0x229   : > { %p13_p9 = scmp.ge.s32.totalorder %s16_s22, 6   ;;  %s6157_s18 = smov %s4646_s20 }
 0x22a   : > { %s6158_s19 = smov %s4650_s21  ;;  %s6159_s20 = smov %s6162_s23 }
 0x22b   :  { %15 = sbr.rel (!%p13_p9) target bundleno = 3 (0x3), region = 94 }
 0x22e   : > { %s6160_s21 = smov %s6156_s11 }

// kernel: double_conv.3
= control target key start
LH: loop header
LB: loop body
LE: loop exit
PB: predicated region body
PF: predicated region fallthrough
CT: control target
= control target key end

     0   :  { %s4305_s18 = smov 0   ;;  %s4307_s19 = smov 0   ;;  %s5606_s0 = inlined_call_operand.vmem [shape: bf16[2,16,16,4], index: 0, kind: input, shape index: {}]   ;;  %s5607_s1 = inlined_call_operand.vmem [shape: f32[1,1,4], index: 1, kind: input, shape index: {}]   ;;  %s5608_s2 = inlined_call_operand.vmem [shape: f32[1,1,4], index: 2, kind: input, shape index: {}]   ;;  %s5609_s3 = inlined_call_operand.vmem [shape: bf16[9,4,8], index: 3, kind: input, shape index: {}]   ;;  %s5610_s4 = inlined_call_operand.vmem [shape: bf16[2,16,16,8], index: 4, kind: output, shape index: {0}]   ;;  %s5611_s5 = inlined_call_operand.vmem [shape: f32[2,2,2,8], index: 5, kind: output, shape index: {1}]  }
   0x1   :  { %s4309_s20 = smov 0   ;;  %s4311_s21 = smov 0  }
   0x2   :  { %s4313_s1 = smov 0  }
   0x3 LB: > { %s25_s2 = sadd.s32 1, %s4264_s20  ;;  %s28_s22 = sadd.s32 1, %s4268_s21  ;;  %s4272_s1 = sphi %s4313_s1, %s16_s1   ;;  %s4268_s21 = sphi %s4311_s21, %s5696_s21   ;;  %s4264_s20 = sphi %s4309_s20, %s5695_s20   ;;  %s4260_s19 = sphi %s4307_s19, %s5694_s19   ;;  %s4256_s18 = sphi %s4305_s18, %s5693_s18  }
   0x4   : > { %p26_p0 = scmp.ge.s32.totalorder %s25_s2, 2  ;;  %p3500_p1 = scmp.ge.s32.totalorder %s4272_s1, 1 }
   0x5   : > { %p206_p2 = scmp.lt.s32.totalorder %s4272_s1, 5 }
   0x6   : > { %s5698_s2 = smov (%p26_p0, %s25_s2), 0  ;;  %s5700_s22 = smov (!%p26_p0, %s28_s22), %s4268_s21 }
   0x7   : > { %p207_p3 = pnand %p3500_p1, %p206_p2  ;;  %p30_p4 = scmp.ge.s32.totalorder %s5700_s22, 2 }
   0x9   : > { %s5702_s22 = smov (%p30_p4, %s5700_s22), 0  ;;  %210 = sbr.rel (%p207_p3) target bundleno = 529 (0x211), region = 36 }
  0x10   : > { %p247_p5 = scmp.lt.s32.totalorder %s4260_s19, 1  ;;  %s3503_s23 = sshll.u32 %s4256_s18, 3 }
  0x11   : > { %p255_p6 = scmp.lt.s32.totalorder %s3503_s23, 15  ;;  %p265_p7 = scmp.lt.s32.totalorder %s4256_s18, 1 }
  0x12   : > { %s5704_s19 = smov (!%p247_p5, %s4260_s19), 1  ;;  %p3509_p8 = scmp.ne.s32.totalorder %s4256_s18, 0 }
  0x13   : > { %s5706_s23 = smov (!%p255_p6, %s3503_s23), 15  ;;  %s3759_s24 = sshll.u32 %s5704_s19, 7  ;;  %vm276_vm0 = vcmask (!%p3509_p8), 27648   ;;  %vm279_vm1 = vcmask (!%p3509_p8), 24576   ;;  %v4274_v1 = vmov (!%p3509_p8), 0  }
  0x14   : > { %s3505_s25 = sshll.u32 %s5704_s19, 5  ;;  %s4342_s28 = scalar_lea.vmem %s5606_s0, %s3759_s24  ;;  %281 = vst.msk [vmem:[#allocation2 + $0xc] sm:$0xf] (!%p3509_p8), %vm276_vm0, %v4274_v1  ;;  %277 = vst.msk [vmem:[#allocation2] sm:$0xf] (!%p3509_p8), %vm276_vm0, %v4274_v1 }
  0x15   : > { %s3504_s29 = sshll.u32 %s5706_s23, 1  ;;  %s3507_s10 = sshll.u32 %s5704_s19, 1  ;;  %v4357_v0 = vld [vmem:[%s4342_s28] sm:$0xf] (!%p3509_p8)  ;;  %278 = vst.msk [vmem:[#allocation2 + $0x4] sm:$0xf] (!%p3509_p8), %vm276_vm0, %v4274_v1 }
  0x16   : > { %s259_s30 = sadd.s32 %s3505_s25, %s3504_s29  ;;  %282 = vst.msk [vmem:[#allocation2 + $0x10] sm:$0xf] (!%p3509_p8), %vm276_vm0, %v4274_v1  ;;  %284 = vst.msk [vmem:[#allocation2 + $0x18] sm:$0xf] (!%p3509_p8), %vm276_vm0, %v4274_v1  ;;  %v368_v2 = vshrl.u32 (!%p3509_p8), %v4357_v0, 16  ;;  %v371_v3 = vshll.u32 (!%p3509_p8), %v4357_v0, 16 }
  0x17   : > { %s3506_s6 = sshll.u32 %s259_s30, 2  ;;  %275 = sbr.rel (%p3509_p8) target bundleno = 106 (0x6a), region = 40  ;;  %285 = vst.msk [vmem:[#allocation2 + $0x1c] sm:$0xf] (!%p3509_p8), %vm276_vm0, %v4274_v1  ;;  %287 = vst.msk [vmem:[#allocation2 + $0x24] sm:$0xf] (!%p3509_p8), %vm276_vm0, %v4274_v1 }
  0x18   : > { %s4347_s9 = scalar_lea.vmem %s5610_s4, %s3506_s6  ;;  %288 = vst.msk [vmem:[#allocation2 + $0x28] sm:$0xf] (!%p3509_p8), %vm276_vm0, %v4274_v1  ;;  %290 = vst.msk [vmem:[#allocation2 + $0x30] sm:$0xf] (!%p3509_p8), %vm276_vm0, %v4274_v1  ;;  %vm689_vm2 = vsmask.f32 (!%p3509_p8), 7938 }
  0x19   : > { %s266_s11 = scalar_select %p265_p7, %s4256_s18, 1 }
  0x1a   : > { %291 = vst.msk [vmem:[#allocation2 + $0x34] sm:$0xf] (!%p3509_p8), %vm276_vm0, %v4274_v1  ;;  %293 = vst.msk [vmem:[#allocation2 + $0x3c] sm:$0xf] (!%p3509_p8), %vm276_vm0, %v4274_v1  ;;  %v333_v4 = vld [vmem:[%s4342_s28 + $0x4] sm:$0xf] (!%p3509_p8) }
  0x1b   : > { %s268_s12 = sadd.s32 %s3507_s10, %s266_s11  ;;  %294 = vst.msk [vmem:[#allocation2 + $0x40] sm:$0xf] (!%p3509_p8), %vm276_vm0, %v4274_v1  ;;  %296 = vst.msk [vmem:[#allocation2 + $0x48] sm:$0xf] (!%p3509_p8), %vm276_vm0, %v4274_v1  ;;  %vm364_vm3 = vsmask.f32 (!%p3509_p8), 256 }
  0x1c   : > { %s3508_s13 = sshll.u32 %s268_s12, 1  ;;  %297 = vst.msk [vmem:[#allocation2 + $0x4c] sm:$0xf] (!%p3509_p8), %vm276_vm0, %v4274_v1  ;;  %299 = vst.msk [vmem:[#allocation2 + $0x54] sm:$0xf] (!%p3509_p8), %vm276_vm0, %v4274_v1  ;;  %v376_v5 = vshrl.u32 (!%p3509_p8), %v333_v4, 16 }
  0x1d   : > { %s4353_s16 = scalar_lea.vmem %s5611_s5, %s3508_s13  ;;  %300 = vst.msk [vmem:[#allocation2 + $0x58] sm:$0xf] (!%p3509_p8), %vm276_vm0, %v4274_v1  ;;  %302 = vst.msk [vmem:[#allocation2 + $0x60] sm:$0xf] (!%p3509_p8), %vm276_vm0, %v4274_v1  ;;  %vm365_vm4 = vsmask.f32 (!%p3509_p8), 4368 }
  0x1e   : > { %303 = vst.msk [vmem:[#allocation2 + $0x64] sm:$0xf] %vm276_vm0, %v4274_v1  ;;  %305 = vst.msk [vmem:[#allocation2 + $0x6c] sm:$0xf] %vm276_vm0, %v4274_v1  ;;  %v379_v6 = vshll.u32 %v333_v4, 16  ;;  %v370_v7 = vrot.slane %v368_v2, 7 }
  0x1f   : > { %306 = vst.msk [vmem:[#allocation2 + $0x70] sm:$0xf] %vm276_vm0, %v4274_v1  ;;  %308 = vst.msk [vmem:[#allocation2 + $0x78] sm:$0xf] %vm276_vm0, %v4274_v1  ;;  %v334_v8 = vld [vmem:[%s4342_s28 + $0x8] sm:$0xf] }
  0x20   : > { %309 = vst.msk [vmem:[#allocation2 + $0x7c] sm:$0xf] %vm276_vm0, %v4274_v1  ;;  %311 = vst.msk [vmem:[#allocation2 + $0x84] sm:$0xf] %vm276_vm0, %v4274_v1  ;;  %v335_v9 = vld [vmem:[%s4342_s28 + $0xc] sm:$0xf]  ;;  %v373_v16 = vor.u32 %v371_v3, %v370_v7 }
  0x21   : > { %312 = vst.msk [vmem:[#allocation2 + $0x88] sm:$0xf] %vm276_vm0, %v4274_v1  ;;  %314 = vst.msk [vmem:[#allocation2 + $0x90] sm:$0xf] %vm276_vm0, %v4274_v1  ;;  %v378_v11 = vrot.slane %v376_v5, 7  ;;  %v385_v12 = vshrl.u32 %v334_v8, 16 }
  0x22   : > { %315 = vst.msk [vmem:[#allocation2 + $0x94] sm:$0xf] %vm276_vm0, %v4274_v1  ;;  %317 = vst.msk [vmem:[#allocation2 + $0x9c] sm:$0xf] %vm276_vm0, %v4274_v1  ;;  %v388_v13 = vshll.u32 %v334_v8, 16  ;;  %v393_v14 = vshrl.u32 %v335_v9, 16 }
  0x23   : > { %318 = vst.msk [vmem:[#allocation2 + $0xa0] sm:$0xf] %vm276_vm0, %v4274_v1  ;;  %320 = vst.msk [vmem:[#allocation2 + $0xa8] sm:$0xf] %vm276_vm0, %v4274_v1  ;;  %v336_v15 = vld [vmem:[%s4342_s28 + $0x10] sm:$0xf]  ;;  %v381_v22 = vor.u32 %v379_v6, %v378_v11 }
  0x24   : > { %321 = vst.msk [vmem:[#allocation2 + $0xac] sm:$0xf] %vm276_vm0, %v4274_v1  ;;  %323 = vst.msk [vmem:[#allocation2 + $0xb4] sm:$0xf] %vm276_vm0, %v4274_v1  ;;  %v374_v18 = vrot.slane %v370_v7, 4  ;;  %v396_v19 = vshll.u32 %v335_v9, 16 }
  0x25   : > { %324 = vst.msk [vmem:[#allocation2 + $0xb8] sm:$0xf] %vm276_vm0, %v4274_v1  ;;  %326 = vst.msk [vmem:[#allocation2 + $0xc0] sm:$0xf] %vm276_vm0, %v4274_v1  ;;  %v402_v20 = vshrl.u32 %v336_v15, 16  ;;  %v383_v23 = vrot.slane %v378_v11, 4 }
  0x26   : > { %327 = vst.msk [vmem:[#allocation2 + $0xc4] sm:$0xf] %vm276_vm0, %v4274_v1  ;;  %329 = vst.msk [vmem:[#allocation2 + $0xcc] sm:$0xf] %vm276_vm0, %v4274_v1  ;;  %v337_v21 = vld [vmem:[%s4342_s28 + $0x14] sm:$0xf] }
  0x27   : > { %330 = vst.msk [vmem:[#allocation2 + $0xd0] sm:$0xf] %vm276_vm0, %v4274_v1  ;;  %vm4419_vm5 = vmand %vm276_vm0, %vm689_vm2  ;;  %v387_v25 = vrot.slane %v385_v12, 7  ;;  %v395_v26 = vrot.slane %v393_v14, 7  ;;  %v338_v27 = vld [vmem:[%s4342_s28 + $0x18] sm:$0xf] }
  0x28   : > { %283 = vst.msk [vmem:[#allocation2 + $0x14] sm:$0x1] %vm279_vm1, %v4274_v1  ;;  %280 = vst.msk [vmem:[#allocation2 + $0x8] sm:$0x1] %vm279_vm1, %v4274_v1  ;;  %v404_v28 = vrot.slane %v402_v20, 7  ;;  %v405_v29 = vshll.u32 %v336_v15, 16 }
  0x29   : > { %286 = vst.msk [vmem:[#allocation2 + $0x20] sm:$0x1] %vm279_vm1, %v4274_v1  ;;  %289 = vst.msk [vmem:[#allocation2 + $0x2c] sm:$0x1] %vm279_vm1, %v4274_v1  ;;  %v410_v30 = vshrl.u32 %v337_v21, 16  ;;  %v413_v31 = vshll.u32 %v337_v21, 16  ;;  %v390_v36 = vor.u32 %v388_v13, %v387_v25  ;;  %v398_v38 = vor.u32 %v396_v19, %v395_v26 }
  0x2a   : > { %292 = vst.msk [vmem:[#allocation2 + $0x38] sm:$0x1] %vm279_vm1, %v4274_v1  ;;  %295 = vst.msk [vmem:[#allocation2 + $0x44] sm:$0x1] %vm279_vm1, %v4274_v1  ;;  %v339_v32 = vld [vmem:[%s4342_s28 + $0x1c] sm:$0xf]  ;;  %v407_v46 = vor.u32 %v405_v29, %v404_v28 }
  0x2b   : > { %298 = vst.msk [vmem:[#allocation2 + $0x50] sm:$0x1] %vm279_vm1, %v4274_v1  ;;  %301 = vst.msk [vmem:[#allocation2 + $0x5c] sm:$0x1] %vm279_vm1, %v4274_v1  ;;  %v691_v33 = vld [vmem:[#allocation2 + $0xc] sm:$0xf] }
  0x2c   : > { %304 = vst.msk [vmem:[#allocation2 + $0x68] sm:$0x1] %vm279_vm1, %v4274_v1  ;;  %307 = vst.msk [vmem:[#allocation2 + $0x74] sm:$0x1] %vm279_vm1, %v4274_v1  ;;  %v700_v37 = vld [vmem:[#allocation2 + $0x18] sm:$0xf]  ;;  %v692_v39 = vsel %vm4419_vm5, %v373_v16, %v691_v33 }
  0x2d   : > { %310 = vst.msk [vmem:[#allocation2 + $0x80] sm:$0x1] %vm279_vm1, %v4274_v1  ;;  %313 = vst.msk [vmem:[#allocation2 + $0x8c] sm:$0x1] %vm279_vm1, %v4274_v1  ;;  %v391_v41 = vrot.slane %v387_v25, 4  ;;  %v400_v42 = vrot.slane %v395_v26, 4  ;;  %v701_v45 = vsel %vm4419_vm5, %v390_v36, %v700_v37 }
  0x2e   : > { %316 = vst.msk [vmem:[#allocation2 + $0x98] sm:$0x1] %vm279_vm1, %v4274_v1  ;;  %319 = vst.msk [vmem:[#allocation2 + $0xa4] sm:$0x1] %vm279_vm1, %v4274_v1  ;;  %v707_v44 = vld [vmem:[#allocation2 + $0x24] sm:$0xf] }
  0x2f   : > { %322 = vst.msk [vmem:[#allocation2 + $0xb0] sm:$0x1] %vm279_vm1, %v4274_v1  ;;  %325 = vst.msk [vmem:[#allocation2 + $0xbc] sm:$0x1] %vm279_vm1, %v4274_v1  ;;  %v697_v35 = vld [vmem:[#allocation2 + $0x14] sm:$0x1]  ;;  %v708_v55 = vsel %vm4419_vm5, %v407_v46, %v707_v44 }
  0x30   : > { %328 = vst.msk [vmem:[#allocation2 + $0xc8] sm:$0x1] %vm279_vm1, %v4274_v1  ;;  %331 = vst.msk [vmem:[#allocation2 + $0xd4] sm:$0x1] %vm279_vm1, %v4274_v1  ;;  %v704_v43 = vld [vmem:[#allocation2 + $0x20] sm:$0x1] }
  0x31   : > { %vm4425_vm6 = vmor %vm364_vm3, %vm365_vm4  ;;  %693 = vst [vmem:[#allocation2 + $0xc] sm:$0xf] %v692_v39  ;;  %v408_v47 = vrot.slane %v404_v28, 4  ;;  %v412_v48 = vrot.slane %v410_v30, 7  ;;  %v711_v51 = vld [vmem:[#allocation2 + $0x2c] sm:$0x1] }
  0x32   : > { %vm4432_vm7 = vmand %vm279_vm1, %vm364_vm3  ;;  %v382_v34 = vsel %vm4425_vm6, %v374_v18, %v381_v22  ;;  %702 = vst [vmem:[#allocation2 + $0x18] sm:$0xf] %v701_v45  ;;  %v399_v49 = vsel %vm4425_vm6, %v391_v41, %v398_v38  ;;  %v419_v52 = vshrl.u32 %v338_v27, 16  ;;  %v422_v53 = vshll.u32 %v338_v27, 16  ;;  %v340_v54 = vld [vmem:[%s4342_s28 + $0x20] sm:$0xf] }
  0x33   : > { %694 = vst.msk [vmem:[#allocation2 + $0x10] sm:$0xf] %vm276_vm0, %v382_v34  ;;  %v698_v40 = vsel %vm4432_vm7, %v383_v23, %v697_v35  ;;  %v705_v50 = vsel %vm4432_vm7, %v400_v42, %v704_v43  ;;  %703 = vst.msk [vmem:[#allocation2 + $0x1c] sm:$0xf] %vm276_vm0, %v399_v49  ;;  %v415_v56 = vor.u32 %v413_v31, %v412_v48  ;;  %v417_v57 = vrot.slane %v412_v48, 4 }
  0x34   : > { %699 = vst [vmem:[#allocation2 + $0x14] sm:$0x1] %v698_v40  ;;  %706 = vst [vmem:[#allocation2 + $0x20] sm:$0x1] %v705_v50  ;;  %v427_v58 = vshrl.u32 %v339_v32, 16  ;;  %v421_v60 = vrot.slane %v419_v52, 7 }
  0x35   : > { %v341_v59 = vld [vmem:[%s4342_s28 + $0x24] sm:$0xf]  ;;  %709 = vst [vmem:[#allocation2 + $0x24] sm:$0xf] %v708_v55  ;;  %v714_v61 = vld [vmem:[#allocation2 + $0x30] sm:$0xf]  ;;  %v416_v1 = vsel %vm4425_vm6, %v408_v47, %v415_v56  ;;  %v712_v2 = vsel %vm4432_vm7, %v417_v57, %v711_v51 }
  0x36   : > { %v430_v62 = vshll.u32 %v339_v32, 16  ;;  %v436_v63 = vshrl.u32 %v340_v54, 16  ;;  %v439_v0 = vshll.u32 %v340_v54, 16  ;;  %v429_v3 = vrot.slane %v427_v58, 7  ;;  %v718_v4 = vld [vmem:[#allocation2 + $0x38] sm:$0x1] }
  0x37   : > { %v444_v5 = vshrl.u32 %v341_v59, 16  ;;  %v342_v6 = vld [vmem:[%s4342_s28 + $0x28] sm:$0xf]  ;;  %710 = vst.msk [vmem:[#allocation2 + $0x28] sm:$0xf] %vm276_vm0, %v416_v1  ;;  %v424_v7 = vor.u32 %v422_v53, %v421_v60  ;;  %v425_v8 = vrot.slane %v421_v60, 4 }
  0x38   : > { %713 = vst [vmem:[#allocation2 + $0x2c] sm:$0x1] %v712_v2  ;;  %v438_v9 = vrot.slane %v436_v63, 7  ;;  %v721_v11 = vld [vmem:[#allocation2 + $0x3c] sm:$0xf]  ;;  %v447_v12 = vshll.u32 %v341_v59, 16  ;;  %v432_v13 = vor.u32 %v430_v62, %v429_v3 }
  0x39   : > { %v434_v14 = vrot.slane %v429_v3, 4  ;;  %v446_v15 = vrot.slane %v444_v5, 7  ;;  %v453_v16 = vshrl.u32 %v342_v6, 16  ;;  %v343_v18 = vld [vmem:[%s4342_s28 + $0x2c] sm:$0xf]  ;;  %v715_v19 = vsel %vm4419_vm5, %v424_v7, %v714_v61 }
  0x3a   : > { %v441_v20 = vor.u32 %v439_v0, %v438_v9  ;;  %v442_v21 = vrot.slane %v438_v9, 4  ;;  %v725_v22 = vld [vmem:[#allocation2 + $0x44] sm:$0x1]  ;;  %v456_v23 = vshll.u32 %v342_v6, 16  ;;  %v344_v25 = vld [vmem:[%s4342_s28 + $0x30] sm:$0xf]  ;;  %v433_v26 = vsel %vm4425_vm6, %v425_v8, %v432_v13 }
  0x3b   : > { %716 = vst [vmem:[#allocation2 + $0x30] sm:$0xf] %v715_v19  ;;  %v719_v27 = vsel %vm4432_vm7, %v434_v14, %v718_v4  ;;  %v449_v28 = vor.u32 %v447_v12, %v446_v15  ;;  %v451_v29 = vrot.slane %v446_v15, 4  ;;  %v345_v30 = vld [vmem:[%s4342_s28 + $0x34] sm:$0xf]  ;;  %v455_v32 = vrot.slane %v453_v16, 7 }
  0x3c   : > { %717 = vst.msk [vmem:[#allocation2 + $0x34] sm:$0xf] %vm276_vm0, %v433_v26  ;;  %720 = vst [vmem:[#allocation2 + $0x38] sm:$0x1] %v719_v27  ;;  %v722_v31 = vsel %vm4419_vm5, %v441_v20, %v721_v11  ;;  %v461_v33 = vshrl.u32 %v343_v18, 16  ;;  %v464_v34 = vshll.u32 %v343_v18, 16 }
  0x3d   : > { %v346_v35 = vld [vmem:[%s4342_s28 + $0x38] sm:$0xf]  ;;  %723 = vst [vmem:[#allocation2 + $0x3c] sm:$0xf] %v722_v31  ;;  %v450_v36 = vsel %vm4425_vm6, %v442_v21, %v449_v28  ;;  %v726_v37 = vsel %vm4432_vm7, %v451_v29, %v725_v22  ;;  %v728_v38 = vld [vmem:[#allocation2 + $0x48] sm:$0xf]  ;;  %v458_v41 = vor.u32 %v456_v23, %v455_v32 }
  0x3e   : > { %v470_v39 = vshrl.u32 %v344_v25, 16  ;;  %v473_v40 = vshll.u32 %v344_v25, 16  ;;  %724 = vst.msk [vmem:[#allocation2 + $0x40] sm:$0xf] %vm276_vm0, %v450_v36  ;;  %727 = vst [vmem:[#allocation2 + $0x44] sm:$0x1] %v726_v37 }
  0x3f   : > { %v459_v42 = vrot.slane %v455_v32, 4  ;;  %v463_v43 = vrot.slane %v461_v33, 7  ;;  %v478_v44 = vshrl.u32 %v345_v30, 16  ;;  %v347_v45 = vld [vmem:[%s4342_s28 + $0x3c] sm:$0xf]  ;;  %v481_v48 = vshll.u32 %v345_v30, 16 }
  0x40   : > { %v732_v46 = vld [vmem:[#allocation2 + $0x50] sm:$0x1]  ;;  %v472_v47 = vrot.slane %v470_v39, 7  ;;  %v487_v49 = vshrl.u32 %v346_v35, 16  ;;  %v490_v50 = vshll.u32 %v346_v35, 16  ;;  %v729_v51 = vsel %vm4419_vm5, %v458_v41, %v728_v38 }
  0x41   : > { %v466_v52 = vor.u32 %v464_v34, %v463_v43  ;;  %v468_v53 = vrot.slane %v463_v43, 4  ;;  %v735_v54 = vld [vmem:[#allocation2 + $0x54] sm:$0xf]  ;;  %v480_v55 = vrot.slane %v478_v44, 7  ;;  %v739_v56 = vld [vmem:[#allocation2 + $0x5c] sm:$0x1] }
  0x42   : > { %730 = vst [vmem:[#allocation2 + $0x48] sm:$0xf] %v729_v51  ;;  %v475_v57 = vor.u32 %v473_v40, %v472_v47  ;;  %v476_v58 = vrot.slane %v472_v47, 4  ;;  %v489_v59 = vrot.slane %v487_v49, 7  ;;  %v495_v60 = vshrl.u32 %v347_v45, 16 }
  0x43   : > { %v348_v61 = vld [vmem:[%s4342_s28 + $0x40] sm:$0xf]  ;;  %v467_v62 = vsel %vm4425_vm6, %v459_v42, %v466_v52  ;;  %v733_v63 = vsel %vm4432_vm7, %v468_v53, %v732_v46  ;;  %v483_v0 = vor.u32 %v481_v48, %v480_v55  ;;  %v485_v1 = vrot.slane %v480_v55, 4  ;;  %v349_v3 = vld [vmem:[%s4342_s28 + $0x44] sm:$0xf] }
  0x44   : > { %v742_v2 = vld [vmem:[#allocation2 + $0x60] sm:$0xf]  ;;  %731 = vst.msk [vmem:[#allocation2 + $0x4c] sm:$0xf] %vm276_vm0, %v467_v62  ;;  %734 = vst [vmem:[#allocation2 + $0x50] sm:$0x1] %v733_v63  ;;  %v736_v4 = vsel %vm4419_vm5, %v475_v57, %v735_v54  ;;  %v492_v5 = vor.u32 %v490_v50, %v489_v59 }
  0x45   : > { %v493_v6 = vrot.slane %v489_v59, 4  ;;  %v497_v7 = vrot.slane %v495_v60, 7  ;;  %v350_v8 = vld [vmem:[%s4342_s28 + $0x48] sm:$0xf]  ;;  %737 = vst [vmem:[#allocation2 + $0x54] sm:$0xf] %v736_v4  ;;  %v484_v9 = vsel %vm4425_vm6, %v476_v58, %v483_v0  ;;  %v740_v11 = vsel %vm4432_vm7, %v485_v1, %v739_v56 }
  0x46   : > { %v498_v12 = vshll.u32 %v347_v45, 16  ;;  %v746_v13 = vld [vmem:[#allocation2 + $0x68] sm:$0x1]  ;;  %v504_v14 = vshrl.u32 %v348_v61, 16  ;;  %v351_v15 = vld [vmem:[%s4342_s28 + $0x4c] sm:$0xf]  ;;  %v743_v16 = vsel %vm4419_vm5, %v492_v5, %v742_v2 }
  0x47   : > { %738 = vst.msk [vmem:[#allocation2 + $0x58] sm:$0xf] %vm276_vm0, %v484_v9  ;;  %741 = vst [vmem:[#allocation2 + $0x5c] sm:$0x1] %v740_v11  ;;  %v502_v18 = vrot.slane %v497_v7, 4  ;;  %v507_v19 = vshll.u32 %v348_v61, 16 }
  0x48   : > { %v512_v20 = vshrl.u32 %v349_v3, 16  ;;  %744 = vst [vmem:[#allocation2 + $0x60] sm:$0xf] %v743_v16  ;;  %v500_v21 = vor.u32 %v498_v12, %v497_v7  ;;  %v506_v22 = vrot.slane %v504_v14, 7  ;;  %v749_v23 = vld [vmem:[#allocation2 + $0x6c] sm:$0xf] }
  0x49   : > { %v515_v25 = vshll.u32 %v349_v3, 16  ;;  %v521_v26 = vshrl.u32 %v350_v8, 16  ;;  %v747_v27 = vsel %vm4432_vm7, %v502_v18, %v746_v13  ;;  %v524_v29 = vshll.u32 %v350_v8, 16  ;;  %v352_v31 = vld [vmem:[%s4342_s28 + $0x50] sm:$0xf] }
  0x4a   : > { %v514_v28 = vrot.slane %v512_v20, 7  ;;  %v529_v30 = vshrl.u32 %v351_v15, 16  ;;  %v501_v32 = vsel %vm4425_vm6, %v493_v6, %v500_v21  ;;  %748 = vst [vmem:[#allocation2 + $0x68] sm:$0x1] %v747_v27  ;;  %v509_v33 = vor.u32 %v507_v19, %v506_v22  ;;  %v753_v35 = vld [vmem:[#allocation2 + $0x74] sm:$0x1] }
  0x4b   : > { %v510_v34 = vrot.slane %v506_v22, 4  ;;  %v523_v36 = vrot.slane %v521_v26, 7  ;;  %v756_v37 = vld [vmem:[#allocation2 + $0x78] sm:$0xf]  ;;  %745 = vst.msk [vmem:[#allocation2 + $0x64] sm:$0xf] %vm276_vm0, %v501_v32 }
  0x4c   : > { %v517_v38 = vor.u32 %v515_v25, %v514_v28  ;;  %v519_v39 = vrot.slane %v514_v28, 4  ;;  %v531_v40 = vrot.slane %v529_v30, 7  ;;  %v532_v41 = vshll.u32 %v351_v15, 16  ;;  %v353_v42 = vld [vmem:[%s4342_s28 + $0x54] sm:$0xf] }
  0x4d   : > { %v750_v43 = vsel %vm4419_vm5, %v509_v33, %v749_v23  ;;  %v526_v44 = vor.u32 %v524_v29, %v523_v36  ;;  %v527_v45 = vrot.slane %v523_v36, 4  ;;  %v760_v46 = vld [vmem:[#allocation2 + $0x80] sm:$0x1]  ;;  %v538_v47 = vshrl.u32 %v352_v31, 16  ;;  %v354_v48 = vld [vmem:[%s4342_s28 + $0x58] sm:$0xf] }
  0x4e   : > { %751 = vst [vmem:[#allocation2 + $0x6c] sm:$0xf] %v750_v43  ;;  %v518_v49 = vsel %vm4425_vm6, %v510_v34, %v517_v38  ;;  %v754_v50 = vsel %vm4432_vm7, %v519_v39, %v753_v35  ;;  %v534_v51 = vor.u32 %v532_v41, %v531_v40  ;;  %v536_v52 = vrot.slane %v531_v40, 4  ;;  %v355_v53 = vld [vmem:[%s4342_s28 + $0x5c] sm:$0xf] }
  0x4f   : > { %752 = vst.msk [vmem:[#allocation2 + $0x70] sm:$0xf] %vm276_vm0, %v518_v49  ;;  %755 = vst [vmem:[#allocation2 + $0x74] sm:$0x1] %v754_v50  ;;  %v757_v54 = vsel %vm4419_vm5, %v526_v44, %v756_v37  ;;  %v540_v55 = vrot.slane %v538_v47, 7  ;;  %v541_v56 = vshll.u32 %v352_v31, 16 }
  0x50   : > { %v546_v57 = vshrl.u32 %v353_v42, 16  ;;  %v356_v58 = vld [vmem:[%s4342_s28 + $0x60] sm:$0xf]  ;;  %758 = vst [vmem:[#allocation2 + $0x78] sm:$0xf] %v757_v54  ;;  %v535_v59 = vsel %vm4425_vm6, %v527_v45, %v534_v51  ;;  %v761_v60 = vsel %vm4432_vm7, %v536_v52, %v760_v46  ;;  %v549_v62 = vshll.u32 %v353_v42, 16 }
  0x51   : > { %v763_v61 = vld [vmem:[#allocation2 + $0x84] sm:$0xf]  ;;  %v555_v63 = vshrl.u32 %v354_v48, 16  ;;  %759 = vst.msk [vmem:[#allocation2 + $0x7c] sm:$0xf] %vm276_vm0, %v535_v59  ;;  %v543_v0 = vor.u32 %v541_v56, %v540_v55  ;;  %v544_v1 = vrot.slane %v540_v55, 4 }
  0x52   : > { %762 = vst [vmem:[#allocation2 + $0x80] sm:$0x1] %v761_v60  ;;  %v548_v2 = vrot.slane %v546_v57, 7  ;;  %v767_v3 = vld [vmem:[#allocation2 + $0x8c] sm:$0x1]  ;;  %v558_v4 = vshll.u32 %v354_v48, 16 }
  0x53   : > { %v557_v5 = vrot.slane %v555_v63, 7  ;;  %v563_v6 = vshrl.u32 %v355_v53, 16  ;;  %v566_v7 = vshll.u32 %v355_v53, 16  ;;  %v572_v8 = vshrl.u32 %v356_v58, 16  ;;  %v357_v9 = vld [vmem:[%s4342_s28 + $0x64] sm:$0xf] }
  0x54   : > { %v764_v11 = vsel %vm4419_vm5, %v543_v0, %v763_v61  ;;  %v551_v12 = vor.u32 %v549_v62, %v548_v2  ;;  %v553_v13 = vrot.slane %v548_v2, 4  ;;  %v770_v14 = vld [vmem:[#allocation2 + $0x90] sm:$0xf]  ;;  %v774_v15 = vld [vmem:[#allocation2 + $0x98] sm:$0x1]  ;;  %v575_v16 = vshll.u32 %v356_v58, 16 }
  0x55   : > { %765 = vst [vmem:[#allocation2 + $0x84] sm:$0xf] %v764_v11  ;;  %v560_v18 = vor.u32 %v558_v4, %v557_v5  ;;  %v561_v19 = vrot.slane %v557_v5, 4  ;;  %v565_v20 = vrot.slane %v563_v6, 7  ;;  %v574_v21 = vrot.slane %v572_v8, 7 }
  0x56   : > { %v358_v22 = vld [vmem:[%s4342_s28 + $0x68] sm:$0xf]  ;;  %v552_v23 = vsel %vm4425_vm6, %v544_v1, %v551_v12  ;;  %v768_v25 = vsel %vm4432_vm7, %v553_v13, %v767_v3  ;;  %v777_v26 = vld [vmem:[#allocation2 + $0x9c] sm:$0xf]  ;;  %v580_v27 = vshrl.u32 %v357_v9, 16  ;;  %v583_v28 = vshll.u32 %v357_v9, 16 }
  0x57   : > { %v359_v29 = vld [vmem:[%s4342_s28 + $0x6c] sm:$0xf]  ;;  %766 = vst.msk [vmem:[#allocation2 + $0x88] sm:$0xf] %vm276_vm0, %v552_v23  ;;  %769 = vst [vmem:[#allocation2 + $0x8c] sm:$0x1] %v768_v25  ;;  %v771_v30 = vsel %vm4419_vm5, %v560_v18, %v770_v14  ;;  %v568_v31 = vor.u32 %v566_v7, %v565_v20  ;;  %v577_v33 = vor.u32 %v575_v16, %v574_v21 }
  0x58   : > { %v570_v32 = vrot.slane %v565_v20, 4  ;;  %v360_v34 = vld [vmem:[%s4342_s28 + $0x70] sm:$0xf]  ;;  %772 = vst [vmem:[#allocation2 + $0x90] sm:$0xf] %v771_v30  ;;  %v578_v35 = vrot.slane %v574_v21, 4 }
  0x59   : > { %v582_v36 = vrot.slane %v580_v27, 7  ;;  %v589_v37 = vshrl.u32 %v358_v22, 16  ;;  %v592_v38 = vshll.u32 %v358_v22, 16  ;;  %v361_v39 = vld [vmem:[%s4342_s28 + $0x74] sm:$0xf]  ;;  %v569_v40 = vsel %vm4425_vm6, %v561_v19, %v568_v31 }
  0x5a   : > { %v775_v41 = vsel %vm4432_vm7, %v570_v32, %v774_v15  ;;  %v778_v42 = vsel %vm4419_vm5, %v577_v33, %v777_v26  ;;  %v781_v43 = vld [vmem:[#allocation2 + $0xa4] sm:$0x1]  ;;  %v597_v44 = vshrl.u32 %v359_v29, 16  ;;  %773 = vst.msk [vmem:[#allocation2 + $0x94] sm:$0xf] %vm276_vm0, %v569_v40  ;;  %v600_v49 = vshll.u32 %v359_v29, 16 }
  0x5b   : > { %776 = vst [vmem:[#allocation2 + $0x98] sm:$0x1] %v775_v41  ;;  %779 = vst [vmem:[#allocation2 + $0x9c] sm:$0xf] %v778_v42  ;;  %v585_v45 = vor.u32 %v583_v28, %v582_v36  ;;  %v587_v46 = vrot.slane %v582_v36, 4  ;;  %v591_v47 = vrot.slane %v589_v37, 7 }
  0x5c   : > { %v784_v48 = vld [vmem:[#allocation2 + $0xa8] sm:$0xf]  ;;  %v599_v50 = vrot.slane %v597_v44, 7  ;;  %v606_v51 = vshrl.u32 %v360_v34, 16  ;;  %v609_v52 = vshll.u32 %v360_v34, 16  ;;  %v614_v53 = vshrl.u32 %v361_v39, 16 }
  0x5d   : > { %v362_v54 = vld [vmem:[%s4342_s28 + $0x78] sm:$0xf]  ;;  %v586_v55 = vsel %vm4425_vm6, %v578_v35, %v585_v45  ;;  %v782_v56 = vsel %vm4432_vm7, %v587_v46, %v781_v43  ;;  %v594_v57 = vor.u32 %v592_v38, %v591_v47  ;;  %v595_v58 = vrot.slane %v591_v47, 4  ;;  %v788_v59 = vld [vmem:[#allocation2 + $0xb0] sm:$0x1] }
  0x5e   : > { %780 = vst.msk [vmem:[#allocation2 + $0xa0] sm:$0xf] %vm276_vm0, %v586_v55  ;;  %783 = vst [vmem:[#allocation2 + $0xa4] sm:$0x1] %v782_v56  ;;  %v602_v60 = vor.u32 %v600_v49, %v599_v50  ;;  %v604_v61 = vrot.slane %v599_v50, 4  ;;  %v608_v62 = vrot.slane %v606_v51, 7 }
  0x5f   : > { %v616_v63 = vrot.slane %v614_v53, 7  ;;  %v363_v0 = vld [vmem:[%s4342_s28 + $0x7c] sm:$0xf]  ;;  %v785_v1 = vsel %vm4419_vm5, %v594_v57, %v784_v48  ;;  %v791_v2 = vld [vmem:[#allocation2 + $0xb4] sm:$0xf]  ;;  %v617_v3 = vshll.u32 %v361_v39, 16 }
  0x60   : > { %v623_v4 = vshrl.u32 %v362_v54, 16  ;;  %v626_v5 = vshll.u32 %v362_v54, 16  ;;  %786 = vst [vmem:[#allocation2 + $0xa8] sm:$0xf] %v785_v1  ;;  %v603_v6 = vsel %vm4425_vm6, %v595_v58, %v602_v60  ;;  %v789_v7 = vsel %vm4432_vm7, %v604_v61, %v788_v59  ;;  %v795_v11 = vld [vmem:[#allocation2 + $0xbc] sm:$0x1] }
  0x61   : > { %v611_v8 = vor.u32 %v609_v52, %v608_v62  ;;  %v612_v9 = vrot.slane %v608_v62, 4  ;;  %787 = vst.msk [vmem:[#allocation2 + $0xac] sm:$0xf] %vm276_vm0, %v603_v6  ;;  %790 = vst [vmem:[#allocation2 + $0xb0] sm:$0x1] %v789_v7  ;;  %v619_v12 = vor.u32 %v617_v3, %v616_v63  ;;  %v621_v13 = vrot.slane %v616_v63, 4 }
  0x62   : > { %v625_v14 = vrot.slane %v623_v4, 7  ;;  %v631_v15 = vshrl.u32 %v363_v0, 16  ;;  %v798_v18 = vld [vmem:[#allocation2 + $0xc0] sm:$0xf]  ;;  %v634_v19 = vshll.u32 %v363_v0, 16 }
  0x63   : > { %v792_v16 = vsel %vm4419_vm5, %v611_v8, %v791_v2  ;;  %v620_v20 = vsel %vm4425_vm6, %v612_v9, %v619_v12  ;;  %v796_v21 = vsel %vm4432_vm7, %v621_v13, %v795_v11  ;;  %v802_v27 = vld [vmem:[#allocation2 + $0xc8] sm:$0x1] }
  0x64   : > { %793 = vst [vmem:[#allocation2 + $0xb4] sm:$0xf] %v792_v16  ;;  %v628_v22 = vor.u32 %v626_v5, %v625_v14  ;;  %794 = vst.msk [vmem:[#allocation2 + $0xb8] sm:$0xf] %vm276_vm0, %v620_v20  ;;  %v629_v23 = vrot.slane %v625_v14, 4  ;;  %v633_v25 = vrot.slane %v631_v15, 7 }
  0x65   : > { %797 = vst [vmem:[#allocation2 + $0xbc] sm:$0x1] %v796_v21 }
  0x66   : > { %v799_v26 = vsel %vm4419_vm5, %v628_v22, %v798_v18  ;;  %v636_v28 = vor.u32 %v634_v19, %v633_v25  ;;  %v638_v29 = vrot.slane %v633_v25, 4 }
  0x67   : > { %800 = vst [vmem:[#allocation2 + $0xc0] sm:$0xf] %v799_v26 }
  0x68   : > { %v637_v30 = vsel %vm4425_vm6, %v629_v23, %v636_v28  ;;  %v803_v31 = vsel %vm4432_vm7, %v638_v29, %v802_v27 }
  0x69   : > { %801 = vst.msk [vmem:[#allocation2 + $0xc4] sm:$0xf] %vm276_vm0, %v637_v30  ;;  %804 = vst [vmem:[#allocation2 + $0xc8] sm:$0x1] %v803_v31 }
  0x6a PF: > { %v3513_v10 = vld [vmem:[%s5609_s3 + $0x2] sm:$0x3]  ;;  %vm1080_vm8 = vcmask 1041408   ;;  %v3614_v32 = vld [vmem:[%s5609_s3 + $0x8] sm:$0x3]  ;;  %s3760_s25 = smul.u32 96, %s4256_s18 }
  0x6b   : > { %4150 = vmatprep.subr.msk.bf16.mxu1 %vm1080_vm8, %v3513_v10  ;;  %4154 = vmatprep.subr.msk.bf16.mxu0 %vm1080_vm8, %v3614_v32  ;;  %v1082_v17 = vsel %vm1080_vm8, %v3513_v10, 0  ;;  %v4585_v24 = vsel %vm1080_vm8, %v3614_v32, 0  ;;  %vm834_vm9 = vsmask.f32 3328  ;;  %vm835_vm10 = vsmask.f32 7440 }
  0x6c   : > { %5638 = vst [vmem:[#allocation3_spill] sm:$0xff] %v4585_v24  ;;  %3859 = vmatpush3.bf16.msra.mxu1 %v1082_v17  ;;  %3931 = vmatpush3.bf16.msra.mxu0 %v4585_v24  ;;  %v4591_v33 = vld [vmem:[%s5609_s3] sm:$0x3]  ;;  %v4596_v34 = vld [vmem:[%s5609_s3 + $0xa] sm:$0x3]  ;;  %s4598_s29 = scalar_lea.vmem [#allocation2], %s3760_s25  ;;  %vm4640_vm11 = vmor %vm834_vm9, %vm835_vm10 }
  0x6d   : > { %4151 = vmatprep.subr.msk.bf16.mxu1 %vm1080_vm8, %v4591_v33  ;;  %4156 = vmatprep.subr.msk.bf16.mxu0 %vm1080_vm8, %v4596_v34  ;;  %vm1055_vm12 = vcmask 31744   ;;  %v1246_v32 = vsel %vm1080_vm8, %v4591_v33, 0  ;;  %vm1353_vm13 = vcmask 1042432   ;;  %vm1354_vm14 = vcmask 1046532  }
  0x6e   : > { %vm4797_vm15 = vmor %vm1353_vm13, %vm1354_vm14  ;;  %vm3238_vm0 = vcmask 60416   ;;  %vm3255_vm1 = vcmask 64512   ;;  %vm3293_vm2 = vcmask 57344  }
  0x70   : > { %v4601_v35 = vld [vmem:[%s4598_s29] sm:$0xf]  ;;  %v4604_v36 = vld [vmem:[%s4598_s29 + $0x4] sm:$0xf]  ;;  %v4607_v37 = vld [vmem:[%s4598_s29 + $0x8] sm:$0x1] }
  0x71   : > { %v838_v38 = vshrl.u32 %v4601_v35, 16  ;;  %v841_v39 = vshll.u32 %v4601_v35, 16  ;;  %v847_v40 = vshll.u32 %v4604_v36, 16  ;;  %v851_v41 = vshrl.u32 %v4604_v36, 16  ;;  %v4618_v42 = vld [vmem:[%s4598_s29 + $0xc] sm:$0xf] }
  0x72   : > { %v857_v43 = vshll.u32 %v4607_v37, 16  ;;  %v4622_v44 = vld [vmem:[%s4598_s29 + $0x10] sm:$0xf]  ;;  %v4625_v45 = vld [vmem:[%s4598_s29 + $0x14] sm:$0x1]  ;;  %v1789_v51 = vshrl.u32 %v4618_v42, 16 }
  0x73   : > { %v840_v46 = vrot.slane %v838_v38, 4  ;;  %v843_v47 = vrot.slane %v841_v39, 5  ;;  %v849_v48 = vrot.slane %v847_v40, 5  ;;  %v853_v49 = vrot.slane %v851_v41, 4  ;;  %v4633_v58 = vld [vmem:[%s4598_s29 + $0xc] sm:$0xf] }
  0x74   : > { %v859_v50 = vrot.slane %v857_v43, 5  ;;  %v1792_v52 = vshll.u32 %v4618_v42, 16  ;;  %v1798_v53 = vshll.u32 %v4622_v44, 16  ;;  %v1802_v56 = vshrl.u32 %v4622_v44, 16  ;;  %v4636_v59 = vld [vmem:[%s4598_s29 + $0x10] sm:$0xf] }
  0x75   : > { %v844_v54 = vor.u32 %v843_v47, %v840_v46  ;;  %v854_v55 = vor.u32 %v853_v49, %v849_v48  ;;  %v1808_v57 = vshll.u32 %v4625_v45, 16  ;;  %v1791_v61 = vrot.slane %v1789_v51, 4  ;;  %v4645_v5 = vld [vmem:[%s4598_s29 + $0x14] sm:$0x1]  ;;  %v4657_v23 = vld [vmem:[%s4598_s29 + $0x18] sm:$0xf] }
  0x76   : > { %v1794_v62 = vrot.slane %v1792_v52, 5  ;;  %v1800_v63 = vrot.slane %v1798_v53, 5  ;;  %v1804_v2 = vrot.slane %v1802_v56, 4  ;;  %v862_v6 = vshrl.u32 %v4633_v58, 16  ;;  %v4664_v28 = vld [vmem:[%s4598_s29 + $0x1c] sm:$0xf] }
  0x77   : > { %v845_v0 = vrot.slane %v844_v54, 4  ;;  %v855_v1 = vrot.slane %v854_v55, 4  ;;  %v1810_v3 = vrot.slane %v1808_v57, 5  ;;  %v865_v7 = vshll.u32 %v4633_v58, 16  ;;  %v4667_v29 = vld [vmem:[%s4598_s29 + $0x20] sm:$0x1] }
  0x78   : > { %v1795_v4 = vor.u32 %v1794_v62, %v1791_v61  ;;  %v871_v8 = vshll.u32 %v4636_v59, 16  ;;  %v1805_v12 = vor.u32 %v1804_v2, %v1800_v63  ;;  %v875_v13 = vshrl.u32 %v4636_v59, 16  ;;  %v4676_v41 = vld [vmem:[%s4598_s29 + $0x18] sm:$0xf]  ;;  %v4682_v49 = vld [vmem:[%s4598_s29 + $0x1c] sm:$0xf] }
  0x79   : > { %v850_v9 = vsel %vm4640_vm11, %v845_v0, %v849_v48  ;;  %v860_v11 = vsel %vm4640_vm11, %v855_v1, %v859_v50  ;;  %v864_v16 = vrot.slane %v862_v6, 4  ;;  %v867_v18 = vrot.slane %v865_v7, 5  ;;  %v4689_v53 = vld [vmem:[%s4598_s29 + $0x20] sm:$0x1]  ;;  %v4694_v61 = vld [vmem:[%s4598_s29 + $0x24] sm:$0xf] }
  0x7a   : > { %v3514_v14 = vcombine.low %v850_v9, %v860_v11  ;;  %v1796_v15 = vrot.slane %v1795_v4, 4  ;;  %v1806_v19 = vrot.slane %v1805_v12, 4  ;;  %v873_v20 = vrot.slane %v871_v8, 5  ;;  %v4706_v11 = vld [vmem:[%s4598_s29 + $0x28] sm:$0xf] }
  0x7b   : > { %v877_v21 = vrot.slane %v875_v13, 4  ;;  %v881_v22 = vshll.u32 %v4645_v5, 16  ;;  %v2159_v26 = vrot.slane %v4625_v45, 5  ;;  %v868_v27 = vor.u32 %v867_v18, %v864_v16  ;;  %v4710_v16 = vld [vmem:[%s4598_s29 + $0x2c] sm:$0x1] }
  0x7c   : > { %3860 = vmatprep.mubr.msk.bf16.mxu1 %vm1055_vm12, %v3514_v14  ;;  %v1801_v25 = vsel %vm4640_vm11, %v1796_v15, %v1800_v63  ;;  %v1811_v30 = vsel %vm4640_vm11, %v1806_v19, %v1810_v3  ;;  %v1813_v39 = vshrl.u32 %v4657_v23, 16  ;;  %v1816_v40 = vshll.u32 %v4657_v23, 16 }
  0x7d   : > { %v878_v31 = vor.u32 %v877_v21, %v873_v20  ;;  %v883_v10 = vrot.slane %v881_v22, 5  ;;  %v3615_v17 = vcombine.low %v1801_v25, %v1811_v30  ;;  %v869_v38 = vrot.slane %v868_v27, 4  ;;  %v4715_v22 = vld [vmem:[%s4598_s29 + $0x24] sm:$0xf] }
  0x7e   : > { %v1822_v46 = vshll.u32 %v4664_v28, 16  ;;  %v1826_v47 = vshrl.u32 %v4664_v28, 16  ;;  %v1832_v48 = vshll.u32 %v4667_v29, 16  ;;  %v1815_v50 = vrot.slane %v1813_v39, 4  ;;  %v4724_v39 = vld [vmem:[%s4598_s29 + $0x28] sm:$0xf] }
  0x7f   : > { %v879_v43 = vrot.slane %v878_v31, 4  ;;  %3932 = vmatprep.mubr.msk.bf16.mxu0 %vm1055_vm12, %v3615_v17  ;;  %v874_v33 = vsel %vm4640_vm11, %v869_v38, %v873_v20  ;;  %v1818_v51 = vrot.slane %v1816_v40, 5  ;;  %v2163_v52 = vrot.slane %v4664_v28, 5 }
  0x80   : > { %v1824_v55 = vrot.slane %v1822_v46, 5  ;;  %v1828_v56 = vrot.slane %v1826_v47, 4  ;;  %v1834_v57 = vrot.slane %v1832_v48, 5  ;;  %v2166_v0 = vrot.slane %v4667_v29, 5  ;;  %v4730_v48 = vld [vmem:[%s5609_s3 + $0xc] sm:$0x3] }
  0x81   : > { %v884_v54 = vsel %vm4640_vm11, %v879_v43, %v883_v10  ;;  %v1819_v63 = vor.u32 %v1818_v51, %v1815_v50  ;;  %v2261_v1 = vsel %vm1080_vm8, %v4596_v34, 0  ;;  %v886_v3 = vshrl.u32 %v4676_v41, 16 }
  0x82   : > { %v3515_v62 = vcombine.low %v874_v33, %v884_v54  ;;  %v1829_v2 = vor.u32 %v1828_v56, %v1824_v55  ;;  %v889_v4 = vshll.u32 %v4676_v41, 16  ;;  %v895_v6 = vshll.u32 %v4682_v49, 16  ;;  %v4734_v54 = vld [vmem:[%s4598_s29 + $0x2c] sm:$0x1] }
  0x83   : > { %v1820_v7 = vrot.slane %v1819_v63, 4  ;;  %v899_v8 = vshrl.u32 %v4682_v49, 16  ;;  %v905_v9 = vshll.u32 %v4689_v53, 16  ;;  %v1837_v34 = vshrl.u32 %v4694_v61, 16 }
  0x84   : > { %3861 = vmatmul.mubr.msk.bf16.vlgmr.msra.gmra.mrb[0].mxu1 %vm1055_vm12, %v3515_v62  ;;  %v1830_v12 = vrot.slane %v1829_v2, 4  ;;  %v888_v13 = vrot.slane %v886_v3, 4  ;;  %v891_v14 = vrot.slane %v889_v4, 5  ;;  %v897_v15 = vrot.slane %v895_v6, 5  ;;  %v4741_v2 = vld [vmem:[%s4598_s29 + $0x30] sm:$0xf] }
  0x85   : > { %3877 = vmatpush3.bf16.msra.mxu1 %v1246_v32  ;;  %v1825_v18 = vsel %vm4640_vm11, %v1820_v7, %v1824_v55  ;;  %v901_v19 = vrot.slane %v899_v8, 4  ;;  %v907_v20 = vrot.slane %v905_v9, 5  ;;  %v1839_v21 = vrot.slane %v1837_v34, 4  ;;  %v4746_v3 = vld [vmem:[%s5609_s3 + $0x4] sm:$0x3] }
  0x86   : > { %v1835_v25 = vsel %vm4640_vm11, %v1830_v12, %v1834_v57  ;;  %v892_v27 = vor.u32 %v891_v14, %v888_v13  ;;  %v1840_v30 = vshll.u32 %v4694_v61, 16  ;;  %v1846_v31 = vshll.u32 %v4706_v11, 16  ;;  %v4752_v8 = vld [vmem:[%s4598_s29 + $0x34] sm:$0xf]  ;;  %4152 = vmatprep.subr.msk.bf16.mxu1 %vm1080_vm8, %v4746_v3 }
  0x87   : > { %v3616_v10 = vcombine.low %v1825_v18, %v1835_v25  ;;  %v902_v32 = vor.u32 %v901_v19, %v897_v15  ;;  %v1850_v17 = vshrl.u32 %v4706_v11, 16  ;;  %v1856_v38 = vshll.u32 %v4710_v16, 16  ;;  %v4760_v19 = vld [vmem:[%s4598_s29 + $0x38] sm:$0x1] }
  0x88   : > { %v893_v40 = vrot.slane %v892_v27, 4  ;;  %v1842_v43 = vrot.slane %v1840_v30, 5  ;;  %v1848_v46 = vrot.slane %v1846_v31, 5  ;;  %v910_v47 = vshrl.u32 %v4715_v22, 16  ;;  %v4769_v31 = vld [vmem:[%s4598_s29 + $0x30] sm:$0xf] }
  0x89   : > { %3933 = vmatmul.mubr.msk.bf16.vlgmr.msra.gmra.mrb[0].mxu0 %vm1055_vm12, %v3616_v10  ;;  %v903_v33 = vrot.slane %v902_v32, 4  ;;  %v1852_v50 = vrot.slane %v1850_v17, 4  ;;  %v1858_v51 = vrot.slane %v1856_v38, 5  ;;  %v913_v55 = vshll.u32 %v4715_v22, 16 }
  0x8a   : > { %3949 = vmatpush3.bf16.msra.mxu0 %v2261_v1  ;;  %v898_v56 = vsel %vm4640_vm11, %v893_v40, %v897_v15  ;;  %v1843_v57 = vor.u32 %v1842_v43, %v1839_v21  ;;  %v912_v62 = vrot.slane %v910_v47, 4  ;;  %v919_v63 = vshll.u32 %v4724_v39, 16  ;;  %v4774_v40 = vld [vmem:[%s4598_s29 + $0x34] sm:$0xf] }
  0x8b   : > { %v908_v4 = vsel %vm4640_vm11, %v903_v33, %v907_v20  ;;  %v1853_v6 = vor.u32 %v1852_v50, %v1848_v46  ;;  %v915_v1 = vrot.slane %v913_v55, 5  ;;  %v923_v7 = vshrl.u32 %v4724_v39, 16  ;;  %4157 = vmatprep.subr.msk.bf16.mxu0 %vm1080_vm8, %v4730_v48 }
  0x8c   : > { %v3516_v9 = vcombine.low %v898_v56, %v908_v4  ;;  %v1844_v34 = vrot.slane %v1843_v57, 4  ;;  %v921_v12 = vrot.slane %v919_v63, 5  ;;  %v929_v13 = vshll.u32 %v4734_v54, 16  ;;  %v4783_v63 = vld [vmem:[%s4598_s29 + $0x38] sm:$0x1] }
  0x8d   : > { %v1854_v14 = vrot.slane %v1853_v6, 4  ;;  %v916_v15 = vor.u32 %v915_v1, %v912_v62  ;;  %v925_v18 = vrot.slane %v923_v7, 4  ;;  %v1861_v20 = vshrl.u32 %v4741_v2, 16 }
  0x8e   : > { %3864 = vmatprep.mubr.msk.bf16.mxu1 %vm1055_vm12, %v3516_v9  ;;  %v1849_v21 = vsel %vm4640_vm11, %v1844_v34, %v1848_v46  ;;  %v931_v25 = vrot.slane %v929_v13, 5  ;;  %v1864_v27 = vshll.u32 %v4741_v2, 16  ;;  %v1870_v30 = vshll.u32 %v4752_v8, 16 }
  0x8f   : > { %v1859_v10 = vsel %vm4640_vm11, %v1854_v14, %v1858_v51  ;;  %v917_v32 = vrot.slane %v916_v15, 4  ;;  %v926_v17 = vor.u32 %v925_v18, %v921_v12  ;;  %v1863_v38 = vrot.slane %v1861_v20, 4 }
  0x90   : > { %v3617_v43 = vcombine.low %v1849_v21, %v1859_v10  ;;  %v1866_v47 = vrot.slane %v1864_v27, 5  ;;  %v1872_v33 = vrot.slane %v1870_v30, 5  ;;  %v1874_v46 = vshrl.u32 %v4752_v8, 16  ;;  %v4792_v27 = vld [vmem:[%s4598_s29 + $0x3c] sm:$0xf] }
  0x91   : > { %v922_v50 = vsel %vm4640_vm11, %v917_v32, %v921_v12  ;;  %v927_v55 = vrot.slane %v926_v17, 4  ;;  %v1880_v56 = vshll.u32 %v4760_v19, 16  ;;  %v934_v57 = vshrl.u32 %v4769_v31, 16 }
  0x92   : > { %3936 = vmatprep.mubr.msk.bf16.mxu0 %vm1055_vm12, %v3617_v43  ;;  %v1867_v51 = vor.u32 %v1866_v47, %v1863_v38  ;;  %v1876_v62 = vrot.slane %v1874_v46, 4  ;;  %v937_v4 = vshll.u32 %v4769_v31, 16  ;;  %v943_v6 = vshll.u32 %v4774_v40, 16  ;;  %v4804_v46 = vld [vmem:[%s4598_s29 + $0x40] sm:$0xf] }
  0x93   : > { %v932_v1 = vsel %vm4640_vm11, %v927_v55, %v931_v25  ;;  %v1882_v7 = vrot.slane %v1880_v56, 5  ;;  %v936_v9 = vrot.slane %v934_v57, 4  ;;  %v947_v34 = vshrl.u32 %v4774_v40, 16 }
  0x94   : > { %v3517_v12 = vcombine.low %v922_v50, %v932_v1  ;;  %v1868_v13 = vrot.slane %v1867_v51, 4  ;;  %v1877_v14 = vor.u32 %v1876_v62, %v1872_v33  ;;  %v939_v15 = vrot.slane %v937_v4, 5 }
  0x95   : > { %v945_v18 = vrot.slane %v943_v6, 5  ;;  %v949_v20 = vrot.slane %v947_v34, 4  ;;  %v953_v21 = vshll.u32 %v4783_v63, 16  ;;  %v3631_v43 = vrot.slane %v4618_v42, 9 }
  0x96   : > { %3865 = vmatmul.mubr.msk.bf16.gmra.mrb[4].mxu1 %vm1055_vm12, %v3517_v12  ;;  %v1873_v25 = vsel %vm4640_vm11, %v1868_v13, %v1872_v33  ;;  %v1878_v30 = vrot.slane %v1877_v14, 4  ;;  %v940_v10 = vor.u32 %v939_v15, %v936_v9  ;;  %v2156_v47 = vrot.slane %v4622_v44, 5  ;;  %v4809_v33 = vld [vmem:[%s4598_s29 + $0x44] sm:$0x1]  ;;  %v4828_v14 = vld [vmem:[%s4598_s29 + $0x48] sm:$0xf] }
  0x97   : > { %v950_v32 = vor.u32 %v949_v20, %v945_v18  ;;  %v955_v17 = vrot.slane %v953_v21, 5  ;;  %v958_v56 = vshrl.u32 %v4792_v27, 16  ;;  %v961_v57 = vshll.u32 %v4792_v27, 16 }
  0x98   : > { %v1883_v50 = vsel %vm4640_vm11, %v1878_v30, %v1882_v7  ;;  %v941_v55 = vrot.slane %v940_v10, 4  ;;  %v2157_v42 = vsel %vm4797_vm15, %v3631_v43, %v2156_v47  ;;  %v2158_v44 = vrot.slane %v2156_v47, 4  ;;  %v4841_v43 = vld [vmem:[%s4598_s29 + $0x50] sm:$0x1] }
  0x99   : > { %v3618_v51 = vcombine.low %v1873_v25, %v1883_v50  ;;  %v951_v62 = vrot.slane %v950_v32, 4  ;;  %v960_v6 = vrot.slane %v958_v56, 4  ;;  %v963_v1 = vrot.slane %v961_v57, 5  ;;  %v4831_v25 = vld [vmem:[%s4598_s29 + $0x4c] sm:$0xf] }
  0x9a   : > { %v946_v4 = vsel %vm4640_vm11, %v941_v55, %v945_v18  ;;  %v967_v7 = vshll.u32 %v4804_v46, 16  ;;  %v2160_v34 = vsel %vm4797_vm15, %v2158_v44, %v2159_v26  ;;  %v971_v12 = vshrl.u32 %v4804_v46, 16  ;;  %v4857_v44 = vld [vmem:[%s4598_s29 + $0x54] sm:$0xf] }
  0x9b   : > { %3937 = vmatmul.mubr.msk.bf16.gmra.mrb[4].mxu0 %vm1055_vm12, %v3618_v51  ;;  %v956_v9 = vsel %vm4640_vm11, %v951_v62, %v955_v17  ;;  %v977_v13 = vshll.u32 %v4809_v33, 16  ;;  %v3640_v18 = vcombine.low %v2157_v42, %v2160_v34  ;;  %v964_v20 = vor.u32 %v963_v1, %v960_v6  ;;  %v4862_v6 = vld [vmem:[%s4598_s29 + $0x58] sm:$0xf]  ;;  %v4870_v34 = vld [vmem:[%s5609_s3 + $0xe] sm:$0x3] }
  0x9c   : > { %v3518_v15 = vcombine.low %v946_v4, %v956_v9  ;;  %v969_v21 = vrot.slane %v967_v7, 5  ;;  %v973_v30 = vrot.slane %v971_v12, 4  ;;  %v3632_v45 = vrot.slane %v4657_v23, 9 }
  0x9d   : > { %v979_v10 = vrot.slane %v977_v13, 5  ;;  %v2165_v26 = vrot.slane %v2163_v52, 4  ;;  %3950 = vmatprep.mubr.msk.bf16.mxu0 %vm1055_vm12, %v3640_v18  ;;  %v965_v32 = vrot.slane %v964_v20, 4  ;;  %v2471_v17 = vsel %vm1080_vm8, %v4730_v48, 0  ;;  %v4876_v18 = vld [vmem:[%s4598_s29 + $0x5c] sm:$0x1] }
  0x9e   : > { %3868 = vmatprep.mubr.msk.bf16.mxu1 %vm1055_vm12, %v3518_v15  ;;  %v982_v47 = vshrl.u32 %v4828_v14, 16  ;;  %v985_v50 = vshll.u32 %v4828_v14, 16  ;;  %v974_v23 = vor.u32 %v973_v30, %v969_v21  ;;  %v2164_v55 = vsel %vm4797_vm15, %v3632_v45, %v2163_v52 }
  0x9f   : > { %v2167_v56 = vsel %vm4797_vm15, %v2165_v26, %v2166_v0  ;;  %v991_v48 = vshll.u32 %v4831_v25, 16  ;;  %v970_v57 = vsel %vm4640_vm11, %v965_v32, %v969_v21  ;;  %v995_v52 = vshrl.u32 %v4831_v25, 16 }
  0xa0   : > { %v3641_v51 = vcombine.low %v2164_v55, %v2167_v56  ;;  %v984_v62 = vrot.slane %v982_v47, 4  ;;  %v987_v42 = vrot.slane %v985_v50, 5  ;;  %v975_v28 = vrot.slane %v974_v23, 4  ;;  %v4893_v23 = vld [vmem:[%s4598_s29 + $0x3c] sm:$0xf] }
  0xa1   : > { %v993_v4 = vrot.slane %v991_v48, 5  ;;  %v1001_v29 = vshll.u32 %v4841_v43, 16  ;;  %v3633_v1 = vrot.slane %v4694_v61, 9  ;;  %v2170_v7 = vrot.slane %v4706_v11, 5 }
  0xa2   : > { %v988_v0 = vor.u32 %v987_v42, %v984_v62  ;;  %v2173_v9 = vrot.slane %v4710_v16, 5  ;;  %v980_v12 = vsel %vm4640_vm11, %v975_v28, %v979_v10  ;;  %v997_v13 = vrot.slane %v995_v52, 4  ;;  %v4901_v52 = vld [vmem:[%s4598_s29 + $0x44] sm:$0x1] }
  0xa3   : > { %3951 = vmatmul.mubr.msk.bf16.vlgmr.msra.gmra.mrb[0].mxu0 %vm1055_vm12, %v3641_v51  ;;  %v1003_v15 = vrot.slane %v1001_v29, 5  ;;  %v1006_v61 = vshrl.u32 %v4857_v44, 16  ;;  %v3519_v11 = vcombine.low %v970_v57, %v980_v12  ;;  %v2171_v20 = vsel %vm4797_vm15, %v3633_v1, %v2170_v7  ;;  %v4896_v51 = vld [vmem:[%s4598_s29 + $0x40] sm:$0xf]  ;;  %5643 = vst [vmem:[#allocation4_spill] sm:$0xff] %v4901_v52 }
  0xa4   : > { %3967 = vmatpush3.bf16.msra.mxu0 %v2471_v17  ;;  %v989_v16 = vrot.slane %v988_v0, 4  ;;  %v2172_v21 = vrot.slane %v2170_v7, 4  ;;  %v998_v30 = vor.u32 %v997_v13, %v993_v4  ;;  %v1009_v10 = vshll.u32 %v4857_v44, 16 }
  0xa5   : > { %v1008_v45 = vrot.slane %v1006_v61, 4  ;;  %v1015_v26 = vshll.u32 %v4862_v6, 16  ;;  %4158 = vmatprep.subr.msk.bf16.mxu0 %vm1080_vm8, %v4870_v34  ;;  %3869 = vmatmul.mubr.msk.bf16.gmra.mrb[8].mxu1 %vm1055_vm12, %v3519_v11  ;;  %v1019_v47 = vshrl.u32 %v4862_v6, 16  ;;  %v1025_v50 = vshll.u32 %v4876_v18, 16 }
  0xa6   : > { %v994_v32 = vsel %vm4640_vm11, %v989_v16, %v993_v4  ;;  %v2174_v17 = vsel %vm4797_vm15, %v2172_v21, %v2173_v9  ;;  %v999_v55 = vrot.slane %v998_v30, 4  ;;  %v1011_v48 = vrot.slane %v1009_v10, 5 }
  0xa7   : > { %v3642_v56 = vcombine.low %v2171_v20, %v2174_v17  ;;  %v1017_v57 = vrot.slane %v1015_v26, 5  ;;  %v1021_v62 = vrot.slane %v1019_v47, 4  ;;  %v1027_v42 = vrot.slane %v1025_v50, 5  ;;  %v4930_v17 = vld [vmem:[%s4598_s29 + $0x50] sm:$0x1] }
  0xa8   : > { %v3634_v28 = vrot.slane %v4741_v2, 9  ;;  %v2177_v4 = vrot.slane %v4752_v8, 5  ;;  %v1004_v29 = vsel %vm4640_vm11, %v999_v55, %v1003_v15  ;;  %v1012_v0 = vor.u32 %v1011_v48, %v1008_v45  ;;  %v4920_v45 = vld [vmem:[%s4598_s29 + $0x48] sm:$0xf]  ;;  %v4936_v55 = vld [vmem:[%s4598_s29 + $0x54] sm:$0xf] }
  0xa9   : > { %3954 = vmatprep.mubr.msk.bf16.mxu0 %vm1055_vm12, %v3642_v56  ;;  %v2180_v1 = vrot.slane %v4760_v19, 5  ;;  %v3635_v7 = vrot.slane %v4893_v23, 9  ;;  %v3520_v9 = vcombine.low %v994_v32, %v1004_v29  ;;  %v1022_v12 = vor.u32 %v1021_v62, %v1017_v57  ;;  %v4927_v32 = vld [vmem:[%s4598_s29 + $0x4c] sm:$0xf]  ;;  %5644 = vst [vmem:[#allocation5_spill] sm:$0xff] %v4936_v55 }
  0xaa   : > { %v2178_v2 = vsel %vm4797_vm15, %v3634_v28, %v2177_v4  ;;  %v2179_v8 = vrot.slane %v2177_v4, 4  ;;  %v1013_v13 = vrot.slane %v1012_v0, 4  ;;  %v2184_v61 = vrot.slane %v4896_v51, 5  ;;  %v4939_v56 = vld [vmem:[%s4598_s29 + $0x58] sm:$0xf] }
  0xab   : > { %v2187_v15 = vrot.slane %v4901_v52, 5  ;;  %3872 = vmatprep.mubr.msk.bf16.mxu1 %vm1055_vm12, %v3520_v9  ;;  %v1023_v19 = vrot.slane %v1022_v12, 4  ;;  %v3530_v26 = vcombine.low %v4601_v35, %v4604_v36  ;;  %5645 = vst [vmem:[#allocation6_spill] sm:$0xff] %v4939_v56  ;;  %v4942_v48 = vld [vmem:[%s4598_s29 + $0x5c] sm:$0x1]  ;;  %v3636_v62 = vrot.slane %v4920_v45, 9 }
  0xac   : > { %v2181_v11 = vsel %vm4797_vm15, %v2179_v8, %v2180_v1  ;;  %v1018_v16 = vsel %vm4640_vm11, %v1013_v13, %v1017_v57  ;;  %v2185_v21 = vsel %vm4797_vm15, %v3635_v7, %v2184_v61  ;;  %v2186_v30 = vrot.slane %v2184_v61, 4  ;;  %5646 = vst [vmem:[#allocation7_spill] sm:$0xff] %v4942_v48  ;;  %v4949_v4 = vld [vmem:[%s4598_s29 + $0x60] sm:$0xf]  ;;  %v4952_v29 = vld [vmem:[%s4598_s29 + $0x64] sm:$0xf] }
  0xad   : > { %v3643_v20 = vcombine.low %v2178_v2, %v2181_v11  ;;  %v1028_v10 = vsel %vm4640_vm11, %v1023_v19, %v1027_v42  ;;  %v2191_v42 = vrot.slane %v4927_v32, 5  ;;  %v2194_v28 = vrot.slane %v4930_v17, 5  ;;  %5647 = vst [vmem:[#allocation8_spill] sm:$0xff] %v4949_v4  ;;  %5648 = vst [vmem:[#allocation9_spill] sm:$0xff] %v4952_v29  ;;  %v4960_v9 = vld [vmem:[%s4598_s29 + $0x68] sm:$0x1] }
  0xae   : > { %v3521_v47 = vcombine.low %v1018_v16, %v1028_v10  ;;  %v2188_v50 = vsel %vm4797_vm15, %v2186_v30, %v2187_v15  ;;  %v3637_v0 = vrot.slane %v4936_v55, 9  ;;  %v2198_v1 = vrot.slane %v4939_v56, 5  ;;  %5649 = vst [vmem:[#allocation10_spill] sm:$0xff] %v4960_v9  ;;  %v5202_v55 = vld [vmem:[%s4598_s29 + $0x6c] sm:$0xf] }
  0xaf   : > { %3955 = vmatmul.mubr.msk.bf16.gmra.mrb[4].mxu0 %vm1055_vm12, %v3643_v20  ;;  %v3644_v57 = vcombine.low %v2185_v21, %v2188_v50  ;;  %v2201_v7 = vrot.slane %v4942_v48, 5  ;;  %v2192_v12 = vsel %vm4797_vm15, %v3636_v62, %v2191_v42  ;;  %v2193_v2 = vrot.slane %v2191_v42, 4  ;;  %v4983_v50 = vld [vmem:[%s5609_s3 + $0x6] sm:$0x3]  ;;  %v4994_v42 = vld [vmem:[%s4598_s29 + $0x18] sm:$0xf] }
  0xb0   : > { %3873 = vmatmul.mubr.msk.bf16.gmra.mrb[12].mxu1 %vm1055_vm12, %v3521_v47  ;;  %v2199_v8 = vsel %vm4797_vm15, %v3637_v0, %v2198_v1  ;;  %v2200_v13 = vrot.slane %v2198_v1, 4  ;;  %v2205_v61 = vrot.slane %v4952_v29, 5  ;;  %v3531_v15 = vcombine.low %v4633_v58, %v4636_v59 }
  0xb1   : > { %3878 = vmatprep.mubr.msk.bf16.mxu1 %vm1055_vm12, %v3530_v26  ;;  %3958 = vmatprep.mubr.msk.bf16.mxu0 %vm1055_vm12, %v3644_v57  ;;  %v2195_v19 = vsel %vm4797_vm15, %v2193_v2, %v2194_v28  ;;  %v3638_v11 = vrot.slane %v4949_v4, 9  ;;  %v2208_v16 = vrot.slane %v4960_v9, 5  ;;  %v3532_v21 = vcombine.low %v4676_v41, %v4682_v49  ;;  %v4997_v28 = vld [vmem:[%s4598_s29 + $0x1c] sm:$0xf]  ;;  %v5010_v2 = vld [vmem:[%s4598_s29 + $0x28] sm:$0xf] }
  0xb2   : > { %v3645_v20 = vcombine.low %v2192_v12, %v2195_v19  ;;  %v2202_v30 = vsel %vm4797_vm15, %v2200_v13, %v2201_v7  ;;  %v2207_v10 = vrot.slane %v2205_v61, 4  ;;  %v1463_v26 = vsel %vm1080_vm8, %v4746_v3, 0  ;;  %v5007_v12 = vld [vmem:[%s4598_s29 + $0x24] sm:$0xf] }
  0xb3   : > { %v3646_v47 = vcombine.low %v2199_v8, %v2202_v30  ;;  %v2206_v57 = vsel %vm4797_vm15, %v3638_v11, %v2205_v61  ;;  %v1365_v62 = vrot.slane %v4636_v59, 5  ;;  %v1368_v0 = vrot.slane %v4645_v5, 5  ;;  %5650 = vst [vmem:[#allocation11_spill] sm:$0xff] %v5007_v12  ;;  %v5030_v30 = vld [vmem:[%s4598_s29 + $0x30] sm:$0xf] }
  0xb4   : > { %v2209_v3 = vsel %vm4797_vm15, %v2207_v10, %v2208_v16  ;;  %v3533_v7 = vcombine.low %v4715_v22, %v4724_v39  ;;  %v3683_v59 = vcombine.low %v4994_v42, %v4997_v28  ;;  %v3547_v8 = vrot.slane %v4633_v58, 9  ;;  %5651 = vst [vmem:[#allocation12_spill] sm:$0xff] %v5030_v30 }
  0xb5   : > { %v3647_v1 = vcombine.low %v2206_v57, %v2209_v3  ;;  %v1361_v13 = vrot.slane %v4607_v37, 5  ;;  %v3534_v61 = vcombine.low %v4769_v31, %v4774_v40  ;;  %v2587_v5 = vshrl.u32 %v4994_v42, 16  ;;  %v5041_v57 = vld [vmem:[%s4598_s29 + $0x34] sm:$0xf]  ;;  %v5161_v37 = vld [vmem:[%s4598_s29 + $0x64] sm:$0xf] }
  0xb6   : > { %v2590_v19 = vshll.u32 %v4994_v42, 16  ;;  %v2600_v11 = vshrl.u32 %v4997_v28, 16  ;;  %v3535_v16 = vcombine.low %v4792_v27, %v4804_v46  ;;  %v3684_v58 = vcombine.low %v5007_v12, %v5010_v2 }
  0xb7   : > { %3959 = vmatmul.mubr.msk.bf16.gmra.mrb[8].mxu0 %vm1055_vm12, %v3645_v20  ;;  %v5023_v20 = vsel %vm4797_vm15, %v3547_v8, %v1365_v62  ;;  %v5659_v29 = vshrl.u32 %v5010_v2, 16 }
  0xb8   : > { %3879 = vmatmul.mubr.msk.bf16.vlgmr.msra.gmra.mrb[0].mxu1 %vm1055_vm12, %v3531_v15  ;;  %3962 = vmatprep.mubr.msk.bf16.mxu0 %vm1055_vm12, %v3646_v47  ;;  %v1367_v15 = vrot.slane %v1365_v62, 4  ;;  %v1372_v62 = vrot.slane %v4682_v49, 5  ;;  %v5066_v47 = vld [vmem:[%s4598_s29 + $0x3c] sm:$0xf] }
  0xb9   : > { %3895 = vmatpush3.bf16.msra.mxu1 %v1463_v26  ;;  %3882 = vmatprep.mubr.msk.bf16.mxu1 %vm1055_vm12, %v3532_v21  ;;  %v3548_v26 = vrot.slane %v4676_v41, 9  ;;  %v1382_v41 = vrot.slane %v4734_v54, 5  ;;  %5652 = vst [vmem:[#allocation13_spill] sm:$0xff] %v5066_v47  ;;  %v3550_v54 = vrot.slane %v4769_v31, 9  ;;  %v3537_v31 = vcombine.low %v4857_v44, %v4862_v6 }
  0xba   : > { %4153 = vmatprep.subr.msk.bf16.mxu1 %vm1080_vm8, %v4983_v50  ;;  %v5034_v10 = vsel %vm4797_vm15, %v1367_v15, %v1368_v0  ;;  %v2829_v0 = vsel %vm1080_vm8, %v4870_v34, 0  ;;  %v1374_v49 = vrot.slane %v1372_v62, 4  ;;  %v3685_v15 = vcombine.low %v5030_v30, %v5041_v57 }
  0xbb   : > { %v5056_v8 = vsel %vm4797_vm15, %v3548_v26, %v1372_v62  ;;  %v5078_v62 = vld [vmem:[%s4598_s29 + $0x40] sm:$0xf]  ;;  %v1386_v34 = vrot.slane %v4774_v40, 5  ;;  %v5111_v40 = vld [vmem:[%s4598_s29 + $0x48] sm:$0xf]  ;;  %v1393_v21 = vrot.slane %v4804_v46, 5 }
  0xbc   : > { %5653 = vst [vmem:[#allocation14_spill] sm:$0xff] %v5078_v62  ;;  %v2602_v46 = vrot.slane %v2600_v11, 4  ;;  %v1403_v11 = vrot.slane %v4841_v43, 5  ;;  %v2626_v56 = vrot.slane %v5659_v29, 4  ;;  %v5660_v29 = vshrl.u32 %v5030_v30, 16 }
  0xbd   : > { %v1388_v3 = vrot.slane %v1386_v34, 4 }
  0xbf   : > { %3963 = vmatmul.mubr.msk.bf16.gmra.mrb[12].mxu0 %vm1055_vm12, %v3647_v1  ;;  %v1375_v1 = vrot.slane %v4689_v53, 5  ;;  %v3549_v53 = vrot.slane %v4715_v22, 9 }
  0xc0   : > { %3883 = vmatmul.mubr.msk.bf16.gmra.mrb[4].mxu1 %vm1055_vm12, %v3533_v7  ;;  %3968 = vmatprep.mubr.msk.bf16.mxu0 %vm1055_vm12, %v3683_v59  ;;  %v3536_v7 = vcombine.low %v4828_v14, %v4831_v25  ;;  %v1358_v59 = vrot.slane %v4604_v36, 5  ;;  %v3546_v36 = vrot.slane %v4601_v35, 9  ;;  %v1389_v35 = vrot.slane %v4783_v63, 5 }
  0xc1   : > { %3886 = vmatprep.mubr.msk.bf16.mxu1 %vm1055_vm12, %v3534_v61  ;;  %v1379_v61 = vrot.slane %v4724_v39, 5  ;;  %v5071_v26 = vsel %vm4797_vm15, %v1374_v49, %v1375_v1  ;;  %v5098_v63 = vsel %vm4797_vm15, %v3550_v54, %v1386_v34  ;;  %v2589_v54 = vrot.slane %v2587_v5, 4  ;;  %v5117_v1 = vld [vmem:[%s4598_s29 + $0x4c] sm:$0xf] }
  0xc2   : > { %v1360_v49 = vrot.slane %v1358_v59, 4  ;;  %v3551_v34 = vrot.slane %v4792_v27, 9 }
  0xc3   : > { %v5075_v22 = vsel %vm4797_vm15, %v3549_v53, %v1379_v61  ;;  %v1381_v39 = vrot.slane %v1379_v61, 4  ;;  %v2596_v61 = vshll.u32 %v4997_v28, 16 }
  0xc4   : > { %v1362_v27 = vsel %vm4797_vm15, %v1360_v49, %v1361_v13  ;;  %v5143_v13 = vld [vmem:[%s4598_s29 + $0x54] sm:$0xf]  ;;  %v2620_v49 = vshll.u32 %v5010_v2, 16 }
  0xc5   : > { %v5088_v53 = vsel %vm4797_vm15, %v1381_v39, %v1382_v41  ;;  %v5103_v41 = vld [vmem:[%s5609_s3 + $0x10] sm:$0x3]  ;;  %v1359_v39 = vsel %vm4797_vm15, %v3546_v36, %v1358_v59  ;;  %v1396_v59 = vrot.slane %v4809_v33, 5  ;;  %5654 = vst [vmem:[#allocation15_spill] sm:$0xff] %v5143_v13  ;;  %v5158_v33 = vld [vmem:[%s4598_s29 + $0x60] sm:$0xf] }
  0xc6   : > { %v3555_v5 = vcombine.low %v1359_v39, %v1362_v27  ;;  %5655 = vst [vmem:[#allocation16_spill] sm:$0xff] %v5158_v33  ;;  %v3552_v39 = vrot.slane %v4828_v14, 9  ;;  %v5196_v4 = vrot.slane %v2620_v49, 5  ;;  %v1673_v49 = vsel %vm1080_vm8, %v4983_v50, 0 }
  0xc7   : > { %3969 = vmatmul.mubr.msk.bf16.vlgmr.msra.gmra.mrb[0].mxu0 %vm1055_vm12, %v3684_v58  ;;  %v3686_v58 = vcombine.low %v5066_v47, %v5078_v62  ;;  %v2668_v50 = vshll.u32 %v5078_v62, 16 }
  0xc8   : > { %3887 = vmatmul.mubr.msk.bf16.gmra.mrb[8].mxu1 %vm1055_vm12, %v3535_v16  ;;  %3985 = vmatpush3.bf16.msra.mxu0 %v2829_v0  ;;  %v5121_v16 = vsel %vm4797_vm15, %v1388_v3, %v1389_v35  ;;  %v2592_v0 = vrot.slane %v2590_v19, 5  ;;  %v5134_v3 = vrot.slane %v2596_v61, 5  ;;  %v5147_v19 = vsel %vm4797_vm15, %v3551_v34, %v1393_v21  ;;  %v5155_v61 = vld [vmem:[%s4598_s29 + $0x58] sm:$0xf] }
  0xc9   : > { %3890 = vmatprep.mubr.msk.bf16.mxu1 %vm1055_vm12, %v3536_v7  ;;  %3972 = vmatprep.mubr.msk.bf16.mxu0 %vm1055_vm12, %v3685_v15  ;;  %v5132_v7 = vld [vmem:[%s4598_s29 + $0x20] sm:$0x1]  ;;  %v1395_v15 = vrot.slane %v1393_v21, 4  ;;  %v3687_v35 = vcombine.low %v5111_v40, %v5117_v1  ;;  %v3688_v14 = vcombine.low %v5143_v13, %v5155_v61 }
  0xca   : > { %4159 = vmatprep.subr.msk.bf16.mxu0 %vm1080_vm8, %v5103_v41  ;;  %v2593_v34 = vor.u32 %v2592_v0, %v2589_v54  ;;  %v2606_v21 = vshll.u32 %v5132_v7, 16  ;;  %v2603_v9 = vor.u32 %v2602_v46, %v5134_v3  ;;  %v5176_v54 = vld [vmem:[%s4598_s29 + $0x2c] sm:$0x1]  ;;  %v5657_v0 = vshrl.u32 %v5007_v12, 16 }
  0xcb   : > { %v5166_v36 = vsel %vm4797_vm15, %v1395_v15, %v1396_v59  ;;  %5656 = vst [vmem:[#allocation17_spill] sm:$0xff] %v5176_v54  ;;  %v5658_v59 = vshll.u32 %v5007_v12, 16  ;;  %v1400_v46 = vrot.slane %v4831_v25, 5  ;;  %v2630_v43 = vshll.u32 %v5176_v54, 16 }
  0xcc   : > { %v2613_v48 = vrot.slane %v5657_v0, 4  ;;  %v2644_v0 = vshll.u32 %v5041_v57, 16  ;;  %v2608_v25 = vrot.slane %v2606_v21, 5  ;;  %v2604_v27 = vrot.slane %v2603_v9, 4  ;;  %v5211_v9 = vld [vmem:[%s4598_s29 + $0x70] sm:$0xf] }
  0xcd   : > { %v2616_v15 = vrot.slane %v5658_v59, 5  ;;  %v2594_v59 = vrot.slane %v2593_v34, 4  ;;  %v3553_v34 = vrot.slane %v4857_v44, 9  ;;  %v1407_v21 = vrot.slane %v4862_v6, 5 }
  0xce   : > { %v1410_v54 = vrot.slane %v4876_v18, 5  ;;  %v2734_v12 = vshll.u32 %v5158_v33, 16 }
  0xcf   : > { %3973 = vmatmul.mubr.msk.bf16.gmra.mrb[4].mxu0 %vm1055_vm12, %v3686_v58  ;;  %v3689_v58 = vcombine.low %v5158_v33, %v5161_v37  ;;  %v2617_v52 = vor.u32 %v2616_v15, %v2613_v48  ;;  %v5219_v15 = vrot.slane %v2644_v0, 5  ;;  %v5225_v44 = vsel %vm4797_vm15, %v3553_v34, %v1407_v21 }
  0xd0   : > { %3891 = vmatmul.mubr.msk.bf16.gmra.mrb[12].mxu1 %vm1055_vm12, %v3537_v31  ;;  %3976 = vmatprep.mubr.msk.bf16.mxu0 %vm1055_vm12, %v3687_v35  ;;  %v5194_v31 = vsel %vm4797_vm15, %v3552_v39, %v1400_v46  ;;  %v1402_v35 = vrot.slane %v1400_v46, 4  ;;  %v2637_v39 = vrot.slane %v5660_v29, 4  ;;  %v5661_v46 = vshll.u32 %v5030_v30, 16 }
  0xd1   : > { %3896 = vmatprep.mubr.msk.bf16.mxu1 %vm1055_vm12, %v3555_v5  ;;  %v1409_v6 = vrot.slane %v1407_v21, 4  ;;  %v2707_v29 = vshrl.u32 %v5143_v13, 16  ;;  %v2710_v30 = vshll.u32 %v5143_v13, 16  ;;  %v2627_v0 = vor.u32 %v2626_v56, %v5196_v4 }
  0xd2   : > { %v5206_v5 = vsel %vm4797_vm15, %v1402_v35, %v1403_v11  ;;  %v2640_v48 = vrot.slane %v5661_v46, 5  ;;  %v5662_v11 = vshrl.u32 %v5041_v57, 16  ;;  %v5234_v46 = vld [vmem:[%s4598_s29 + $0x38] sm:$0x1]  ;;  %v3690_v34 = vcombine.low %v5202_v55, %v5211_v9 }
  0xd3   : > { %5663 = vst [vmem:[#allocation18_spill] sm:$0xff] %v5234_v46  ;;  %v5242_v18 = vsel %vm4797_vm15, %v1409_v6, %v1410_v54  ;;  %v5664_v21 = vcombine.low %v5023_v20, %v5034_v10  ;;  %v2599_v56 = vsel %vm4640_vm11, %v2594_v59, %v5134_v3  ;;  %v2632_v13 = vrot.slane %v2630_v43, 5 }
  0xd4   : > { %v2650_v35 = vrot.slane %v5662_v11, 4  ;;  %v2720_v11 = vshrl.u32 %v5155_v61, 16  ;;  %v5665_v20 = vcombine.low %v5056_v8, %v5071_v26  ;;  %v2618_v10 = vrot.slane %v2617_v52, 4  ;;  %v4225_v8 = vld [vmem:[%s5609_s3 + $0x8] sm:$0x3] }
  0xd5   : > { %v2654_v3 = vshll.u32 %v5234_v46, 16  ;;  %v2628_v59 = vrot.slane %v2627_v0, 4  ;;  %v5667_v43 = vshll.u32 %v5066_v47, 16  ;;  %v2692_v52 = vshll.u32 %v5117_v1, 16  ;;  %v5273_v26 = vld [vmem:[%s4598_s29 + $0x44] sm:$0x1] }
  0xd6   : > { %v2651_v6 = vor.u32 %v2650_v35, %v5219_v15  ;;  %v5669_v35 = vshrl.u32 %v5111_v40, 16  ;;  %v5671_v46 = vshrl.u32 %v5117_v1, 16 }
  0xd7   : > { %3977 = vmatmul.mubr.msk.bf16.gmra.mrb[8].mxu0 %vm1055_vm12, %v3688_v14  ;;  %v2609_v14 = vsel %vm4640_vm11, %v2604_v27, %v2608_v25  ;;  %v5666_v27 = vshrl.u32 %v5066_v47, 16  ;;  %v5285_v47 = vld [vmem:[%s4598_s29 + $0x50] sm:$0x1]  ;;  %v2656_v24 = vrot.slane %v2654_v3, 5  ;;  %v5673_v3 = vcombine.low %v5098_v63, %v5121_v16 }
  0xd8   : > { %3897 = vmatmul.mubr.msk.bf16.vlgmr.msra.gmra.mrb[0].mxu1 %vm1055_vm12, %v5664_v21  ;;  %3980 = vmatprep.mubr.msk.bf16.mxu0 %vm1055_vm12, %v3689_v58  ;;  %v2641_v58 = vor.u32 %v2640_v48, %v2637_v39  ;;  %v2664_v21 = vrot.slane %v5667_v43, 5  ;;  %v5668_v39 = vshrl.u32 %v5078_v62, 16  ;;  %v2685_v0 = vrot.slane %v5669_v35, 4 }
  0xd9   : > { %3913 = vmatpush3.bf16.msra.mxu1 %v1673_v49  ;;  %3900 = vmatprep.mubr.msk.bf16.mxu1 %vm1055_vm12, %v5665_v20  ;;  %v2661_v25 = vrot.slane %v5666_v27, 4  ;;  %v5275_v49 = vrot.slane %v2668_v50, 5  ;;  %v5670_v20 = vshll.u32 %v5111_v40, 16  ;;  %v2731_v43 = vshrl.u32 %v5158_v33, 16 }
  0xda   : > { %4155 = vmatprep.subr.msk.bf16.mxu1 %vm1080_vm8, %v4225_v8  ;;  %v2674_v48 = vrot.slane %v5668_v39, 4  ;;  %v3700_v54 = vcombine.low %v2599_v56, %v2609_v14  ;;  %v5287_v8 = vrot.slane %v2692_v52, 5  ;;  %v2698_v50 = vrot.slane %v5671_v46, 4 }
  0xdb   : > { %v2688_v27 = vrot.slane %v5670_v20, 5  ;;  %v2642_v62 = vrot.slane %v2641_v58, 4  ;;  %v2652_v39 = vrot.slane %v2651_v6, 4  ;;  %v2623_v35 = vsel %vm4640_vm11, %v2618_v10, %v5196_v4 }
  0xdc   : > { %v2633_v20 = vsel %vm4640_vm11, %v2628_v59, %v2632_v13  ;;  %v2665_v56 = vor.u32 %v2664_v21, %v2661_v25  ;;  %v2678_v14 = vshll.u32 %v5273_v26, 16  ;;  %v2744_v52 = vshrl.u32 %v5161_v37, 16 }
  0xdd   : > { %v2675_v46 = vor.u32 %v2674_v48, %v5275_v49  ;;  %v2689_v33 = vor.u32 %v2688_v27, %v2685_v0  ;;  %v2702_v58 = vshll.u32 %v5285_v47, 16  ;;  %v5672_v6 = vcombine.low %v5075_v22, %v5088_v53 }
  0xde   : > { %v2755_v4 = vshrl.u32 %v5202_v55, 16  ;;  %v2758_v13 = vshll.u32 %v5202_v55, 16  ;;  %v2699_v10 = vor.u32 %v2698_v50, %v5287_v8  ;;  %v3701_v59 = vcombine.low %v2623_v35, %v2633_v20  ;;  %v5322_v35 = vld [vmem:[%s4598_s29 + $0x5c] sm:$0x1] }
  0xdf   : > { %3981 = vmatmul.mubr.msk.bf16.gmra.mrb[12].mxu0 %vm1055_vm12, %v3690_v34  ;;  %v2716_v34 = vshll.u32 %v5155_v61, 16  ;;  %v2647_v22 = vsel %vm4640_vm11, %v2642_v62, %v5219_v15  ;;  %v2657_v53 = vsel %vm4640_vm11, %v2652_v39, %v2656_v24  ;;  %v2666_v25 = vrot.slane %v2665_v56, 4 }
  0xe0   : > { %3901 = vmatmul.mubr.msk.bf16.gmra.mrb[4].mxu1 %vm1055_vm12, %v5672_v6  ;;  %3986 = vmatprep.mubr.msk.bf16.mxu0 %vm1055_vm12, %v3700_v54  ;;  %v2740_v54 = vshll.u32 %v5161_v37, 16  ;;  %v2680_v21 = vrot.slane %v2678_v14, 5  ;;  %v2709_v48 = vrot.slane %v2707_v29, 4  ;;  %v2712_v0 = vrot.slane %v2710_v30, 5 }
  0xe1   : > { %3904 = vmatprep.mubr.msk.bf16.mxu1 %vm1055_vm12, %v5673_v3  ;;  %v2676_v27 = vrot.slane %v2675_v46, 4  ;;  %v2690_v50 = vrot.slane %v2689_v33, 4  ;;  %v2704_v63 = vrot.slane %v2702_v58, 5  ;;  %v2722_v16 = vrot.slane %v2720_v11, 4  ;;  %v5329_v3 = vld [vmem:[%s4598_s29 + $0x68] sm:$0x1] }
  0xe2   : > { %v2700_v6 = vrot.slane %v2699_v10, 4  ;;  %v5324_v20 = vrot.slane %v2716_v34, 5  ;;  %v2733_v62 = vrot.slane %v2731_v43, 4  ;;  %v2736_v15 = vrot.slane %v2734_v12, 5 }
  0xe3   : > { %v3059_v24 = vsel %vm1080_vm8, %v5103_v41, 0  ;;  %v3702_v39 = vcombine.low %v2647_v22, %v2657_v53  ;;  %v5331_v56 = vrot.slane %v2740_v54, 5  ;;  %v2746_v30 = vrot.slane %v2744_v52, 4 }
  0xe4   : > { %v2768_v33 = vshrl.u32 %v5211_v9, 16  ;;  %v2671_v29 = vsel %vm4640_vm11, %v2666_v25, %v5275_v49  ;;  %v2713_v11 = vor.u32 %v2712_v0, %v2709_v48  ;;  %v2681_v12 = vsel %vm4640_vm11, %v2676_v27, %v2680_v21  ;;  %v4226_v25 = vld [vmem:[%s4598_s29 + $0xc] sm:$0xf]  ;;  %v4227_v21 = vld [vmem:[%s4598_s29 + $0x10] sm:$0xf] }
  0xe5   : > { %v2695_v41 = vsel %vm4640_vm11, %v2690_v50, %v5287_v8  ;;  %v2726_v43 = vshll.u32 %v5322_v35, 16  ;;  %v2764_v14 = vshll.u32 %v5211_v9, 16  ;;  %v5674_v52 = vcombine.low %v5147_v19, %v5166_v36 }
  0xe6   : > { %v2705_v49 = vsel %vm4640_vm11, %v2700_v6, %v2704_v63  ;;  %v2723_v46 = vor.u32 %v2722_v16, %v5324_v20  ;;  %v2737_v58 = vor.u32 %v2736_v15, %v2733_v62  ;;  %v2750_v8 = vshll.u32 %v5329_v3, 16 }
  0xe7   : > { %3987 = vmatmul.mubr.msk.bf16.vlgmr.msra.gmra.mrb[0].mxu0 %vm1055_vm12, %v3701_v59  ;;  %v5675_v10 = vcombine.low %v5194_v31, %v5206_v5  ;;  %v2747_v19 = vor.u32 %v2746_v30, %v5331_v56  ;;  %v2757_v36 = vrot.slane %v2755_v4, 4  ;;  %v2760_v34 = vrot.slane %v2758_v13, 5  ;;  %v5368_v4 = vld [vmem:[%s4598_s29 + $0x74] sm:$0x1] }
  0xe8   : > { %3905 = vmatmul.mubr.msk.bf16.gmra.mrb[8].mxu1 %vm1055_vm12, %v5674_v52  ;;  %4003 = vmatpush3.bf16.msra.mxu0 %v3059_v24  ;;  %v3603_v59 = vcombine.low %v4920_v45, %v4927_v32  ;;  %v1909_v22 = vshrl.u32 %v4920_v45, 16  ;;  %v1912_v53 = vshll.u32 %v4920_v45, 16  ;;  %v3703_v54 = vcombine.low %v2671_v29, %v2681_v12 }
  0xe9   : > { %3908 = vmatprep.mubr.msk.bf16.mxu1 %vm1055_vm12, %v5675_v10  ;;  %3990 = vmatprep.mubr.msk.bf16.mxu0 %vm1055_vm12, %v3702_v39  ;;  %v3598_v31 = vcombine.low %v4226_v25, %v4227_v21  ;;  %v5365_v5 = vrot.slane %v2764_v14, 5  ;;  %v2770_v48 = vrot.slane %v2768_v33, 4  ;;  %v3704_v0 = vcombine.low %v2695_v41, %v2705_v49 }
  0xea   : > { %v2714_v27 = vrot.slane %v2713_v11, 4  ;;  %v2724_v50 = vrot.slane %v2723_v46, 4  ;;  %v2728_v63 = vrot.slane %v2726_v43, 5  ;;  %v2738_v13 = vrot.slane %v2737_v58, 4 }
  0xeb   : > { %v2748_v16 = vrot.slane %v2747_v19, 4  ;;  %v2752_v6 = vrot.slane %v2750_v8, 5  ;;  %v2761_v62 = vor.u32 %v2760_v34, %v2757_v36  ;;  %v1918_v15 = vshll.u32 %v4927_v32, 16  ;;  %v4228_v19 = vld [vmem:[%s4598_s29 + $0x18] sm:$0xf] }
  0xec   : > { %v1922_v24 = vshrl.u32 %v4927_v32, 16  ;;  %v2954_v39 = vrot.slane %v4997_v28, 5  ;;  %v1911_v30 = vrot.slane %v1909_v22, 4  ;;  %v2771_v33 = vor.u32 %v2770_v48, %v5365_v5  ;;  %v4229_v36 = vld [vmem:[%s4598_s29 + $0x1c] sm:$0xf] }
  0xed   : > { %v2774_v29 = vshll.u32 %v5368_v4, 16  ;;  %v1914_v11 = vrot.slane %v1912_v53, 5  ;;  %v1928_v12 = vshll.u32 %v4930_v17, 16  ;;  %v5676_v41 = vcombine.low %v5225_v44, %v5242_v18  ;;  %v4230_v53 = vld [vmem:[%s4598_s29 + $0x24] sm:$0xf] }
  0xee   : > { %v2719_v28 = vsel %vm4640_vm11, %v2714_v27, %v5324_v20  ;;  %v2729_v43 = vsel %vm4640_vm11, %v2724_v50, %v2728_v63  ;;  %v2743_v17 = vsel %vm4640_vm11, %v2738_v13, %v5331_v56  ;;  %v2753_v44 = vsel %vm4640_vm11, %v2748_v16, %v2752_v6 }
  0xef   : > { %3991 = vmatmul.mubr.msk.bf16.gmra.mrb[4].mxu0 %vm1055_vm12, %v3703_v54  ;;  %v2762_v18 = vrot.slane %v2761_v62, 4  ;;  %v3716_v14 = vrot.slane %v4994_v42, 9  ;;  %v1920_v52 = vrot.slane %v1918_v15, 5  ;;  %v1924_v49 = vrot.slane %v1922_v24, 4  ;;  %v4231_v54 = vld [vmem:[%s4598_s29 + $0x28] sm:$0xf] }
  0xf0   : > { %3909 = vmatmul.mubr.msk.bf16.gmra.mrb[12].mxu1 %vm1055_vm12, %v5676_v41  ;;  %3994 = vmatprep.mubr.msk.bf16.mxu0 %vm1055_vm12, %v3704_v0  ;;  %v2956_v20 = vrot.slane %v2954_v39, 4  ;;  %v2957_v46 = vrot.slane %v5132_v7, 5  ;;  %v3705_v58 = vcombine.low %v2719_v28, %v2729_v43  ;;  %v2772_v8 = vrot.slane %v2771_v33, 4  ;;  %v5677_v62 = vld [vmem:[#allocation3_spill] sm:$0xff]  ;;  %v4232_v15 = vld [vmem:[%s4598_s29 + $0x30] sm:$0xf] }
  0xf1   : > { %3914 = vmatprep.mubr.msk.bf16.mxu1 %vm1055_vm12, %v3598_v31  ;;  %v2776_v10 = vrot.slane %v2774_v29, 5  ;;  %v3599_v34 = vcombine.low %v4228_v19, %v4229_v36  ;;  %v3706_v56 = vcombine.low %v2743_v17, %v2753_v44  ;;  %v1930_v22 = vrot.slane %v1928_v12, 5  ;;  %v5679_v33 = vld [vmem:[#allocation17_spill] sm:$0xff] }
  0xf2   : > { %v3600_v25 = vcombine.low %v4230_v53, %v4231_v54  ;;  %v2767_v42 = vsel %vm4640_vm11, %v2762_v18, %v5365_v5  ;;  %v2955_v21 = vsel %vm4797_vm15, %v3716_v14, %v2954_v39  ;;  %v2958_v7 = vsel %vm4797_vm15, %v2956_v20, %v2957_v46  ;;  %v5678_v39 = vld [vmem:[#allocation11_spill] sm:$0xff]  ;;  %v5681_v14 = vld [vmem:[#allocation18_spill] sm:$0xff]  ;;  %v5683_v53 = vld [vmem:[#allocation4_spill] sm:$0xff] }
  0xf3   : > { %v2961_v31 = vrot.slane %v5010_v2, 5  ;;  %v1915_v48 = vor.u32 %v1914_v11, %v1911_v30  ;;  %v1925_v0 = vor.u32 %v1924_v49, %v1920_v52  ;;  %v2777_v27 = vsel %vm4640_vm11, %v2772_v8, %v2776_v10  ;;  %v5680_v11 = vld [vmem:[#allocation12_spill] sm:$0xff] }
  0xf4   : > { %v2968_v50 = vrot.slane %v5041_v57, 5  ;;  %v1885_v5 = vshrl.u32 %v4893_v23, 16  ;;  %v1888_v63 = vshll.u32 %v4893_v23, 16  ;;  %v1894_v2 = vshll.u32 %v4896_v51, 16  ;;  %v4233_v57 = vld [vmem:[%s4598_s29 + $0x34] sm:$0xf] }
  0xf5   : > { %v1898_v13 = vshrl.u32 %v4896_v51, 16  ;;  %v1916_v16 = vrot.slane %v1915_v48, 4  ;;  %v1926_v6 = vrot.slane %v1925_v0, 4  ;;  %v3601_v24 = vcombine.low %v4232_v15, %v4233_v57  ;;  %v5685_v0 = vld [vmem:[#allocation5_spill] sm:$0xff] }
  0xf6   : > { %v3717_v30 = vrot.slane %v5678_v39, 9  ;;  %v2964_v29 = vrot.slane %v5679_v33, 5  ;;  %v3718_v12 = vrot.slane %v5680_v11, 9  ;;  %v3725_v41 = vcombine.low %v2955_v21, %v2958_v7  ;;  %v5684_v7 = vld [vmem:[#allocation13_spill] sm:$0xff] }
  0xf7   : > { %3995 = vmatmul.mubr.msk.bf16.gmra.mrb[8].mxu0 %vm1055_vm12, %v3705_v58  ;;  %v2963_v28 = vrot.slane %v2961_v31, 4  ;;  %v1921_v43 = vsel %vm4640_vm11, %v1916_v16, %v1920_v52  ;;  %v1931_v17 = vsel %vm4640_vm11, %v1926_v6, %v1930_v22  ;;  %v3707_v44 = vcombine.low %v2767_v42, %v2777_v27  ;;  %v5687_v39 = vld [vmem:[#allocation9_spill] sm:$0xff] }
  0xf8   : > { %3915 = vmatmul.mubr.msk.bf16.vlgmr.msra.gmra.mrb[0].mxu1 %vm1055_vm12, %v3599_v34  ;;  %3998 = vmatprep.mubr.msk.bf16.mxu0 %vm1055_vm12, %v3706_v56  ;;  %v2970_v18 = vrot.slane %v2968_v50, 4  ;;  %v2971_v49 = vrot.slane %v5681_v14, 5  ;;  %v5429_v20 = vcombine.low %v1921_v43, %v1931_v17  ;;  %v1887_v46 = vrot.slane %v1885_v5, 4  ;;  %v5682_v56 = vld [vmem:[#allocation14_spill] sm:$0xff] }
  0xf9   : > { %4021 = vmatpush3.bf16.msra.mxu1 %v5677_v62  ;;  %3918 = vmatprep.mubr.msk.bf16.mxu1 %vm1055_vm12, %v3600_v25  ;;  %v1890_v58 = vrot.slane %v1888_v63, 5  ;;  %v1896_v8 = vrot.slane %v1894_v2, 5  ;;  %v1900_v10 = vrot.slane %v1898_v13, 4  ;;  %v3602_v19 = vcombine.low %v4893_v23, %v4896_v51  ;;  %v5686_v5 = vld [vmem:[#allocation6_spill] sm:$0xff] }
  0xfa   : > { %v2962_v36 = vsel %vm4797_vm15, %v3717_v30, %v2961_v31  ;;  %v2965_v52 = vsel %vm4797_vm15, %v2963_v28, %v2964_v29  ;;  %v2969_v34 = vsel %vm4797_vm15, %v3718_v12, %v2968_v50  ;;  %v2975_v22 = vrot.slane %v5682_v56, 5  ;;  %v5688_v30 = vld [vmem:[#allocation8_spill] sm:$0xff] }
  0xfb   : > { %v1904_v54 = vshll.u32 %v5683_v53, 16  ;;  %v2972_v23 = vsel %vm4797_vm15, %v2970_v18, %v2971_v49  ;;  %v1891_v51 = vor.u32 %v1890_v58, %v1887_v46  ;;  %v1901_v25 = vor.u32 %v1900_v10, %v1896_v8 }
  0xfc   : > { %v2982_v42 = vrot.slane %v5117_v1, 5  ;;  %v3726_v21 = vcombine.low %v2962_v36, %v2965_v52  ;;  %v3719_v31 = vrot.slane %v5684_v7, 9  ;;  %v2978_v48 = vrot.slane %v5273_v26, 5  ;;  %v5690_v36 = vld [vmem:[#allocation15_spill] sm:$0xff] }
  0xfd   : > { %v1933_v27 = vshrl.u32 %v5685_v0, 16  ;;  %v1936_v50 = vshll.u32 %v5685_v0, 16  ;;  %v1942_v63 = vshll.u32 %v5686_v5, 16  ;;  %v1946_v2 = vshrl.u32 %v5686_v5, 16 }
  0xfe   : > { %v3727_v13 = vcombine.low %v2969_v34, %v2972_v23  ;;  %v2977_v16 = vrot.slane %v2975_v22, 4  ;;  %v1906_v6 = vrot.slane %v1904_v54, 5  ;;  %v3720_v1 = vrot.slane %v5111_v40, 9 }
  0xff   : > { %3999 = vmatmul.mubr.msk.bf16.gmra.mrb[12].mxu0 %vm1055_vm12, %v3707_v44  ;;  %v1892_v62 = vrot.slane %v1891_v51, 4  ;;  %v1902_v15 = vrot.slane %v1901_v25, 4  ;;  %v2984_v57 = vrot.slane %v2982_v42, 4  ;;  %v3604_v26 = vcombine.low %v5685_v0, %v5686_v5 }
 0x100   : > { %3919 = vmatmul.mubr.msk.bf16.gmra.mrb[4].mxu1 %vm1055_vm12, %v3601_v24  ;;  %4004 = vmatprep.mubr.msk.bf16.mxu0 %vm1055_vm12, %v3725_v41  ;;  %v2985_v24 = vrot.slane %v5285_v47, 5  ;;  %v3605_v33 = vcombine.low %v5688_v30, %v5687_v39  ;;  %v1935_v29 = vrot.slane %v1933_v27, 4  ;;  %v1938_v11 = vrot.slane %v1936_v50, 5 }
 0x101   : > { %3922 = vmatprep.mubr.msk.bf16.mxu1 %vm1055_vm12, %v3602_v19  ;;  %v1944_v12 = vrot.slane %v1942_v63, 5  ;;  %v1948_v41 = vrot.slane %v1946_v2, 4  ;;  %v2976_v40 = vsel %vm4797_vm15, %v3719_v31, %v2975_v22  ;;  %v2979_v28 = vsel %vm4797_vm15, %v2977_v16, %v2978_v48  ;;  %v5691_v22 = vld [vmem:[#allocation16_spill] sm:$0xff]  ;;  %v5692_v2 = vld [vmem:[#allocation10_spill] sm:$0xff] }
 0x102   : > { %v2983_v47 = vsel %vm4797_vm15, %v3720_v1, %v2982_v42  ;;  %v2989_v43 = vrot.slane %v5155_v61, 5  ;;  %v1897_v17 = vsel %vm4640_vm11, %v1892_v62, %v1896_v8  ;;  %v1907_v44 = vsel %vm4640_vm11, %v1902_v15, %v1906_v6  ;;  %v5689_v8 = vld [vmem:[#allocation7_spill] sm:$0xff] }
 0x103   : > { %v2986_v18 = vsel %vm4797_vm15, %v2984_v57, %v2985_v24  ;;  %v2996_v14 = vrot.slane %v5161_v37, 5  ;;  %v1957_v61 = vshrl.u32 %v5688_v30, 16  ;;  %v1960_v45 = vshll.u32 %v5688_v30, 16 }
 0x104   : > { %v1966_v32 = vshll.u32 %v5687_v39, 16  ;;  %v3728_v49 = vcombine.low %v2976_v40, %v2979_v28  ;;  %v1939_v46 = vor.u32 %v1938_v11, %v1935_v29  ;;  %v1949_v58 = vor.u32 %v1948_v41, %v1944_v12 }
 0x105   : > { %v1952_v10 = vshll.u32 %v5689_v8, 16  ;;  %v3729_v19 = vcombine.low %v2983_v47, %v2986_v18  ;;  %v3721_v52 = vrot.slane %v5690_v36, 9  ;;  %v2991_v34 = vrot.slane %v2989_v43, 4 }
 0x106   : > { %v2992_v37 = vrot.slane %v5322_v35, 5  ;;  %v3619_v56 = vcombine.low %v1897_v17, %v1907_v44  ;;  %v3722_v53 = vrot.slane %v5691_v22, 9  ;;  %v2998_v54 = vrot.slane %v2996_v14, 4 }
 0x107   : > { %4005 = vmatmul.mubr.msk.bf16.vlgmr.msra.gmra.mrb[0].mxu0 %vm1055_vm12, %v3726_v21  ;;  %v2999_v23 = vrot.slane %v5329_v3, 5  ;;  %v1959_v51 = vrot.slane %v1957_v61, 4  ;;  %v1962_v25 = vrot.slane %v1960_v45, 5  ;;  %v1968_v42 = vrot.slane %v1966_v32, 5 }
 0x108   : > { %3923 = vmatmul.mubr.msk.bf16.gmra.mrb[8].mxu1 %vm1055_vm12, %v3603_v59  ;;  %4008 = vmatprep.mubr.msk.bf16.mxu0 %vm1055_vm12, %v3727_v13  ;;  %v1970_v59 = vshrl.u32 %v5687_v39, 16  ;;  %v1940_v7 = vrot.slane %v1939_v46, 4  ;;  %v1950_v31 = vrot.slane %v1949_v58, 4  ;;  %v1954_v48 = vrot.slane %v1952_v10, 5 }
 0x109   : > { %3926 = vmatprep.mubr.msk.bf16.mxu1 %vm1055_vm12, %v3604_v26  ;;  %v2990_v35 = vsel %vm4797_vm15, %v3721_v52, %v2989_v43  ;;  %v2993_v0 = vsel %vm4797_vm15, %v2991_v34, %v2992_v37  ;;  %v2997_v3 = vsel %vm4797_vm15, %v3722_v53, %v2996_v14  ;;  %v3003_v27 = vrot.slane %v5211_v9, 5 }
 0x10a   : > { %v1972_v21 = vrot.slane %v1970_v59, 4  ;;  %v3000_v50 = vsel %vm4797_vm15, %v2998_v54, %v2999_v23  ;;  %v1963_v5 = vor.u32 %v1962_v25, %v1959_v51  ;;  %v1976_v13 = vshll.u32 %v5692_v2, 16 }
 0x10b   : > { %v1945_v16 = vsel %vm4640_vm11, %v1940_v7, %v1944_v12  ;;  %v1955_v6 = vsel %vm4640_vm11, %v1950_v31, %v1954_v48  ;;  %v3730_v1 = vcombine.low %v2990_v35, %v2993_v0  ;;  %v3731_v62 = vcombine.low %v2997_v3, %v3000_v50 }
 0x10c   : > { %v1973_v63 = vor.u32 %v1972_v21, %v1968_v42  ;;  %v3723_v15 = vrot.slane %v5202_v55, 9  ;;  %v3005_v9 = vrot.slane %v3003_v27, 4  ;;  %v3006_v57 = vrot.slane %v5368_v4, 5 }
 0x10d   : > { %v3621_v24 = vcombine.low %v1945_v16, %v1955_v6  ;;  %v1964_v26 = vrot.slane %v1963_v5, 4  ;;  %v1978_v30 = vrot.slane %v1976_v13, 5 }
 0x10e   : > { %v1974_v39 = vrot.slane %v1973_v63, 4  ;;  %v3007_v55 = vsel %vm4797_vm15, %v3005_v9, %v3006_v57 }
 0x10f   : > { %4009 = vmatmul.mubr.msk.bf16.gmra.mrb[4].mxu0 %vm1055_vm12, %v3728_v49  ;;  %v1969_v4 = vsel %vm4640_vm11, %v1964_v26, %v1968_v42 }
 0x110   : > { %3927 = vmatmul.mubr.msk.bf16.gmra.mrb[12].mxu1 %vm1055_vm12, %v3605_v33  ;;  %4012 = vmatprep.mubr.msk.bf16.mxu0 %vm1055_vm12, %v3729_v19  ;;  %v3004_v33 = vsel %vm4797_vm15, %v3723_v15, %v3003_v27  ;;  %v1979_v29 = vsel %vm4640_vm11, %v1974_v39, %v1978_v30 }
 0x111   : > { %3940 = vmatprep.mubr.msk.bf16.mxu1 %vm1055_vm12, %v3619_v56  ;;  %v3732_v11 = vcombine.low %v3004_v33, %v3007_v55  ;;  %v3622_v12 = vcombine.low %v1969_v4, %v1979_v29 }
 0x117   : > { %4013 = vmatmul.mubr.msk.bf16.gmra.mrb[8].mxu0 %vm1055_vm12, %v3730_v1 }
 0x118   : > { %3941 = vmatmul.mubr.msk.bf16.vlgmr.msra.gmra.mrb[8].mxu1 %vm1055_vm12, %v5429_v20  ;;  %4016 = vmatprep.mubr.msk.bf16.mxu0 %vm1055_vm12, %v3731_v62 }
 0x119   : > { %3944 = vmatprep.mubr.msk.bf16.mxu1 %vm1055_vm12, %v3621_v24 }
 0x11f   : > { %4017 = vmatmul.mubr.msk.bf16.gmra.mrb[12].mxu0 %vm1055_vm12, %v3732_v11 }
 0x120   : > { %3945 = vmatmul.mubr.msk.bf16.gmra.mrb[12].mxu1 %vm1055_vm12, %v3622_v12 }
 0x1cb   : > { %v3916_v20 = vpop.f32.mrb[0].mxu1 }
 0x1cc   : > { %v1709_v41 = vpop.f32.mrb[1].mxu1 }
 0x1cd   : > { %v3917_v40 = vpop.f32.mrb[2].mxu1 }
 0x1ce   : > { %v1712_v28 = vpop.f32.mrb[3].mxu1 }
 0x1d3   : > { %v3920_v38 = vpop.f32.mrb[4].mxu1 }
 0x1d4   : > { %v1725_v47 = vpop.f32.mrb[5].mxu1 }
 0x1d5   : > { %v3921_v43 = vpop.f32.mrb[6].mxu1 }
 0x1d6   : > { %v1728_v17 = vpop.f32.mrb[7].mxu1 }
 0x1da   : > { %v4006_v44 = vpop.f32.mrb[0].mxu0 }
 0x1db   : > { %v4022_v18 = vadd.f32 %v4006_v44, %v3916_v20  ;;  %v3095_v60 = vpop.f32.mrb[1].mxu0 }
 0x1dc   : > { %v4023_v14 = vadd.f32 %v3095_v60, %v1709_v41  ;;  %v4007_v61 = vpop.f32.mrb[2].mxu0 }
 0x1dd   : > { %v3763_v45 = vpack.c.bf16 %v4022_v18, %v4022_v18  ;;  %v4024_v32 = vadd.f32 %v4007_v61, %v3917_v40  ;;  %v3098_v59 = vpop.f32.mrb[3].mxu0  ;;  %v3297_v8 = vmul.f32 %v4022_v18, %v4022_v18  ;;  %v3259_v22 = vsel %vm3255_vm1, %v4022_v18, 0.0 }
 0x1de   : > { %v3761_v49 = vpack.c.bf16 %v4023_v14, %v4023_v14  ;;  %v3295_v46 = vmul.f32 %v4023_v14, %v4023_v14  ;;  %v4025_v58 = vadd.f32 %v3098_v59, %v1712_v28  ;;  %v3256_v19 = vsel %vm3255_vm1, %v4023_v14, 0.0 }
 0x1df   : > { %3241 = vst.msk [vmem:[%s4347_s9 + $0x8] sm:$0xf] %vm3238_vm0, %v3763_v45  ;;  %v3764_v10 = vpack.c.bf16 %v4024_v32, %v4024_v32  ;;  %v3298_v37 = vmul.f32 %v4024_v32, %v4024_v32  ;;  %v3314_v7 = vsel %vm3255_vm1, %v3297_v8, 0.0  ;;  %v3261_v35 = vsel %vm3255_vm1, %v4024_v32, 0.0 }
 0x1e0   : > { %3239 = vst.msk [vmem:[%s4347_s9] sm:$0xf] %vm3238_vm0, %v3761_v49  ;;  %v3762_v36 = vpack.c.bf16 %v4025_v58, %v4025_v58  ;;  %v3257_v52 = vsel %vm3255_vm1, %v4025_v58, 0.0  ;;  %v3296_v34 = vmul.f32 %v4025_v58, %v4025_v58  ;;  %v3311_v53 = vsel %vm3255_vm1, %v3295_v46, 0.0 }
 0x1e1   : > { %3242 = vst.msk [vmem:[%s4347_s9 + $0xc] sm:$0xf] %vm3238_vm0, %v3764_v10  ;;  %v3258_v56 = vadd.f32 %v3257_v52, %v3256_v19  ;;  %v3316_v0 = vsel %vm3255_vm1, %v3298_v37, 0.0 }
 0x1e2   : > { %3240 = vst.msk [vmem:[%s4347_s9 + $0x4] sm:$0xf] %vm3238_vm0, %v3762_v36  ;;  %v3312_v54 = vsel %vm3255_vm1, %v3296_v34, 0.0  ;;  %v4010_v23 = vpop.f32.mrb[4].mxu0 }
 0x1e3   : > { %v3260_v51 = vadd.f32 %v3259_v22, %v3258_v56  ;;  %v3313_v25 = vadd.f32 %v3312_v54, %v3311_v53  ;;  %v4026_v42 = vadd.f32 %v4010_v23, %v3920_v38  ;;  %v3111_v21 = vpop.f32.mrb[5].mxu0 }
 0x1e4   : > { %v4027_v31 = vadd.f32 %v3111_v21, %v1725_v47  ;;  %v4011_v48 = vpop.f32.mrb[6].mxu0 }
 0x1e5   : > { %v3315_v3 = vadd.f32 %v3314_v7, %v3313_v25  ;;  %v3767_v27 = vpack.c.bf16 %v4026_v42, %v4026_v42  ;;  %v3114_v50 = vpop.f32.mrb[7].mxu0  ;;  %v3262_v63 = vadd.f32 %v3261_v35, %v3260_v51  ;;  %v4028_v6 = vadd.f32 %v4011_v48, %v3921_v43 }
 0x1e6   : > { %v3765_v5 = vpack.c.bf16 %v4027_v31, %v4027_v31  ;;  %v3263_v2 = vsel %vm3255_vm1, %v4027_v31, 0.0  ;;  %v3299_v13 = vmul.f32 %v4027_v31, %v4027_v31  ;;  %v4029_v1 = vadd.f32 %v3114_v50, %v1728_v17 }
 0x1e7   : > { %3245 = vst.msk [vmem:[%s4347_s9 + $0x18] sm:$0xf] %vm3238_vm0, %v3767_v27  ;;  %v3317_v16 = vadd.f32 %v3316_v0, %v3315_v3  ;;  %v3264_v62 = vadd.f32 %v3263_v2, %v3262_v63  ;;  %v3768_v57 = vpack.c.bf16 %v4028_v6, %v4028_v6  ;;  %v3301_v24 = vmul.f32 %v4026_v42, %v4026_v42 }
 0x1e8   : > { %3243 = vst.msk [vmem:[%s4347_s9 + $0x10] sm:$0xf] %vm3238_vm0, %v3765_v5  ;;  %v3318_v15 = vsel %vm3255_vm1, %v3299_v13, 0.0  ;;  %v3766_v26 = vpack.c.bf16 %v4029_v1, %v4029_v1  ;;  %v3265_v39 = vsel %vm3255_vm1, %v4029_v1, 0.0  ;;  %v3300_v30 = vmul.f32 %v4029_v1, %v4029_v1 }
 0x1e9   : > { %v3319_v9 = vadd.f32 %v3318_v15, %v3317_v16  ;;  %3246 = vst.msk [vmem:[%s4347_s9 + $0x1c] sm:$0xf] %vm3238_vm0, %v3768_v57  ;;  %v3266_v55 = vadd.f32 %v3265_v39, %v3264_v62  ;;  %v3267_v11 = vsel %vm3255_vm1, %v4026_v42, 0.0  ;;  %v3302_v12 = vmul.f32 %v4028_v6, %v4028_v6 }
 0x1ea   : > { %v4014_v33 = vpop.f32.mrb[8].mxu0  ;;  %3244 = vst.msk [vmem:[%s4347_s9 + $0x14] sm:$0xf] %vm3238_vm0, %v3766_v26  ;;  %v3320_v20 = vsel %vm3255_vm1, %v3300_v30, 0.0  ;;  %v3322_v18 = vsel %vm3255_vm1, %v3301_v24, 0.0  ;;  %v3269_v60 = vsel %vm3255_vm1, %v4028_v6, 0.0 }
 0x1eb   : > { %v3942_v4 = vpop.f32.mrb[8].mxu1  ;;  %v3127_v29 = vpop.f32.mrb[9].mxu0  ;;  %v3268_v38 = vadd.f32 %v3267_v11, %v3266_v55  ;;  %v3321_v47 = vadd.f32 %v3320_v20, %v3319_v9  ;;  %v3324_v58 = vsel %vm3255_vm1, %v3302_v12, 0.0 }
 0x1ec   : > { %v4030_v41 = vadd.f32 %v4014_v33, %v3942_v4  ;;  %v2099_v40 = vpop.f32.mrb[9].mxu1  ;;  %v4015_v28 = vpop.f32.mrb[10].mxu0 }
 0x1ed   : > { %v4031_v43 = vadd.f32 %v3127_v29, %v2099_v40  ;;  %v3943_v17 = vpop.f32.mrb[10].mxu1  ;;  %v3130_v44 = vpop.f32.mrb[11].mxu0  ;;  %v3323_v32 = vadd.f32 %v3322_v18, %v3321_v47  ;;  %v3270_v49 = vadd.f32 %v3269_v60, %v3268_v38 }
 0x1ee   : > { %v3771_v14 = vpack.c.bf16 %v4030_v41, %v4030_v41  ;;  %v4032_v61 = vadd.f32 %v4015_v28, %v3943_v17  ;;  %v2102_v45 = vpop.f32.mrb[11].mxu1  ;;  %v3305_v19 = vmul.f32 %v4030_v41, %v4030_v41  ;;  %v3275_v48 = vsel %vm3255_vm1, %v4030_v41, 0.0 }
 0x1ef   : > { %v3769_v59 = vpack.c.bf16 %v4031_v43, %v4031_v43  ;;  %v3271_v46 = vsel %vm3255_vm1, %v4031_v43, 0.0  ;;  %v3303_v8 = vmul.f32 %v4031_v43, %v4031_v43  ;;  %v3325_v52 = vadd.f32 %v3324_v58, %v3323_v32 }
 0x1f0   : > { %3249 = vst.msk [vmem:[%s4347_s9 + $0x28] sm:$0xf] %vm3238_vm0, %v3771_v14  ;;  %v3772_v10 = vpack.c.bf16 %v4032_v61, %v4032_v61  ;;  %v3272_v36 = vadd.f32 %v3271_v46, %v3270_v49  ;;  %v4033_v34 = vadd.f32 %v3130_v44, %v2102_v45  ;;  %v3330_v35 = vsel %vm3255_vm1, %v3305_v19, 0.0 }
 0x1f1   : > { %3247 = vst.msk [vmem:[%s4347_s9 + $0x20] sm:$0xf] %vm3238_vm0, %v3769_v59  ;;  %v3326_v37 = vsel %vm3255_vm1, %v3303_v8, 0.0  ;;  %v3306_v50 = vmul.f32 %v4032_v61, %v4032_v61  ;;  %v3277_v16 = vsel %vm3255_vm1, %v4032_v61, 0.0 }
 0x1f2   : > { %3250 = vst.msk [vmem:[%s4347_s9 + $0x2c] sm:$0xf] %vm3238_vm0, %v3772_v10  ;;  %v4018_v56 = vpop.f32.mrb[12].mxu0  ;;  %v3327_v22 = vadd.f32 %v3326_v37, %v3325_v52  ;;  %v3770_v53 = vpack.c.bf16 %v4033_v34, %v4033_v34  ;;  %v3273_v54 = vsel %vm3255_vm1, %v4033_v34, 0.0  ;;  %v3304_v42 = vmul.f32 %v4033_v34, %v4033_v34 }
 0x1f3   : > { %v3946_v23 = vpop.f32.mrb[12].mxu1  ;;  %v3143_v51 = vpop.f32.mrb[13].mxu0  ;;  %v3274_v25 = vadd.f32 %v3273_v54, %v3272_v36  ;;  %v3332_v39 = vsel %vm3255_vm1, %v3306_v50, 0.0 }
 0x1f4   : > { %v4034_v21 = vadd.f32 %v4018_v56, %v3946_v23  ;;  %v2115_v7 = vpop.f32.mrb[13].mxu1  ;;  %v4019_v31 = vpop.f32.mrb[14].mxu0  ;;  %3248 = vst.msk [vmem:[%s4347_s9 + $0x24] sm:$0xf] %vm3238_vm0, %v3770_v53  ;;  %v3328_v63 = vsel %vm3255_vm1, %v3304_v42, 0.0 }
 0x1f5   : > { %v4035_v0 = vadd.f32 %v3143_v51, %v2115_v7  ;;  %v3947_v3 = vpop.f32.mrb[14].mxu1  ;;  %v3146_v27 = vpop.f32.mrb[15].mxu0  ;;  %v3276_v5 = vadd.f32 %v3275_v48, %v3274_v25  ;;  %v3329_v6 = vadd.f32 %v3328_v63, %v3327_v22 }
 0x1f6   : > { %v3775_v2 = vpack.c.bf16 %v4034_v21, %v4034_v21  ;;  %v2118_v13 = vpop.f32.mrb[15].mxu1  ;;  %v4036_v57 = vadd.f32 %v4019_v31, %v3947_v3  ;;  %v3309_v12 = vmul.f32 %v4034_v21, %v4034_v21  ;;  %v3283_v40 = vsel %vm3255_vm1, %v4034_v21, 0.0 }
 0x1f7   : > { %v3773_v1 = vpack.c.bf16 %v4035_v0, %v4035_v0  ;;  %v3279_v62 = vsel %vm3255_vm1, %v4035_v0, 0.0  ;;  %v3278_v15 = vadd.f32 %v3277_v16, %v3276_v5  ;;  %v3307_v9 = vmul.f32 %v4035_v0, %v4035_v0 }
 0x1f8   : > { %3253 = vst.msk [vmem:[%s4347_s9 + $0x38] sm:$0xf] %vm3238_vm0, %v3775_v2  ;;  %v4037_v24 = vadd.f32 %v3146_v27, %v2118_v13  ;;  %v3331_v26 = vadd.f32 %v3330_v35, %v3329_v6  ;;  %v3776_v55 = vpack.c.bf16 %v4036_v57, %v4036_v57  ;;  %v3310_v38 = vmul.f32 %v4036_v57, %v4036_v57 }
 0x1f9   : > { %3251 = vst.msk [vmem:[%s4347_s9 + $0x30] sm:$0xf] %vm3238_vm0, %v3773_v1  ;;  %v3280_v30 = vadd.f32 %v3279_v62, %v3278_v15  ;;  %v3334_v33 = vsel %vm3255_vm1, %v3307_v9, 0.0  ;;  %v3285_v17 = vsel %vm3255_vm1, %v4036_v57, 0.0  ;;  %v3338_v18 = vsel %vm3255_vm1, %v3309_v12, 0.0 }
 0x1fa   : > { %v3333_v4 = vadd.f32 %v3332_v39, %v3331_v26  ;;  %v3774_v29 = vpack.c.bf16 %v4037_v24, %v4037_v24  ;;  %v3281_v11 = vsel %vm3255_vm1, %v4037_v24, 0.0  ;;  %3254 = vst.msk [vmem:[%s4347_s9 + $0x3c] sm:$0xf] %vm3238_vm0, %v3776_v55  ;;  %v3308_v41 = vmul.f32 %v4037_v24, %v4037_v24 }
 0x1fb   : > { %v3282_v20 = vadd.f32 %v3281_v11, %v3280_v30  ;;  %v3340_v61 = vsel %vm3255_vm1, %v3310_v38, 0.0 }
 0x1fc   : > { %v3335_v28 = vadd.f32 %v3334_v33, %v3333_v4  ;;  %3252 = vst.msk [vmem:[%s4347_s9 + $0x34] sm:$0xf] %vm3238_vm0, %v3774_v29  ;;  %v3336_v43 = vsel %vm3255_vm1, %v3308_v41, 0.0 }
 0x1fd   : > { %v3284_v47 = vadd.f32 %v3283_v40, %v3282_v20 }
 0x1fe   : > { %v3337_v44 = vadd.f32 %v3336_v43, %v3335_v28 }
 0x1ff   : > { %v3286_v60 = vadd.f32 %v3285_v17, %v3284_v47 }
 0x200   : > { %v3339_v14 = vadd.f32 %v3338_v18, %v3337_v44 }
 0x201   : > { %v3287_v45 = vrot.slane %v3286_v60, 4 }
 0x202   : > { %v3341_v32 = vadd.f32 %v3340_v61, %v3339_v14 }
 0x203   : > { %v3288_v59 = vadd.f32 %v3287_v45, %v3286_v60 }
 0x204   : > { %v3342_v49 = vrot.slane %v3341_v32, 4 }
 0x205   : > { %v3289_v46 = vrot.slane %v3288_v59, 2 }
 0x206   : > { %v3343_v58 = vadd.f32 %v3342_v49, %v3341_v32 }
 0x207   : > { %v3290_v8 = vadd.f32 %v3289_v46, %v3288_v59 }
 0x208   : > { %v3344_v10 = vrot.slane %v3343_v58, 2 }
 0x209   : > { %v3291_v19 = vrot.slane %v3290_v8, 1 }
 0x20a   : > { %v3345_v36 = vadd.f32 %v3344_v10, %v3343_v58 }
 0x20b   : > { %v3292_v52 = vadd.f32 %v3291_v19, %v3290_v8 }
 0x20c   : > { %v3346_v34 = vrot.slane %v3345_v36, 1 }
 0x20d   : > { %3294 = vst.msk [vmem:[%s4353_s16] sm:$0x1] %vm3293_vm2, %v3292_v52 }
 0x20e   : > { %v3347_v37 = vadd.f32 %v3346_v34, %v3345_v36 }
 0x210   : > { %3348 = vst.msk [vmem:[%s4353_s16 + $0x1] sm:$0x1] %vm3293_vm2, %v3347_v37 }
 0x211 PF: > { %s16_s1 = sadd.s32 1, %s4272_s1   ;;  %s5693_s18 = smov %s4264_s20 }
 0x212   : > { %p13_p9 = scmp.ge.s32.totalorder %s16_s1, 6   ;;  %s5694_s19 = smov %s4268_s21 }
 0x213   : > { %s5695_s20 = smov %s5698_s2  ;;  %s5696_s21 = smov %s5702_s22 }
 0x214   :  { %15 = sbr.rel (!%p13_p9) target bundleno = 3 (0x3), region = 94 }

</bundles_post_ra>
